<compile_context>
chip_gen: v5e
topology: v5e:2x2
jax: 0.10.0
libtpu: 0.0.40
codegen_flags: <defaults>
</compile_context>

<pallas_src>
import functools

import jax
import jax.numpy as jnp
from jax import lax
from jax.experimental import pallas as pl
from jax.experimental.pallas import tpu as pltpu


# ----------------------------------------------------------------------------- kernel

def _intermediate_kernel(
    i_c_ref, i_pr_ref, i_nx_ref,      # hidden_I: (tl,H) tile + 8-row prev/next halo blocks
    s_c_ref, s_pr_ref, s_nx_ref,      # hidden_S views
    w1_ref,                           # (6H, it)  dense_in slab for this inter chunk
    b1_ref,                           # (1, it)   f32
    w2_ref,                           # (it, H)   dense_out slab for this inter chunk
    vecs_ref,                         # (8, H)    f32 rows: b2, gI, bI, gS, bS, 0, 0, 0
    out_i_ref, out_s_ref,             # (tl, H)
    y_acc_ref,                        # (tl, H)   f32 scratch (dense_out accumulator)
    *, nk, shift_impl,
):
    tl, H = i_c_ref.shape
    j = pl.program_id(1)
    nj = pl.num_programs(1)
    k = pl.program_id(2)
    f32 = jnp.float32

    xi = i_c_ref[...]
    xs = s_c_ref[...]
    dt = xi.dtype
    zrow = jnp.zeros((1, H), dt)

    # Halo rows; zero at the sequence boundaries (matches the torch zero padding).
    prev_i = jnp.where(j > 0, i_pr_ref[7:8, :], zrow)
    prev_s = jnp.where(j > 0, s_pr_ref[7:8, :], zrow)
    next_i = jnp.where(j < nj - 1, i_nx_ref[0:1, :], zrow)
    next_s = jnp.where(j < nj - 1, s_nx_ref[0:1, :], zrow)

    ridx = lax.broadcasted_iota(jnp.int32, (tl, 1), 0)
    if shift_impl == "roll":
        # +/-1 row shift on the XLU (sublane rotate); patch in the halo row.
        li = jnp.where(ridx == 0, prev_i, pltpu.roll(xi, shift=1, axis=0))
        ls = jnp.where(ridx == 0, prev_s, pltpu.roll(xs, shift=1, axis=0))
        ri = jnp.where(ridx == tl - 1, next_i, pltpu.roll(xi, shift=tl - 1, axis=0))
        rs = jnp.where(ridx == tl - 1, next_s, pltpu.roll(xs, shift=tl - 1, axis=0))
    else:
        # Proven fallback: exact 0/1 shift matrices on the MXU (only used if the
        # installed Mosaic rejects the sublane roll).
        r2 = lax.broadcasted_iota(jnp.int32, (tl, tl), 0)
        c2 = lax.broadcasted_iota(jnp.int32, (tl, tl), 1)
        dn = (r2 == c2 + 1).astype(dt)
        up = (r2 == c2 - 1).astype(dt)
        li = jnp.where(ridx == 0, prev_i, jnp.dot(dn, xi))
        ls = jnp.where(ridx == 0, prev_s, jnp.dot(dn, xs))
        ri = jnp.where(ridx == tl - 1, next_i, jnp.dot(up, xi))
        rs = jnp.where(ridx == tl - 1, next_s, jnp.dot(up, xs))

    # torch's cat([x_in, h_left, h_right], dim=-1) as one (tl, 6H) operand ->
    # a single K=6H MXU contraction per inter chunk.
    x6 = jnp.concatenate([xi, xs, li, ls, ri, rs], axis=-1)

    h = jnp.dot(x6, w1_ref[...], preferred_element_type=f32)
    h = jnp.maximum(h + b1_ref[...], 0.0)                        # bias + ReLU (f32)
    y = jnp.dot(h.astype(w2_ref.dtype), w2_ref[...], preferred_element_type=f32)

    def epilogue(yt):
        b2 = vecs_ref[0:1, :]
        g_i, b_i = vecs_ref[1:2, :], vecs_ref[2:3, :]
        g_s, b_s = vecs_ref[3:4, :], vecs_ref[4:5, :]
        yt = yt + b2
        # TODO(synk): dropout(p=0.1) is identity here (inference / deterministic kernel).
        eps = 1e-12

        def layer_norm(z, gamma, beta):
            mu = jnp.mean(z, axis=-1, keepdims=True)
            zc = z - mu
            var = jnp.mean(zc * zc, axis=-1, keepdims=True)
            return gamma * (zc * lax.rsqrt(var + eps)) + beta

        out_i_ref[...] = layer_norm(yt + xi.astype(f32), g_i, b_i).astype(out_i_ref.dtype)
        out_s_ref[...] = layer_norm(yt + xs.astype(f32), g_s, b_s).astype(out_s_ref.dtype)

    if nk == 1:
        # Weights resident: no accumulator round-trip needed.
        epilogue(y)
    else:
        @pl.when(k == 0)
        def _():
            y_acc_ref[...] = y

        @pl.when(k > 0)
        def _():
            y_acc_ref[...] += y

        @pl.when(k == nk - 1)
        def _():
            epilogue(y_acc_ref[...])


# ------------------------------------------------------------------------ VMEM planner

def _round_up(x, m):
    return ((x + m - 1) // m) * m


def _vmem_budget():
    cap = 64 * 1024 * 1024                       # conservative default (v7x per-TC VMEM)
    try:
        info = pltpu.get_tpu_info()
        cap = int(getattr(info, "vmem_capacity_bytes", cap)) or cap
    except Exception:
        pass
    return int(cap * 0.82)                       # ~105 MiB on 128 MiB parts, ~52 MiB on v7x


def _footprint_bytes(tl, it, H, inter, x_bytes, w_bytes, single_buffer):
    nk = max(inter // it, 1)
    wbuf = 1 if (nk == 1 and single_buffer) else 2
    weights = (6 * H * it + it * H) * w_bytes * wbuf + it * 4 * wbuf   # w1, w2 chunks + b1
    vecs = 8 * H * 4 * (1 if single_buffer else 2)
    acts_in = 2 * (tl * H + 16 * H) * x_bytes * 2      # I & S: tile + 2 halos, double-buffered
    acts_out = 2 * tl * H * 4 * 2                      # two outputs, double-buffered (f32 worst case)
    scratch = tl * H * 4                               # f32 y-accumulator
    temps = (tl * 6 * H * x_bytes                      # x6
             + 4 * tl * H * x_bytes                    # shifted copies
             + tl * it * 4                             # h
             + 2 * tl * H * 4)                         # y + residual temporaries
    return weights + vecs + acts_in + acts_out + scratch + temps


def _seq_tile_candidates(L, budget, seq_tile):
    if seq_tile is not None:
        assert seq_tile % 8 == 0 and seq_tile > 0
        return [seq_tile]
    target = 512 if budget >= 96 * 2**20 else 256      # bigger row tiles on 128 MiB parts
    tl0 = min(target, _round_up(L, 8))
    nj = -(-L // tl0)
    tl = _round_up(-(-L // nj), 8)                      # minimise tail padding
    cands = []
    for c in (tl, 256, 128, 64, 32, 16, 8):
        if 0 < c <= tl and c % 8 == 0 and c not in cands:
            cands.append(c)
    return cands


def _inter_tile_candidates(inter, inter_tile):
    if inter_tile is not None:
        assert inter % inter_tile == 0
        assert inter_tile == inter or inter_tile % 128 == 0
        return [inter_tile]
    cands = [inter]
    m = (inter // 128) * 128
    while m >= 128:
        if inter % m == 0 and m not in cands:
            cands.append(m)
        m -= 128
    return cands


# ---------------------------------------------------------------------------- wrapper

def intermediate_i_s(hidden_states_I, hidden_states_S, params, *,
                     compute_dtype=jnp.bfloat16, seq_tile=None, inter_tile=None,
                     single_buffer_params=True, shift_impl="roll", interpret=False):
    """JAX/Pallas equivalent of Intermediate_I_S.forward (dropout = identity)."""
    B, L, H = hidden_states_I.shape
    assert hidden_states_S.shape == (B, L, H)

    w1, b1 = params["w1"], params["b1"]              # (6H, inter), (inter,)
    w2, b2 = params["w2"], params["b2"]              # (inter, H),  (H,)
    g_i, be_i = params["ln_i_w"], params["ln_i_b"]
    g_s, be_s = params["ln_s_w"], params["ln_s_b"]
    inter = w1.shape[1]
    assert w1.shape[0] == 6 * H

    out_dtype = hidden_states_I.dtype
    cdt = jnp.dtype(compute_dtype) if compute_dtype is not None else jnp.dtype(out_dtype)
    budget = _vmem_budget()

    # Pick (seq_tile, inter_tile) so the VMEM plan fits; weights stay resident (nk == 1)
    # whenever possible, otherwise they stream over inter chunks.
    chosen = None
    tl_cands = _seq_tile_candidates(L, budget, seq_tile)
    it_cands = _inter_tile_candidates(inter, inter_tile)
    for tl_c in tl_cands:
        for it_c in it_cands:
            if _footprint_bytes(tl_c, it_c, H, inter, cdt.itemsize, cdt.itemsize,
                                single_buffer_params) <= budget:
                chosen = (tl_c, it_c)
                break
        if chosen is not None:
            break
    if chosen is None:
        chosen = (tl_cands[-1], it_cands[-1])        # smallest plan; let Mosaic complain if needed
    tl, it = chosen
    nk = inter // it
    Lp = _round_up(L, tl)
    nj = Lp // tl
    hb, nh = tl // 8, Lp // 8

    # Cast MXU operands to the compute dtype; pad the sequence to a tile multiple
    # (zero padding reproduces the torch h_pad semantics at the tail).
    hi = hidden_states_I.astype(cdt)
    hs = hidden_states_S.astype(cdt)
    if Lp != L:
        pad = ((0, 0), (0, Lp - L), (0, 0))
        hi, hs = jnp.pad(hi, pad), jnp.pad(hs, pad)

    f32 = jnp.float32
    w1_c = w1.astype(cdt)
    w2_c = w2.astype(cdt)
    b1_2d = b1.reshape(1, inter).astype(f32)
    vecs = jnp.zeros((8, H), f32)
    vecs = (vecs.at[0].set(b2.astype(f32))
                .at[1].set(g_i.astype(f32)).at[2].set(be_i.astype(f32))
                .at[3].set(g_s.astype(f32)).at[4].set(be_s.astype(f32)))

    center = pl.BlockSpec((None, tl, H), lambda b, j, k: (b, j, 0))
    prev_halo = pl.BlockSpec((None, 8, H),
                             lambda b, j, k: (b, jnp.maximum(j * hb - 1, 0), 0))
    next_halo = pl.BlockSpec((None, 8, H),
                             lambda b, j, k: (b, jnp.minimum((j + 1) * hb, nh - 1), 0))

    def _spec(shape, index_map, constant):
        # Grid-invariant operands: one VMEM buffer (no double-buffer VMEM tax).
        # Streamed operands keep default double buffering for DMA/compute overlap.
        if constant and single_buffer_params:
            return pl.BlockSpec(shape, index_map, pipeline_mode=pl.Buffered(1))
        return pl.BlockSpec(shape, index_map)

    weights_const = (nk == 1)
    in_specs = [
        center, prev_halo, next_halo,                       # hidden_I views
        center, prev_halo, next_halo,                       # hidden_S views
        _spec((6 * H, it), lambda b, j, k: (0, k), weights_const),   # w1 chunk
        _spec((1, it), lambda b, j, k: (0, k), weights_const),       # b1 chunk
        _spec((it, H), lambda b, j, k: (k, 0), weights_const),       # w2 chunk
        _spec((8, H), lambda b, j, k: (0, 0), True),                 # packed b2 / LN params
    ]
    out_spec = pl.BlockSpec((None, tl, H), lambda b, j, k: (b, j, 0))

    cost = pl.CostEstimate(
        flops=int(2 * B * Lp * inter * 6 * H + 2 * B * Lp * inter * H + 12 * B * Lp * H),
        transcendentals=int(2 * B * Lp),
        bytes_accessed=int(4 * B * Lp * H * cdt.itemsize
                           + (6 * H * inter + inter * H) * cdt.itemsize
                           + (inter + 5 * H) * 4),
    )

    kernel = functools.partial(_intermediate_kernel, nk=nk, shift_impl=shift_impl)
    out_i, out_s = pl.pallas_call(
        kernel,
        out_shape=(jax.ShapeDtypeStruct((B, Lp, H), out_dtype),
                   jax.ShapeDtypeStruct((B, Lp, H), out_dtype)),
        grid_spec=pltpu.PrefetchScalarGridSpec(
            num_scalar_prefetch=0,
            grid=(B, nj, nk),
            in_specs=in_specs,
            out_specs=[out_spec, out_spec],
            scratch_shapes=[pltpu.VMEM((tl, H), jnp.float32)],
        ),
        compiler_params=pltpu.CompilerParams(
            dimension_semantics=("parallel", "parallel", "arbitrary"),
            vmem_limit_bytes=int(budget),
        ),
        cost_estimate=cost,
        interpret=interpret,
    )(hi, hi, hi, hs, hs, hs, w1_c, b1_2d, w2_c, vecs)

    if Lp != L:
        out_i = out_i[:, :L, :]
        out_s = out_s[:, :L, :]
    return out_i, out_s


# -------------------------------------------------------------------- params / reference

def init_params(key, hidden_size, intermediate_size, dtype=jnp.float32):
    """Deterministic synthetic parameters (shapes match the PyTorch module)."""
    k1, k2, k3, k4 = jax.random.split(key, 4)
    in_dim = hidden_size * 6
    # Linear weights stored as (in, out) == W.T of PyTorch's (out, in).
    w1 = jax.random.normal(k1, (in_dim, intermediate_size), dtype) * (1.0 / jnp.sqrt(in_dim))
    b1 = jax.random.normal(k2, (intermediate_size,), dtype) * 0.02
    w2 = jax.random.normal(k3, (intermediate_size, hidden_size), dtype) * (1.0 / jnp.sqrt(intermediate_size))
    b2 = jax.random.normal(k4, (hidden_size,), dtype) * 0.02
    return {
        "w1": w1, "b1": b1, "w2": w2, "b2": b2,
        "ln_i_w": jnp.ones((hidden_size,), dtype),
        "ln_i_b": jnp.zeros((hidden_size,), dtype),
        "ln_s_w": jnp.ones((hidden_size,), dtype),
        "ln_s_b": jnp.zeros((hidden_size,), dtype),
    }


def _reference(hidden_states_I, hidden_states_S, params):
    """Pure-JAX reference mirroring the PyTorch forward (dropout = identity)."""
    B, L, H = hidden_states_I.shape
    x_in = jnp.concatenate([hidden_states_I, hidden_states_S], axis=2)
    h_pad = jnp.zeros((B, 1, 2 * H), dtype=x_in.dtype)
    h_left = jnp.concatenate([h_pad, x_in[:, : L - 1, :]], axis=1)
    h_right = jnp.concatenate([x_in[:, 1:, :], h_pad], axis=1)
    x6 = jnp.concatenate([x_in, h_left, h_right], axis=2)
    h = jnp.maximum(x6 @ params["w1"] + params["b1"], 0.0)
    y = h @ params["w2"] + params["b2"]

    def ln(z, g, b):
        u = jnp.mean(z, axis=-1, keepdims=True)
        zc = z - u
        v = jnp.mean(zc * zc, axis=-1, keepdims=True)
        return g * (zc / jnp.sqrt(v + 1e-12)) + b

    return (ln(y + hidden_states_I, params["ln_i_w"], params["ln_i_b"]),
            ln(y + hidden_states_S, params["ln_s_w"], params["ln_s_b"]))


# ------------------------------------------------------------------------------- main

if __name__ == "__main__":
    # L=20 with seq_tile=8 exercises cross-block halos, zero-padded sequence ends and
    # the tail-padding path; H=128 keeps the lane concat of x6 128-aligned.
    B, L, H, INTER = 2, 20, 128, 256

    key = jax.random.PRNGKey(0)
    k_i, k_s, k_p = jax.random.split(key, 3)
    hidden_I = jax.random.normal(k_i, (B, L, H), jnp.float32)
    hidden_S = jax.random.normal(k_s, (B, L, H), jnp.float32)
    params = init_params(k_p, H, INTER)

    ref_i, ref_s = _reference(hidden_I, hidden_S, params)

    def run(**kw):
        # Graceful degradation: drop the Buffered(1) hint, then the sublane roll,
        # if the installed JAX/Mosaic build rejects them.
        attempts = [dict(kw),
                    dict(kw, single_buffer_params=False),
                    dict(kw, shift_impl="matmul"),
                    dict(kw, shift_impl="matmul", single_buffer_params=False)]
        last_err = None
        for cfg in attempts:
            try:
                fn = jax.jit(lambda a, b: intermediate_i_s(a, b, params, **cfg))
                out = fn(hidden_I, hidden_S)
                jax.block_until_ready(out)
                return out
            except Exception as e:            # noqa: BLE001 - retry with safer config
                last_err = e
        raise last_err

    # 1) f32 MXU feeds, small explicit row tile -> halo + padding paths, tight tolerance.
    o_i, o_s = run(compute_dtype=jnp.float32, seq_tile=8)
    assert jnp.allclose(o_i, ref_i, atol=5e-4, rtol=5e-4), "I mismatch (f32, tiled)"
    assert jnp.allclose(o_s, ref_s, atol=5e-4, rtol=5e-4), "S mismatch (f32, tiled)"

    # 2) f32 with streamed inter chunks (nk > 1 accumulator path).
    o_i, o_s = run(compute_dtype=jnp.float32, seq_tile=8, inter_tile=128)
    assert jnp.allclose(o_i, ref_i, atol=5e-4, rtol=5e-4), "I mismatch (inter-streamed)"
    assert jnp.allclose(o_s, ref_s, atol=5e-4, rtol=5e-4), "S mismatch (inter-streamed)"

    # 3) Default production config: bf16 MXU feeds, auto tile plan (relaxed tolerance).
    o_i, o_s = run()
    assert jnp.allclose(o_i, ref_i, atol=8e-2, rtol=8e-2), "I mismatch (bf16)"
    assert jnp.allclose(o_s, ref_s, atol=8e-2, rtol=8e-2), "S mismatch (bf16)"

    print("KERNEL_OK")
</pallas_src>

<mosaic_0001>
module attributes {stable_mosaic.version = 11 : i64} {
  func.func @_intermediate_kernel(%arg0: i32, %arg1: i32, %arg2: i32, %arg3: memref<1x8x128xf32, #tpu.memory_space<vmem>>, %arg4: memref<1x8x128xf32, #tpu.memory_space<vmem>>, %arg5: memref<1x8x128xf32, #tpu.memory_space<vmem>>, %arg6: memref<1x8x128xf32, #tpu.memory_space<vmem>>, %arg7: memref<1x8x128xf32, #tpu.memory_space<vmem>>, %arg8: memref<1x8x128xf32, #tpu.memory_space<vmem>>, %arg9: memref<768x256xf32, #tpu.memory_space<vmem>>, %arg10: memref<1x256xf32, #tpu.memory_space<vmem>>, %arg11: memref<256x128xf32, #tpu.memory_space<vmem>>, %arg12: memref<8x128xf32, #tpu.memory_space<vmem>>, %arg13: memref<1x8x128xf32, #tpu.memory_space<vmem>>, %arg14: memref<1x8x128xf32, #tpu.memory_space<vmem>>, %arg15: memref<8x128xf32, #tpu.memory_space<vmem>>) attributes {dimension_semantics = [#tpu.dimension_semantics<parallel>, #tpu.dimension_semantics<parallel>, #tpu.dimension_semantics<arbitrary>], iteration_bounds = array<i64: 2, 3, 1>, scalar_prefetch = 0 : i64, scratch_operands = 1 : i64, tpu.core_type = #tpu.core_type<tc>, window_params = [{transform_indices = @transform_0, window_bounds = array<i64: 1, 8, 128>}, {transform_indices = @transform_1, window_bounds = array<i64: 1, 8, 128>}, {transform_indices = @transform_2, window_bounds = array<i64: 1, 8, 128>}, {transform_indices = @transform_3, window_bounds = array<i64: 1, 8, 128>}, {transform_indices = @transform_4, window_bounds = array<i64: 1, 8, 128>}, {transform_indices = @transform_5, window_bounds = array<i64: 1, 8, 128>}, {pipeline_mode = #tpu.pipeline_mode<synchronous>, transform_indices = @transform_6, window_bounds = array<i64: 768, 256>}, {pipeline_mode = #tpu.pipeline_mode<synchronous>, transform_indices = @transform_7, window_bounds = array<i64: 1, 256>}, {pipeline_mode = #tpu.pipeline_mode<synchronous>, transform_indices = @transform_8, window_bounds = array<i64: 256, 128>}, {pipeline_mode = #tpu.pipeline_mode<synchronous>, transform_indices = @transform_9, window_bounds = array<i64: 8, 128>}, {transform_indices = @transform_10, window_bounds = array<i64: 1, 8, 128>}, {transform_indices = @transform_11, window_bounds = array<i64: 1, 8, 128>}]} {
    %c0 = arith.constant 0 : index
    %c0_0 = arith.constant 0 : index
    %c0_1 = arith.constant 0 : index
    %0 = vector.load %arg3[%c0, %c0_0, %c0_1] : memref<1x8x128xf32, #tpu.memory_space<vmem>>, vector<1x8x128xf32>
    %1 = vector.shape_cast %0 : vector<1x8x128xf32> to vector<8x128xf32>
    %c0_2 = arith.constant 0 : index
    %c0_3 = arith.constant 0 : index
    %c0_4 = arith.constant 0 : index
    %2 = vector.load %arg6[%c0_2, %c0_3, %c0_4] : memref<1x8x128xf32, #tpu.memory_space<vmem>>, vector<1x8x128xf32>
    %3 = vector.shape_cast %2 : vector<1x8x128xf32> to vector<8x128xf32>
    %cst = arith.constant 0.000000e+00 : f32
    %4 = vector.broadcast %cst : f32 to vector<1x128xf32>
    %c0_i32 = arith.constant 0 : i32
    %5 = arith.cmpi sgt, %arg1, %c0_i32 : i32
    %c0_5 = arith.constant 0 : index
    %c7 = arith.constant 7 : index
    %c0_6 = arith.constant 0 : index
    %6 = vector.load %arg4[%c0_5, %c7, %c0_6] : memref<1x8x128xf32, #tpu.memory_space<vmem>>, vector<1x1x128xf32>
    %7 = vector.shape_cast %6 : vector<1x1x128xf32> to vector<1x128xf32>
    %8 = arith.select %5, %7, %4 : vector<1x128xf32>
    %c0_i32_7 = arith.constant 0 : i32
    %9 = arith.cmpi sgt, %arg1, %c0_i32_7 : i32
    %c0_8 = arith.constant 0 : index
    %c7_9 = arith.constant 7 : index
    %c0_10 = arith.constant 0 : index
    %10 = vector.load %arg7[%c0_8, %c7_9, %c0_10] : memref<1x8x128xf32, #tpu.memory_space<vmem>>, vector<1x1x128xf32>
    %11 = vector.shape_cast %10 : vector<1x1x128xf32> to vector<1x128xf32>
    %12 = arith.select %9, %11, %4 : vector<1x128xf32>
    %c2_i32 = arith.constant 2 : i32
    %13 = arith.cmpi slt, %arg1, %c2_i32 : i32
    %c0_11 = arith.constant 0 : index
    %c0_12 = arith.constant 0 : index
    %c0_13 = arith.constant 0 : index
    %14 = vector.load %arg5[%c0_11, %c0_12, %c0_13] : memref<1x8x128xf32, #tpu.memory_space<vmem>>, vector<1x1x128xf32>
    %15 = vector.shape_cast %14 : vector<1x1x128xf32> to vector<1x128xf32>
    %16 = arith.select %13, %15, %4 : vector<1x128xf32>
    %c2_i32_14 = arith.constant 2 : i32
    %17 = arith.cmpi slt, %arg1, %c2_i32_14 : i32
    %c0_15 = arith.constant 0 : index
    %c0_16 = arith.constant 0 : index
    %c0_17 = arith.constant 0 : index
    %18 = vector.load %arg8[%c0_15, %c0_16, %c0_17] : memref<1x8x128xf32, #tpu.memory_space<vmem>>, vector<1x1x128xf32>
    %19 = vector.shape_cast %18 : vector<1x1x128xf32> to vector<1x128xf32>
    %20 = arith.select %17, %19, %4 : vector<1x128xf32>
    %21 = tpu.iota {dimensions = array<i32: 0>} : vector<8x1xi32>
    %c0_i32_18 = arith.constant 0 : i32
    %22 = vector.broadcast %c0_i32_18 : i32 to vector<8x1xi32>
    %23 = arith.cmpi eq, %21, %22 : vector<8x1xi32>
    %c1_i32 = arith.constant 1 : i32
    %24 = tpu.dynamic_rotate %1 by %c1_i32 dim 0 : vector<8x128xf32>, i32 -> vector<8x128xf32>
    %25 = vector.shape_cast %23 : vector<8x1xi1> to vector<8x1xi1>
    %26 = vector.broadcast %25 : vector<8x1xi1> to vector<8x128xi1>
    %27 = vector.shape_cast %8 : vector<1x128xf32> to vector<1x128xf32>
    %28 = vector.broadcast %27 : vector<1x128xf32> to vector<8x128xf32>
    %29 = arith.select %26, %28, %24 : vector<8x128xi1>, vector<8x128xf32>
    %c0_i32_19 = arith.constant 0 : i32
    %30 = vector.broadcast %c0_i32_19 : i32 to vector<8x1xi32>
    %31 = arith.cmpi eq, %21, %30 : vector<8x1xi32>
    %c1_i32_20 = arith.constant 1 : i32
    %32 = tpu.dynamic_rotate %3 by %c1_i32_20 dim 0 : vector<8x128xf32>, i32 -> vector<8x128xf32>
    %33 = vector.shape_cast %31 : vector<8x1xi1> to vector<8x1xi1>
    %34 = vector.broadcast %33 : vector<8x1xi1> to vector<8x128xi1>
    %35 = vector.shape_cast %12 : vector<1x128xf32> to vector<1x128xf32>
    %36 = vector.broadcast %35 : vector<1x128xf32> to vector<8x128xf32>
    %37 = arith.select %34, %36, %32 : vector<8x128xi1>, vector<8x128xf32>
    %c7_i32 = arith.constant 7 : i32
    %38 = vector.broadcast %c7_i32 : i32 to vector<8x1xi32>
    %39 = arith.cmpi eq, %21, %38 : vector<8x1xi32>
    %c7_i32_21 = arith.constant 7 : i32
    %40 = tpu.dynamic_rotate %1 by %c7_i32_21 dim 0 : vector<8x128xf32>, i32 -> vector<8x128xf32>
    %41 = vector.shape_cast %39 : vector<8x1xi1> to vector<8x1xi1>
    %42 = vector.broadcast %41 : vector<8x1xi1> to vector<8x128xi1>
    %43 = vector.shape_cast %16 : vector<1x128xf32> to vector<1x128xf32>
    %44 = vector.broadcast %43 : vector<1x128xf32> to vector<8x128xf32>
    %45 = arith.select %42, %44, %40 : vector<8x128xi1>, vector<8x128xf32>
    %c7_i32_22 = arith.constant 7 : i32
    %46 = vector.broadcast %c7_i32_22 : i32 to vector<8x1xi32>
    %47 = arith.cmpi eq, %21, %46 : vector<8x1xi32>
    %c7_i32_23 = arith.constant 7 : i32
    %48 = tpu.dynamic_rotate %3 by %c7_i32_23 dim 0 : vector<8x128xf32>, i32 -> vector<8x128xf32>
    %49 = vector.shape_cast %47 : vector<8x1xi1> to vector<8x1xi1>
    %50 = vector.broadcast %49 : vector<8x1xi1> to vector<8x128xi1>
    %51 = vector.shape_cast %20 : vector<1x128xf32> to vector<1x128xf32>
    %52 = vector.broadcast %51 : vector<1x128xf32> to vector<8x128xf32>
    %53 = arith.select %50, %52, %48 : vector<8x128xi1>, vector<8x128xf32>
    %54 = tpu.concatenate %1, %3, %29, %37, %45, %53 in 1 : vector<8x128xf32>, vector<8x128xf32>, vector<8x128xf32>, vector<8x128xf32>, vector<8x128xf32>, vector<8x128xf32> -> vector<8x768xf32>
    %c0_24 = arith.constant 0 : index
    %c0_25 = arith.constant 0 : index
    %55 = vector.load %arg9[%c0_24, %c0_25] : memref<768x256xf32, #tpu.memory_space<vmem>>, vector<768x256xf32>
    %cst_26 = arith.constant dense<0.000000e+00> : vector<8x256xf32>
    %56 = tpu.matmul %54, %55, %cst_26 {dimension_numbers = #tpu.dot_dimension_numbers<[1], [0], [0], [1], [0, 0, 1, 1], [], []>} : vector<8x768xf32>, vector<768x256xf32>, vector<8x256xf32> -> vector<8x256xf32>
    %c0_27 = arith.constant 0 : index
    %c0_28 = arith.constant 0 : index
    %57 = vector.load %arg10[%c0_27, %c0_28] : memref<1x256xf32, #tpu.memory_space<vmem>>, vector<1x256xf32>
    %58 = vector.broadcast %57 : vector<1x256xf32> to vector<8x256xf32>
    %59 = arith.addf %56, %58 : vector<8x256xf32>
    %cst_29 = arith.constant 0.000000e+00 : f32
    %60 = vector.broadcast %cst_29 : f32 to vector<8x256xf32>
    %61 = arith.maximumf %59, %60 : vector<8x256xf32>
    %c0_30 = arith.constant 0 : index
    %c0_31 = arith.constant 0 : index
    %62 = vector.load %arg11[%c0_30, %c0_31] : memref<256x128xf32, #tpu.memory_space<vmem>>, vector<256x128xf32>
    %cst_32 = arith.constant dense<0.000000e+00> : vector<8x128xf32>
    %63 = tpu.matmul %61, %62, %cst_32 {dimension_numbers = #tpu.dot_dimension_numbers<[1], [0], [0], [1], [0, 0, 1, 1], [], []>} : vector<8x256xf32>, vector<256x128xf32>, vector<8x128xf32> -> vector<8x128xf32>
    %c0_33 = arith.constant 0 : index
    %c0_34 = arith.constant 0 : index
    %64 = vector.load %arg12[%c0_33, %c0_34] : memref<8x128xf32, #tpu.memory_space<vmem>>, vector<1x128xf32>
    %c1 = arith.constant 1 : index
    %c0_35 = arith.constant 0 : index
    %65 = vector.load %arg12[%c1, %c0_35] : memref<8x128xf32, #tpu.memory_space<vmem>>, vector<1x128xf32>
    %c2 = arith.constant 2 : index
    %c0_36 = arith.constant 0 : index
    %66 = vector.load %arg12[%c2, %c0_36] : memref<8x128xf32, #tpu.memory_space<vmem>>, vector<1x128xf32>
    %c3 = arith.constant 3 : index
    %c0_37 = arith.constant 0 : index
    %67 = vector.load %arg12[%c3, %c0_37] : memref<8x128xf32, #tpu.memory_space<vmem>>, vector<1x128xf32>
    %c4 = arith.constant 4 : index
    %c0_38 = arith.constant 0 : index
    %68 = vector.load %arg12[%c4, %c0_38] : memref<8x128xf32, #tpu.memory_space<vmem>>, vector<1x128xf32>
    %69 = vector.broadcast %64 : vector<1x128xf32> to vector<8x128xf32>
    %70 = arith.addf %63, %69 : vector<8x128xf32>
    %71 = arith.addf %70, %1 : vector<8x128xf32>
    %cst_39 = arith.constant dense<0.000000e+00> : vector<8xf32>
    %72 = vector.multi_reduction <add>, %71, %cst_39 [1] : vector<8x128xf32> to vector<8xf32>
    %73 = vector.shape_cast %72 : vector<8xf32> to vector<8x1xf32>
    %cst_40 = arith.constant 1.280000e+02 : f32
    %74 = vector.broadcast %cst_40 : f32 to vector<8x1xf32>
    %75 = arith.divf %73, %74 : vector<8x1xf32>
    %76 = vector.broadcast %75 : vector<8x1xf32> to vector<8x128xf32>
    %77 = arith.subf %71, %76 : vector<8x128xf32>
    %78 = arith.mulf %77, %77 : vector<8x128xf32>
    %cst_41 = arith.constant dense<0.000000e+00> : vector<8xf32>
    %79 = vector.multi_reduction <add>, %78, %cst_41 [1] : vector<8x128xf32> to vector<8xf32>
    %80 = vector.shape_cast %79 : vector<8xf32> to vector<8x1xf32>
    %cst_42 = arith.constant 1.280000e+02 : f32
    %81 = vector.broadcast %cst_42 : f32 to vector<8x1xf32>
    %82 = arith.divf %80, %81 : vector<8x1xf32>
    %cst_43 = arith.constant 9.99999996E-13 : f32
    %83 = vector.broadcast %cst_43 : f32 to vector<8x1xf32>
    %84 = arith.addf %82, %83 : vector<8x1xf32>
    %85 = math.rsqrt %84 : vector<8x1xf32>
    %86 = vector.broadcast %85 : vector<8x1xf32> to vector<8x128xf32>
    %87 = arith.mulf %77, %86 : vector<8x128xf32>
    %88 = vector.broadcast %65 : vector<1x128xf32> to vector<8x128xf32>
    %89 = arith.mulf %88, %87 : vector<8x128xf32>
    %90 = vector.broadcast %66 : vector<1x128xf32> to vector<8x128xf32>
    %91 = arith.addf %89, %90 : vector<8x128xf32>
    %c0_44 = arith.constant 0 : index
    %c0_45 = arith.constant 0 : index
    %c0_46 = arith.constant 0 : index
    %92 = vector.load %arg13[%c0_44, %c0_45, %c0_46] : memref<1x8x128xf32, #tpu.memory_space<vmem>>, vector<1x8x128xf32>
    %93 = vector.shape_cast %92 : vector<1x8x128xf32> to vector<8x128xf32>
    %94 = vector.shape_cast %91 : vector<8x128xf32> to vector<1x8x128xf32>
    tpu.vector_store %arg13[%c0_44, %c0_45, %c0_46], %94 {strides = array<i32>} : memref<1x8x128xf32, #tpu.memory_space<vmem>>, vector<1x8x128xf32>,
    %95 = arith.addf %70, %3 : vector<8x128xf32>
    %cst_47 = arith.constant dense<0.000000e+00> : vector<8xf32>
    %96 = vector.multi_reduction <add>, %95, %cst_47 [1] : vector<8x128xf32> to vector<8xf32>
    %97 = vector.shape_cast %96 : vector<8xf32> to vector<8x1xf32>
    %cst_48 = arith.constant 1.280000e+02 : f32
    %98 = vector.broadcast %cst_48 : f32 to vector<8x1xf32>
    %99 = arith.divf %97, %98 : vector<8x1xf32>
    %100 = vector.broadcast %99 : vector<8x1xf32> to vector<8x128xf32>
    %101 = arith.subf %95, %100 : vector<8x128xf32>
    %102 = arith.mulf %101, %101 : vector<8x128xf32>
    %cst_49 = arith.constant dense<0.000000e+00> : vector<8xf32>
    %103 = vector.multi_reduction <add>, %102, %cst_49 [1] : vector<8x128xf32> to vector<8xf32>
    %104 = vector.shape_cast %103 : vector<8xf32> to vector<8x1xf32>
    %cst_50 = arith.constant 1.280000e+02 : f32
    %105 = vector.broadcast %cst_50 : f32 to vector<8x1xf32>
    %106 = arith.divf %104, %105 : vector<8x1xf32>
    %cst_51 = arith.constant 9.99999996E-13 : f32
    %107 = vector.broadcast %cst_51 : f32 to vector<8x1xf32>
    %108 = arith.addf %106, %107 : vector<8x1xf32>
    %109 = math.rsqrt %108 : vector<8x1xf32>
    %110 = vector.broadcast %109 : vector<8x1xf32> to vector<8x128xf32>
    %111 = arith.mulf %101, %110 : vector<8x128xf32>
    %112 = vector.broadcast %67 : vector<1x128xf32> to vector<8x128xf32>
    %113 = arith.mulf %112, %111 : vector<8x128xf32>
    %114 = vector.broadcast %68 : vector<1x128xf32> to vector<8x128xf32>
    %115 = arith.addf %113, %114 : vector<8x128xf32>
    %c0_52 = arith.constant 0 : index
    %c0_53 = arith.constant 0 : index
    %c0_54 = arith.constant 0 : index
    %116 = vector.load %arg14[%c0_52, %c0_53, %c0_54] : memref<1x8x128xf32, #tpu.memory_space<vmem>>, vector<1x8x128xf32>
    %117 = vector.shape_cast %116 : vector<1x8x128xf32> to vector<8x128xf32>
    %118 = vector.shape_cast %115 : vector<8x128xf32> to vector<1x8x128xf32>
    tpu.vector_store %arg14[%c0_52, %c0_53, %c0_54], %118 {strides = array<i32>} : memref<1x8x128xf32, #tpu.memory_space<vmem>>, vector<1x8x128xf32>,
    return
  }
  func.func @transform_0(%arg0: i32, %arg1: i32, %arg2: i32) -> (i32, i32, i32) {
    %c0_i32 = arith.constant 0 : i32
    %c0_i32_0 = arith.constant 0 : i32
    return %arg0, %arg1, %c0_i32 : i32, i32, i32
  }
  func.func @transform_1(%arg0: i32, %arg1: i32, %arg2: i32) -> (i32, i32, i32) {
    %c1_i32 = arith.constant 1 : i32
    %0 = arith.muli %arg1, %c1_i32 : i32
    %c1_i32_0 = arith.constant 1 : i32
    %1 = arith.subi %0, %c1_i32_0 : i32
    %c0_i32 = arith.constant 0 : i32
    %2 = arith.maxsi %1, %c0_i32 : i32
    %c0_i32_1 = arith.constant 0 : i32
    %c0_i32_2 = arith.constant 0 : i32
    return %arg0, %2, %c0_i32_1 : i32, i32, i32
  }
  func.func @transform_2(%arg0: i32, %arg1: i32, %arg2: i32) -> (i32, i32, i32) {
    %c1_i32 = arith.constant 1 : i32
    %0 = arith.addi %arg1, %c1_i32 : i32
    %c1_i32_0 = arith.constant 1 : i32
    %1 = arith.muli %0, %c1_i32_0 : i32
    %c2_i32 = arith.constant 2 : i32
    %2 = arith.minsi %1, %c2_i32 : i32
    %c0_i32 = arith.constant 0 : i32
    %c0_i32_1 = arith.constant 0 : i32
    return %arg0, %2, %c0_i32 : i32, i32, i32
  }
  func.func @transform_3(%arg0: i32, %arg1: i32, %arg2: i32) -> (i32, i32, i32) {
    %c0_i32 = arith.constant 0 : i32
    %c0_i32_0 = arith.constant 0 : i32
    return %arg0, %arg1, %c0_i32 : i32, i32, i32
  }
  func.func @transform_4(%arg0: i32, %arg1: i32, %arg2: i32) -> (i32, i32, i32) {
    %c1_i32 = arith.constant 1 : i32
    %0 = arith.muli %arg1, %c1_i32 : i32
    %c1_i32_0 = arith.constant 1 : i32
    %1 = arith.subi %0, %c1_i32_0 : i32
    %c0_i32 = arith.constant 0 : i32
    %2 = arith.maxsi %1, %c0_i32 : i32
    %c0_i32_1 = arith.constant 0 : i32
    %c0_i32_2 = arith.constant 0 : i32
    return %arg0, %2, %c0_i32_1 : i32, i32, i32
  }
  func.func @transform_5(%arg0: i32, %arg1: i32, %arg2: i32) -> (i32, i32, i32) {
    %c1_i32 = arith.constant 1 : i32
    %0 = arith.addi %arg1, %c1_i32 : i32
    %c1_i32_0 = arith.constant 1 : i32
    %1 = arith.muli %0, %c1_i32_0 : i32
    %c2_i32 = arith.constant 2 : i32
    %2 = arith.minsi %1, %c2_i32 : i32
    %c0_i32 = arith.constant 0 : i32
    %c0_i32_1 = arith.constant 0 : i32
    return %arg0, %2, %c0_i32 : i32, i32, i32
  }
  func.func @transform_6(%arg0: i32, %arg1: i32, %arg2: i32) -> (i32, i32) {
    %c0_i32 = arith.constant 0 : i32
    %c0_i32_0 = arith.constant 0 : i32
    return %c0_i32, %arg2 : i32, i32
  }
  func.func @transform_7(%arg0: i32, %arg1: i32, %arg2: i32) -> (i32, i32) {
    %c0_i32 = arith.constant 0 : i32
    %c0_i32_0 = arith.constant 0 : i32
    return %c0_i32, %arg2 : i32, i32
  }
  func.func @transform_8(%arg0: i32, %arg1: i32, %arg2: i32) -> (i32, i32) {
    %c0_i32 = arith.constant 0 : i32
    %c0_i32_0 = arith.constant 0 : i32
    return %arg2, %c0_i32 : i32, i32
  }
  func.func @transform_9(%arg0: i32, %arg1: i32, %arg2: i32) -> (i32, i32) {
    %c0_i32 = arith.constant 0 : i32
    %c0_i32_0 = arith.constant 0 : i32
    %c0_i32_1 = arith.constant 0 : i32
    return %c0_i32, %c0_i32_0 : i32, i32
  }
  func.func @transform_10(%arg0: i32, %arg1: i32, %arg2: i32) -> (i32, i32, i32) {
    %c0_i32 = arith.constant 0 : i32
    %c0_i32_0 = arith.constant 0 : i32
    return %arg0, %arg1, %c0_i32 : i32, i32, i32
  }
  func.func @transform_11(%arg0: i32, %arg1: i32, %arg2: i32) -> (i32, i32, i32) {
    %c0_i32 = arith.constant 0 : i32
    %c0_i32_0 = arith.constant 0 : i32
    return %arg0, %arg1, %c0_i32 : i32, i32, i32
  }
}

module attributes {stable_mosaic.version = 11 : i64} {
  func.func @_intermediate_kernel(%arg0: i32, %arg1: i32, %arg2: i32, %arg3: memref<1x8x128xf32, #tpu.memory_space<vmem>>, %arg4: memref<1x8x128xf32, #tpu.memory_space<vmem>>, %arg5: memref<1x8x128xf32, #tpu.memory_space<vmem>>, %arg6: memref<1x8x128xf32, #tpu.memory_space<vmem>>, %arg7: memref<1x8x128xf32, #tpu.memory_space<vmem>>, %arg8: memref<1x8x128xf32, #tpu.memory_space<vmem>>, %arg9: memref<768x256xf32, #tpu.memory_space<vmem>>, %arg10: memref<1x256xf32, #tpu.memory_space<vmem>>, %arg11: memref<256x128xf32, #tpu.memory_space<vmem>>, %arg12: memref<8x128xf32, #tpu.memory_space<vmem>>, %arg13: memref<1x8x128xf32, #tpu.memory_space<vmem>>, %arg14: memref<1x8x128xf32, #tpu.memory_space<vmem>>, %arg15: memref<8x128xf32, #tpu.memory_space<vmem>>) attributes {dimension_semantics = [#tpu.dimension_semantics<parallel>, #tpu.dimension_semantics<parallel>, #tpu.dimension_semantics<arbitrary>], iteration_bounds = array<i64: 2, 3, 1>, scalar_prefetch = 0 : i64, scratch_operands = 1 : i64, tpu.core_type = #tpu.core_type<tc>, window_params = [{transform_indices = @transform_0, window_bounds = array<i64: 1, 8, 128>}, {transform_indices = @transform_1, window_bounds = array<i64: 1, 8, 128>}, {transform_indices = @transform_2, window_bounds = array<i64: 1, 8, 128>}, {transform_indices = @transform_3, window_bounds = array<i64: 1, 8, 128>}, {transform_indices = @transform_4, window_bounds = array<i64: 1, 8, 128>}, {transform_indices = @transform_5, window_bounds = array<i64: 1, 8, 128>}, {transform_indices = @transform_6, window_bounds = array<i64: 768, 256>}, {transform_indices = @transform_7, window_bounds = array<i64: 1, 256>}, {transform_indices = @transform_8, window_bounds = array<i64: 256, 128>}, {pipeline_mode = #tpu.pipeline_mode<synchronous>, transform_indices = @transform_9, window_bounds = array<i64: 8, 128>}, {transform_indices = @transform_10, window_bounds = array<i64: 1, 8, 128>}, {transform_indices = @transform_11, window_bounds = array<i64: 1, 8, 128>}]} {
    %c0 = arith.constant 0 : index
    %c0_0 = arith.constant 0 : index
    %c0_1 = arith.constant 0 : index
    %0 = vector.load %arg3[%c0, %c0_0, %c0_1] : memref<1x8x128xf32, #tpu.memory_space<vmem>>, vector<1x8x128xf32>
    %1 = vector.shape_cast %0 : vector<1x8x128xf32> to vector<8x128xf32>
    %c0_2 = arith.constant 0 : index
    %c0_3 = arith.constant 0 : index
    %c0_4 = arith.constant 0 : index
    %2 = vector.load %arg6[%c0_2, %c0_3, %c0_4] : memref<1x8x128xf32, #tpu.memory_space<vmem>>, vector<1x8x128xf32>
    %3 = vector.shape_cast %2 : vector<1x8x128xf32> to vector<8x128xf32>
    %cst = arith.constant 0.000000e+00 : f32
    %4 = vector.broadcast %cst : f32 to vector<1x128xf32>
    %c0_i32 = arith.constant 0 : i32
    %5 = arith.cmpi sgt, %arg1, %c0_i32 : i32
    %c0_5 = arith.constant 0 : index
    %c7 = arith.constant 7 : index
    %c0_6 = arith.constant 0 : index
    %6 = vector.load %arg4[%c0_5, %c7, %c0_6] : memref<1x8x128xf32, #tpu.memory_space<vmem>>, vector<1x1x128xf32>
    %7 = vector.shape_cast %6 : vector<1x1x128xf32> to vector<1x128xf32>
    %8 = arith.select %5, %7, %4 : vector<1x128xf32>
    %c0_i32_7 = arith.constant 0 : i32
    %9 = arith.cmpi sgt, %arg1, %c0_i32_7 : i32
    %c0_8 = arith.constant 0 : index
    %c7_9 = arith.constant 7 : index
    %c0_10 = arith.constant 0 : index
    %10 = vector.load %arg7[%c0_8, %c7_9, %c0_10] : memref<1x8x128xf32, #tpu.memory_space<vmem>>, vector<1x1x128xf32>
    %11 = vector.shape_cast %10 : vector<1x1x128xf32> to vector<1x128xf32>
    %12 = arith.select %9, %11, %4 : vector<1x128xf32>
    %c2_i32 = arith.constant 2 : i32
    %13 = arith.cmpi slt, %arg1, %c2_i32 : i32
    %c0_11 = arith.constant 0 : index
    %c0_12 = arith.constant 0 : index
    %c0_13 = arith.constant 0 : index
    %14 = vector.load %arg5[%c0_11, %c0_12, %c0_13] : memref<1x8x128xf32, #tpu.memory_space<vmem>>, vector<1x1x128xf32>
    %15 = vector.shape_cast %14 : vector<1x1x128xf32> to vector<1x128xf32>
    %16 = arith.select %13, %15, %4 : vector<1x128xf32>
    %c2_i32_14 = arith.constant 2 : i32
    %17 = arith.cmpi slt, %arg1, %c2_i32_14 : i32
    %c0_15 = arith.constant 0 : index
    %c0_16 = arith.constant 0 : index
    %c0_17 = arith.constant 0 : index
    %18 = vector.load %arg8[%c0_15, %c0_16, %c0_17] : memref<1x8x128xf32, #tpu.memory_space<vmem>>, vector<1x1x128xf32>
    %19 = vector.shape_cast %18 : vector<1x1x128xf32> to vector<1x128xf32>
    %20 = arith.select %17, %19, %4 : vector<1x128xf32>
    %21 = tpu.iota {dimensions = array<i32: 0>} : vector<8x1xi32>
    %c0_i32_18 = arith.constant 0 : i32
    %22 = vector.broadcast %c0_i32_18 : i32 to vector<8x1xi32>
    %23 = arith.cmpi eq, %21, %22 : vector<8x1xi32>
    %c1_i32 = arith.constant 1 : i32
    %24 = tpu.dynamic_rotate %1 by %c1_i32 dim 0 : vector<8x128xf32>, i32 -> vector<8x128xf32>
    %25 = vector.shape_cast %23 : vector<8x1xi1> to vector<8x1xi1>
    %26 = vector.broadcast %25 : vector<8x1xi1> to vector<8x128xi1>
    %27 = vector.shape_cast %8 : vector<1x128xf32> to vector<1x128xf32>
    %28 = vector.broadcast %27 : vector<1x128xf32> to vector<8x128xf32>
    %29 = arith.select %26, %28, %24 : vector<8x128xi1>, vector<8x128xf32>
    %c0_i32_19 = arith.constant 0 : i32
    %30 = vector.broadcast %c0_i32_19 : i32 to vector<8x1xi32>
    %31 = arith.cmpi eq, %21, %30 : vector<8x1xi32>
    %c1_i32_20 = arith.constant 1 : i32
    %32 = tpu.dynamic_rotate %3 by %c1_i32_20 dim 0 : vector<8x128xf32>, i32 -> vector<8x128xf32>
    %33 = vector.shape_cast %31 : vector<8x1xi1> to vector<8x1xi1>
    %34 = vector.broadcast %33 : vector<8x1xi1> to vector<8x128xi1>
    %35 = vector.shape_cast %12 : vector<1x128xf32> to vector<1x128xf32>
    %36 = vector.broadcast %35 : vector<1x128xf32> to vector<8x128xf32>
    %37 = arith.select %34, %36, %32 : vector<8x128xi1>, vector<8x128xf32>
    %c7_i32 = arith.constant 7 : i32
    %38 = vector.broadcast %c7_i32 : i32 to vector<8x1xi32>
    %39 = arith.cmpi eq, %21, %38 : vector<8x1xi32>
    %c7_i32_21 = arith.constant 7 : i32
    %40 = tpu.dynamic_rotate %1 by %c7_i32_21 dim 0 : vector<8x128xf32>, i32 -> vector<8x128xf32>
    %41 = vector.shape_cast %39 : vector<8x1xi1> to vector<8x1xi1>
    %42 = vector.broadcast %41 : vector<8x1xi1> to vector<8x128xi1>
    %43 = vector.shape_cast %16 : vector<1x128xf32> to vector<1x128xf32>
    %44 = vector.broadcast %43 : vector<1x128xf32> to vector<8x128xf32>
    %45 = arith.select %42, %44, %40 : vector<8x128xi1>, vector<8x128xf32>
    %c7_i32_22 = arith.constant 7 : i32
    %46 = vector.broadcast %c7_i32_22 : i32 to vector<8x1xi32>
    %47 = arith.cmpi eq, %21, %46 : vector<8x1xi32>
    %c7_i32_23 = arith.constant 7 : i32
    %48 = tpu.dynamic_rotate %3 by %c7_i32_23 dim 0 : vector<8x128xf32>, i32 -> vector<8x128xf32>
    %49 = vector.shape_cast %47 : vector<8x1xi1> to vector<8x1xi1>
    %50 = vector.broadcast %49 : vector<8x1xi1> to vector<8x128xi1>
    %51 = vector.shape_cast %20 : vector<1x128xf32> to vector<1x128xf32>
    %52 = vector.broadcast %51 : vector<1x128xf32> to vector<8x128xf32>
    %53 = arith.select %50, %52, %48 : vector<8x128xi1>, vector<8x128xf32>
    %54 = tpu.concatenate %1, %3, %29, %37, %45, %53 in 1 : vector<8x128xf32>, vector<8x128xf32>, vector<8x128xf32>, vector<8x128xf32>, vector<8x128xf32>, vector<8x128xf32> -> vector<8x768xf32>
    %c0_24 = arith.constant 0 : index
    %c0_25 = arith.constant 0 : index
    %55 = vector.load %arg9[%c0_24, %c0_25] : memref<768x256xf32, #tpu.memory_space<vmem>>, vector<768x256xf32>
    %cst_26 = arith.constant dense<0.000000e+00> : vector<8x256xf32>
    %56 = tpu.matmul %54, %55, %cst_26 {dimension_numbers = #tpu.dot_dimension_numbers<[1], [0], [0], [1], [0, 0, 1, 1], [], []>} : vector<8x768xf32>, vector<768x256xf32>, vector<8x256xf32> -> vector<8x256xf32>
    %c0_27 = arith.constant 0 : index
    %c0_28 = arith.constant 0 : index
    %57 = vector.load %arg10[%c0_27, %c0_28] : memref<1x256xf32, #tpu.memory_space<vmem>>, vector<1x256xf32>
    %58 = vector.broadcast %57 : vector<1x256xf32> to vector<8x256xf32>
    %59 = arith.addf %56, %58 : vector<8x256xf32>
    %cst_29 = arith.constant 0.000000e+00 : f32
    %60 = vector.broadcast %cst_29 : f32 to vector<8x256xf32>
    %61 = arith.maximumf %59, %60 : vector<8x256xf32>
    %c0_30 = arith.constant 0 : index
    %c0_31 = arith.constant 0 : index
    %62 = vector.load %arg11[%c0_30, %c0_31] : memref<256x128xf32, #tpu.memory_space<vmem>>, vector<256x128xf32>
    %cst_32 = arith.constant dense<0.000000e+00> : vector<8x128xf32>
    %63 = tpu.matmul %61, %62, %cst_32 {dimension_numbers = #tpu.dot_dimension_numbers<[1], [0], [0], [1], [0, 0, 1, 1], [], []>} : vector<8x256xf32>, vector<256x128xf32>, vector<8x128xf32> -> vector<8x128xf32>
    %c0_33 = arith.constant 0 : index
    %c0_34 = arith.constant 0 : index
    %64 = vector.load %arg12[%c0_33, %c0_34] : memref<8x128xf32, #tpu.memory_space<vmem>>, vector<1x128xf32>
    %c1 = arith.constant 1 : index
    %c0_35 = arith.constant 0 : index
    %65 = vector.load %arg12[%c1, %c0_35] : memref<8x128xf32, #tpu.memory_space<vmem>>, vector<1x128xf32>
    %c2 = arith.constant 2 : index
    %c0_36 = arith.constant 0 : index
    %66 = vector.load %arg12[%c2, %c0_36] : memref<8x128xf32, #tpu.memory_space<vmem>>, vector<1x128xf32>
    %c3 = arith.constant 3 : index
    %c0_37 = arith.constant 0 : index
    %67 = vector.load %arg12[%c3, %c0_37] : memref<8x128xf32, #tpu.memory_space<vmem>>, vector<1x128xf32>
    %c4 = arith.constant 4 : index
    %c0_38 = arith.constant 0 : index
    %68 = vector.load %arg12[%c4, %c0_38] : memref<8x128xf32, #tpu.memory_space<vmem>>, vector<1x128xf32>
    %69 = vector.broadcast %64 : vector<1x128xf32> to vector<8x128xf32>
    %70 = arith.addf %63, %69 : vector<8x128xf32>
    %71 = arith.addf %70, %1 : vector<8x128xf32>
    %cst_39 = arith.constant dense<0.000000e+00> : vector<8xf32>
    %72 = vector.multi_reduction <add>, %71, %cst_39 [1] : vector<8x128xf32> to vector<8xf32>
    %73 = vector.shape_cast %72 : vector<8xf32> to vector<8x1xf32>
    %cst_40 = arith.constant 1.280000e+02 : f32
    %74 = vector.broadcast %cst_40 : f32 to vector<8x1xf32>
    %75 = arith.divf %73, %74 : vector<8x1xf32>
    %76 = vector.broadcast %75 : vector<8x1xf32> to vector<8x128xf32>
    %77 = arith.subf %71, %76 : vector<8x128xf32>
    %78 = arith.mulf %77, %77 : vector<8x128xf32>
    %cst_41 = arith.constant dense<0.000000e+00> : vector<8xf32>
    %79 = vector.multi_reduction <add>, %78, %cst_41 [1] : vector<8x128xf32> to vector<8xf32>
    %80 = vector.shape_cast %79 : vector<8xf32> to vector<8x1xf32>
    %cst_42 = arith.constant 1.280000e+02 : f32
    %81 = vector.broadcast %cst_42 : f32 to vector<8x1xf32>
    %82 = arith.divf %80, %81 : vector<8x1xf32>
    %cst_43 = arith.constant 9.99999996E-13 : f32
    %83 = vector.broadcast %cst_43 : f32 to vector<8x1xf32>
    %84 = arith.addf %82, %83 : vector<8x1xf32>
    %85 = math.rsqrt %84 : vector<8x1xf32>
    %86 = vector.broadcast %85 : vector<8x1xf32> to vector<8x128xf32>
    %87 = arith.mulf %77, %86 : vector<8x128xf32>
    %88 = vector.broadcast %65 : vector<1x128xf32> to vector<8x128xf32>
    %89 = arith.mulf %88, %87 : vector<8x128xf32>
    %90 = vector.broadcast %66 : vector<1x128xf32> to vector<8x128xf32>
    %91 = arith.addf %89, %90 : vector<8x128xf32>
    %c0_44 = arith.constant 0 : index
    %c0_45 = arith.constant 0 : index
    %c0_46 = arith.constant 0 : index
    %92 = vector.load %arg13[%c0_44, %c0_45, %c0_46] : memref<1x8x128xf32, #tpu.memory_space<vmem>>, vector<1x8x128xf32>
    %93 = vector.shape_cast %92 : vector<1x8x128xf32> to vector<8x128xf32>
    %94 = vector.shape_cast %91 : vector<8x128xf32> to vector<1x8x128xf32>
    tpu.vector_store %arg13[%c0_44, %c0_45, %c0_46], %94 {strides = array<i32>} : memref<1x8x128xf32, #tpu.memory_space<vmem>>, vector<1x8x128xf32>,
    %95 = arith.addf %70, %3 : vector<8x128xf32>
    %cst_47 = arith.constant dense<0.000000e+00> : vector<8xf32>
    %96 = vector.multi_reduction <add>, %95, %cst_47 [1] : vector<8x128xf32> to vector<8xf32>
    %97 = vector.shape_cast %96 : vector<8xf32> to vector<8x1xf32>
    %cst_48 = arith.constant 1.280000e+02 : f32
    %98 = vector.broadcast %cst_48 : f32 to vector<8x1xf32>
    %99 = arith.divf %97, %98 : vector<8x1xf32>
    %100 = vector.broadcast %99 : vector<8x1xf32> to vector<8x128xf32>
    %101 = arith.subf %95, %100 : vector<8x128xf32>
    %102 = arith.mulf %101, %101 : vector<8x128xf32>
    %cst_49 = arith.constant dense<0.000000e+00> : vector<8xf32>
    %103 = vector.multi_reduction <add>, %102, %cst_49 [1] : vector<8x128xf32> to vector<8xf32>
    %104 = vector.shape_cast %103 : vector<8xf32> to vector<8x1xf32>
    %cst_50 = arith.constant 1.280000e+02 : f32
    %105 = vector.broadcast %cst_50 : f32 to vector<8x1xf32>
    %106 = arith.divf %104, %105 : vector<8x1xf32>
    %cst_51 = arith.constant 9.99999996E-13 : f32
    %107 = vector.broadcast %cst_51 : f32 to vector<8x1xf32>
    %108 = arith.addf %106, %107 : vector<8x1xf32>
    %109 = math.rsqrt %108 : vector<8x1xf32>
    %110 = vector.broadcast %109 : vector<8x1xf32> to vector<8x128xf32>
    %111 = arith.mulf %101, %110 : vector<8x128xf32>
    %112 = vector.broadcast %67 : vector<1x128xf32> to vector<8x128xf32>
    %113 = arith.mulf %112, %111 : vector<8x128xf32>
    %114 = vector.broadcast %68 : vector<1x128xf32> to vector<8x128xf32>
    %115 = arith.addf %113, %114 : vector<8x128xf32>
    %c0_52 = arith.constant 0 : index
    %c0_53 = arith.constant 0 : index
    %c0_54 = arith.constant 0 : index
    %116 = vector.load %arg14[%c0_52, %c0_53, %c0_54] : memref<1x8x128xf32, #tpu.memory_space<vmem>>, vector<1x8x128xf32>
    %117 = vector.shape_cast %116 : vector<1x8x128xf32> to vector<8x128xf32>
    %118 = vector.shape_cast %115 : vector<8x128xf32> to vector<1x8x128xf32>
    tpu.vector_store %arg14[%c0_52, %c0_53, %c0_54], %118 {strides = array<i32>} : memref<1x8x128xf32, #tpu.memory_space<vmem>>, vector<1x8x128xf32>,
    return
  }
  func.func @transform_0(%arg0: i32, %arg1: i32, %arg2: i32) -> (i32, i32, i32) {
    %c0_i32 = arith.constant 0 : i32
    %c0_i32_0 = arith.constant 0 : i32
    return %arg0, %arg1, %c0_i32 : i32, i32, i32
  }
  func.func @transform_1(%arg0: i32, %arg1: i32, %arg2: i32) -> (i32, i32, i32) {
    %c1_i32 = arith.constant 1 : i32
    %0 = arith.muli %arg1, %c1_i32 : i32
    %c1_i32_0 = arith.constant 1 : i32
    %1 = arith.subi %0, %c1_i32_0 : i32
    %c0_i32 = arith.constant 0 : i32
    %2 = arith.maxsi %1, %c0_i32 : i32
    %c0_i32_1 = arith.constant 0 : i32
    %c0_i32_2 = arith.constant 0 : i32
    return %arg0, %2, %c0_i32_1 : i32, i32, i32
  }
  func.func @transform_2(%arg0: i32, %arg1: i32, %arg2: i32) -> (i32, i32, i32) {
    %c1_i32 = arith.constant 1 : i32
    %0 = arith.addi %arg1, %c1_i32 : i32
    %c1_i32_0 = arith.constant 1 : i32
    %1 = arith.muli %0, %c1_i32_0 : i32
    %c2_i32 = arith.constant 2 : i32
    %2 = arith.minsi %1, %c2_i32 : i32
    %c0_i32 = arith.constant 0 : i32
    %c0_i32_1 = arith.constant 0 : i32
    return %arg0, %2, %c0_i32 : i32, i32, i32
  }
  func.func @transform_3(%arg0: i32, %arg1: i32, %arg2: i32) -> (i32, i32, i32) {
    %c0_i32 = arith.constant 0 : i32
    %c0_i32_0 = arith.constant 0 : i32
    return %arg0, %arg1, %c0_i32 : i32, i32, i32
  }
  func.func @transform_4(%arg0: i32, %arg1: i32, %arg2: i32) -> (i32, i32, i32) {
    %c1_i32 = arith.constant 1 : i32
    %0 = arith.muli %arg1, %c1_i32 : i32
    %c1_i32_0 = arith.constant 1 : i32
    %1 = arith.subi %0, %c1_i32_0 : i32
    %c0_i32 = arith.constant 0 : i32
    %2 = arith.maxsi %1, %c0_i32 : i32
    %c0_i32_1 = arith.constant 0 : i32
    %c0_i32_2 = arith.constant 0 : i32
    return %arg0, %2, %c0_i32_1 : i32, i32, i32
  }
  func.func @transform_5(%arg0: i32, %arg1: i32, %arg2: i32) -> (i32, i32, i32) {
    %c1_i32 = arith.constant 1 : i32
    %0 = arith.addi %arg1, %c1_i32 : i32
    %c1_i32_0 = arith.constant 1 : i32
    %1 = arith.muli %0, %c1_i32_0 : i32
    %c2_i32 = arith.constant 2 : i32
    %2 = arith.minsi %1, %c2_i32 : i32
    %c0_i32 = arith.constant 0 : i32
    %c0_i32_1 = arith.constant 0 : i32
    return %arg0, %2, %c0_i32 : i32, i32, i32
  }
  func.func @transform_6(%arg0: i32, %arg1: i32, %arg2: i32) -> (i32, i32) {
    %c0_i32 = arith.constant 0 : i32
    %c0_i32_0 = arith.constant 0 : i32
    return %c0_i32, %arg2 : i32, i32
  }
  func.func @transform_7(%arg0: i32, %arg1: i32, %arg2: i32) -> (i32, i32) {
    %c0_i32 = arith.constant 0 : i32
    %c0_i32_0 = arith.constant 0 : i32
    return %c0_i32, %arg2 : i32, i32
  }
  func.func @transform_8(%arg0: i32, %arg1: i32, %arg2: i32) -> (i32, i32) {
    %c0_i32 = arith.constant 0 : i32
    %c0_i32_0 = arith.constant 0 : i32
    return %arg2, %c0_i32 : i32, i32
  }
  func.func @transform_9(%arg0: i32, %arg1: i32, %arg2: i32) -> (i32, i32) {
    %c0_i32 = arith.constant 0 : i32
    %c0_i32_0 = arith.constant 0 : i32
    %c0_i32_1 = arith.constant 0 : i32
    return %c0_i32, %c0_i32_0 : i32, i32
  }
  func.func @transform_10(%arg0: i32, %arg1: i32, %arg2: i32) -> (i32, i32, i32) {
    %c0_i32 = arith.constant 0 : i32
    %c0_i32_0 = arith.constant 0 : i32
    return %arg0, %arg1, %c0_i32 : i32, i32, i32
  }
  func.func @transform_11(%arg0: i32, %arg1: i32, %arg2: i32) -> (i32, i32, i32) {
    %c0_i32 = arith.constant 0 : i32
    %c0_i32_0 = arith.constant 0 : i32
    return %arg0, %arg1, %c0_i32 : i32, i32, i32
  }
}

module attributes {stable_mosaic.version = 11 : i64} {
  func.func @_intermediate_kernel(%arg0: i32, %arg1: i32, %arg2: i32, %arg3: memref<1x8x128xf32, #tpu.memory_space<vmem>>, %arg4: memref<1x8x128xf32, #tpu.memory_space<vmem>>, %arg5: memref<1x8x128xf32, #tpu.memory_space<vmem>>, %arg6: memref<1x8x128xf32, #tpu.memory_space<vmem>>, %arg7: memref<1x8x128xf32, #tpu.memory_space<vmem>>, %arg8: memref<1x8x128xf32, #tpu.memory_space<vmem>>, %arg9: memref<768x256xf32, #tpu.memory_space<vmem>>, %arg10: memref<1x256xf32, #tpu.memory_space<vmem>>, %arg11: memref<256x128xf32, #tpu.memory_space<vmem>>, %arg12: memref<8x128xf32, #tpu.memory_space<vmem>>, %arg13: memref<1x8x128xf32, #tpu.memory_space<vmem>>, %arg14: memref<1x8x128xf32, #tpu.memory_space<vmem>>, %arg15: memref<8x128xf32, #tpu.memory_space<vmem>>) attributes {dimension_semantics = [#tpu.dimension_semantics<parallel>, #tpu.dimension_semantics<parallel>, #tpu.dimension_semantics<arbitrary>], iteration_bounds = array<i64: 2, 3, 1>, scalar_prefetch = 0 : i64, scratch_operands = 1 : i64, tpu.core_type = #tpu.core_type<tc>, window_params = [{transform_indices = @transform_0, window_bounds = array<i64: 1, 8, 128>}, {transform_indices = @transform_1, window_bounds = array<i64: 1, 8, 128>}, {transform_indices = @transform_2, window_bounds = array<i64: 1, 8, 128>}, {transform_indices = @transform_3, window_bounds = array<i64: 1, 8, 128>}, {transform_indices = @transform_4, window_bounds = array<i64: 1, 8, 128>}, {transform_indices = @transform_5, window_bounds = array<i64: 1, 8, 128>}, {pipeline_mode = #tpu.pipeline_mode<synchronous>, transform_indices = @transform_6, window_bounds = array<i64: 768, 256>}, {pipeline_mode = #tpu.pipeline_mode<synchronous>, transform_indices = @transform_7, window_bounds = array<i64: 1, 256>}, {pipeline_mode = #tpu.pipeline_mode<synchronous>, transform_indices = @transform_8, window_bounds = array<i64: 256, 128>}, {pipeline_mode = #tpu.pipeline_mode<synchronous>, transform_indices = @transform_9, window_bounds = array<i64: 8, 128>}, {transform_indices = @transform_10, window_bounds = array<i64: 1, 8, 128>}, {transform_indices = @transform_11, window_bounds = array<i64: 1, 8, 128>}]} {
    %c0 = arith.constant 0 : index
    %c0_0 = arith.constant 0 : index
    %c0_1 = arith.constant 0 : index
    %0 = vector.load %arg3[%c0, %c0_0, %c0_1] : memref<1x8x128xf32, #tpu.memory_space<vmem>>, vector<1x8x128xf32>
    %1 = vector.shape_cast %0 : vector<1x8x128xf32> to vector<8x128xf32>
    %c0_2 = arith.constant 0 : index
    %c0_3 = arith.constant 0 : index
    %c0_4 = arith.constant 0 : index
    %2 = vector.load %arg6[%c0_2, %c0_3, %c0_4] : memref<1x8x128xf32, #tpu.memory_space<vmem>>, vector<1x8x128xf32>
    %3 = vector.shape_cast %2 : vector<1x8x128xf32> to vector<8x128xf32>
    %cst = arith.constant 0.000000e+00 : f32
    %4 = vector.broadcast %cst : f32 to vector<1x128xf32>
    %c0_i32 = arith.constant 0 : i32
    %5 = arith.cmpi sgt, %arg1, %c0_i32 : i32
    %c0_5 = arith.constant 0 : index
    %c7 = arith.constant 7 : index
    %c0_6 = arith.constant 0 : index
    %6 = vector.load %arg4[%c0_5, %c7, %c0_6] : memref<1x8x128xf32, #tpu.memory_space<vmem>>, vector<1x1x128xf32>
    %7 = vector.shape_cast %6 : vector<1x1x128xf32> to vector<1x128xf32>
    %8 = arith.select %5, %7, %4 : vector<1x128xf32>
    %c0_i32_7 = arith.constant 0 : i32
    %9 = arith.cmpi sgt, %arg1, %c0_i32_7 : i32
    %c0_8 = arith.constant 0 : index
    %c7_9 = arith.constant 7 : index
    %c0_10 = arith.constant 0 : index
    %10 = vector.load %arg7[%c0_8, %c7_9, %c0_10] : memref<1x8x128xf32, #tpu.memory_space<vmem>>, vector<1x1x128xf32>
    %11 = vector.shape_cast %10 : vector<1x1x128xf32> to vector<1x128xf32>
    %12 = arith.select %9, %11, %4 : vector<1x128xf32>
    %c2_i32 = arith.constant 2 : i32
    %13 = arith.cmpi slt, %arg1, %c2_i32 : i32
    %c0_11 = arith.constant 0 : index
    %c0_12 = arith.constant 0 : index
    %c0_13 = arith.constant 0 : index
    %14 = vector.load %arg5[%c0_11, %c0_12, %c0_13] : memref<1x8x128xf32, #tpu.memory_space<vmem>>, vector<1x1x128xf32>
    %15 = vector.shape_cast %14 : vector<1x1x128xf32> to vector<1x128xf32>
    %16 = arith.select %13, %15, %4 : vector<1x128xf32>
    %c2_i32_14 = arith.constant 2 : i32
    %17 = arith.cmpi slt, %arg1, %c2_i32_14 : i32
    %c0_15 = arith.constant 0 : index
    %c0_16 = arith.constant 0 : index
    %c0_17 = arith.constant 0 : index
    %18 = vector.load %arg8[%c0_15, %c0_16, %c0_17] : memref<1x8x128xf32, #tpu.memory_space<vmem>>, vector<1x1x128xf32>
    %19 = vector.shape_cast %18 : vector<1x1x128xf32> to vector<1x128xf32>
    %20 = arith.select %17, %19, %4 : vector<1x128xf32>
    %21 = tpu.iota {dimensions = array<i32: 0>} : vector<8x1xi32>
    %22 = tpu.iota {dimensions = array<i32: 0>} : vector<8x8xi32>
    %23 = tpu.iota {dimensions = array<i32: 1>} : vector<8x8xi32>
    %c1_i32 = arith.constant 1 : i32
    %24 = vector.broadcast %c1_i32 : i32 to vector<8x8xi32>
    %25 = arith.addi %23, %24 : vector<8x8xi32>
    %26 = arith.cmpi eq, %22, %25 : vector<8x8xi32>
    %27 = arith.extui %26 : vector<8x8xi1> to vector<8x8xi32>
    %28 = arith.sitofp %27 : vector<8x8xi32> to vector<8x8xf32>
    %c1_i32_18 = arith.constant 1 : i32
    %29 = vector.broadcast %c1_i32_18 : i32 to vector<8x8xi32>
    %30 = arith.subi %23, %29 : vector<8x8xi32>
    %31 = arith.cmpi eq, %22, %30 : vector<8x8xi32>
    %32 = arith.extui %31 : vector<8x8xi1> to vector<8x8xi32>
    %33 = arith.sitofp %32 : vector<8x8xi32> to vector<8x8xf32>
    %c0_i32_19 = arith.constant 0 : i32
    %34 = vector.broadcast %c0_i32_19 : i32 to vector<8x1xi32>
    %35 = arith.cmpi eq, %21, %34 : vector<8x1xi32>
    %cst_20 = arith.constant dense<0.000000e+00> : vector<8x128xf32>
    %36 = tpu.matmul %28, %1, %cst_20 {dimension_numbers = #tpu.dot_dimension_numbers<[1], [0], [0], [1], [0, 0, 1, 1], [], []>} : vector<8x8xf32>, vector<8x128xf32>, vector<8x128xf32> -> vector<8x128xf32>
    %37 = vector.shape_cast %35 : vector<8x1xi1> to vector<8x1xi1>
    %38 = vector.broadcast %37 : vector<8x1xi1> to vector<8x128xi1>
    %39 = vector.shape_cast %8 : vector<1x128xf32> to vector<1x128xf32>
    %40 = vector.broadcast %39 : vector<1x128xf32> to vector<8x128xf32>
    %41 = arith.select %38, %40, %36 : vector<8x128xi1>, vector<8x128xf32>
    %c0_i32_21 = arith.constant 0 : i32
    %42 = vector.broadcast %c0_i32_21 : i32 to vector<8x1xi32>
    %43 = arith.cmpi eq, %21, %42 : vector<8x1xi32>
    %cst_22 = arith.constant dense<0.000000e+00> : vector<8x128xf32>
    %44 = tpu.matmul %28, %3, %cst_22 {dimension_numbers = #tpu.dot_dimension_numbers<[1], [0], [0], [1], [0, 0, 1, 1], [], []>} : vector<8x8xf32>, vector<8x128xf32>, vector<8x128xf32> -> vector<8x128xf32>
    %45 = vector.shape_cast %43 : vector<8x1xi1> to vector<8x1xi1>
    %46 = vector.broadcast %45 : vector<8x1xi1> to vector<8x128xi1>
    %47 = vector.shape_cast %12 : vector<1x128xf32> to vector<1x128xf32>
    %48 = vector.broadcast %47 : vector<1x128xf32> to vector<8x128xf32>
    %49 = arith.select %46, %48, %44 : vector<8x128xi1>, vector<8x128xf32>
    %c7_i32 = arith.constant 7 : i32
    %50 = vector.broadcast %c7_i32 : i32 to vector<8x1xi32>
    %51 = arith.cmpi eq, %21, %50 : vector<8x1xi32>
    %cst_23 = arith.constant dense<0.000000e+00> : vector<8x128xf32>
    %52 = tpu.matmul %33, %1, %cst_23 {dimension_numbers = #tpu.dot_dimension_numbers<[1], [0], [0], [1], [0, 0, 1, 1], [], []>} : vector<8x8xf32>, vector<8x128xf32>, vector<8x128xf32> -> vector<8x128xf32>
    %53 = vector.shape_cast %51 : vector<8x1xi1> to vector<8x1xi1>
    %54 = vector.broadcast %53 : vector<8x1xi1> to vector<8x128xi1>
    %55 = vector.shape_cast %16 : vector<1x128xf32> to vector<1x128xf32>
    %56 = vector.broadcast %55 : vector<1x128xf32> to vector<8x128xf32>
    %57 = arith.select %54, %56, %52 : vector<8x128xi1>, vector<8x128xf32>
    %c7_i32_24 = arith.constant 7 : i32
    %58 = vector.broadcast %c7_i32_24 : i32 to vector<8x1xi32>
    %59 = arith.cmpi eq, %21, %58 : vector<8x1xi32>
    %cst_25 = arith.constant dense<0.000000e+00> : vector<8x128xf32>
    %60 = tpu.matmul %33, %3, %cst_25 {dimension_numbers = #tpu.dot_dimension_numbers<[1], [0], [0], [1], [0, 0, 1, 1], [], []>} : vector<8x8xf32>, vector<8x128xf32>, vector<8x128xf32> -> vector<8x128xf32>
    %61 = vector.shape_cast %59 : vector<8x1xi1> to vector<8x1xi1>
    %62 = vector.broadcast %61 : vector<8x1xi1> to vector<8x128xi1>
    %63 = vector.shape_cast %20 : vector<1x128xf32> to vector<1x128xf32>
    %64 = vector.broadcast %63 : vector<1x128xf32> to vector<8x128xf32>
    %65 = arith.select %62, %64, %60 : vector<8x128xi1>, vector<8x128xf32>
    %66 = tpu.concatenate %1, %3, %41, %49, %57, %65 in 1 : vector<8x128xf32>, vector<8x128xf32>, vector<8x128xf32>, vector<8x128xf32>, vector<8x128xf32>, vector<8x128xf32> -> vector<8x768xf32>
    %c0_26 = arith.constant 0 : index
    %c0_27 = arith.constant 0 : index
    %67 = vector.load %arg9[%c0_26, %c0_27] : memref<768x256xf32, #tpu.memory_space<vmem>>, vector<768x256xf32>
    %cst_28 = arith.constant dense<0.000000e+00> : vector<8x256xf32>
    %68 = tpu.matmul %66, %67, %cst_28 {dimension_numbers = #tpu.dot_dimension_numbers<[1], [0], [0], [1], [0, 0, 1, 1], [], []>} : vector<8x768xf32>, vector<768x256xf32>, vector<8x256xf32> -> vector<8x256xf32>
    %c0_29 = arith.constant 0 : index
    %c0_30 = arith.constant 0 : index
    %69 = vector.load %arg10[%c0_29, %c0_30] : memref<1x256xf32, #tpu.memory_space<vmem>>, vector<1x256xf32>
    %70 = vector.broadcast %69 : vector<1x256xf32> to vector<8x256xf32>
    %71 = arith.addf %68, %70 : vector<8x256xf32>
    %cst_31 = arith.constant 0.000000e+00 : f32
    %72 = vector.broadcast %cst_31 : f32 to vector<8x256xf32>
    %73 = arith.maximumf %71, %72 : vector<8x256xf32>
    %c0_32 = arith.constant 0 : index
    %c0_33 = arith.constant 0 : index
    %74 = vector.load %arg11[%c0_32, %c0_33] : memref<256x128xf32, #tpu.memory_space<vmem>>, vector<256x128xf32>
    %cst_34 = arith.constant dense<0.000000e+00> : vector<8x128xf32>
    %75 = tpu.matmul %73, %74, %cst_34 {dimension_numbers = #tpu.dot_dimension_numbers<[1], [0], [0], [1], [0, 0, 1, 1], [], []>} : vector<8x256xf32>, vector<256x128xf32>, vector<8x128xf32> -> vector<8x128xf32>
    %c0_35 = arith.constant 0 : index
    %c0_36 = arith.constant 0 : index
    %76 = vector.load %arg12[%c0_35, %c0_36] : memref<8x128xf32, #tpu.memory_space<vmem>>, vector<1x128xf32>
    %c1 = arith.constant 1 : index
    %c0_37 = arith.constant 0 : index
    %77 = vector.load %arg12[%c1, %c0_37] : memref<8x128xf32, #tpu.memory_space<vmem>>, vector<1x128xf32>
    %c2 = arith.constant 2 : index
    %c0_38 = arith.constant 0 : index
    %78 = vector.load %arg12[%c2, %c0_38] : memref<8x128xf32, #tpu.memory_space<vmem>>, vector<1x128xf32>
    %c3 = arith.constant 3 : index
    %c0_39 = arith.constant 0 : index
    %79 = vector.load %arg12[%c3, %c0_39] : memref<8x128xf32, #tpu.memory_space<vmem>>, vector<1x128xf32>
    %c4 = arith.constant 4 : index
    %c0_40 = arith.constant 0 : index
    %80 = vector.load %arg12[%c4, %c0_40] : memref<8x128xf32, #tpu.memory_space<vmem>>, vector<1x128xf32>
    %81 = vector.broadcast %76 : vector<1x128xf32> to vector<8x128xf32>
    %82 = arith.addf %75, %81 : vector<8x128xf32>
    %83 = arith.addf %82, %1 : vector<8x128xf32>
    %cst_41 = arith.constant dense<0.000000e+00> : vector<8xf32>
    %84 = vector.multi_reduction <add>, %83, %cst_41 [1] : vector<8x128xf32> to vector<8xf32>
    %85 = vector.shape_cast %84 : vector<8xf32> to vector<8x1xf32>
    %cst_42 = arith.constant 1.280000e+02 : f32
    %86 = vector.broadcast %cst_42 : f32 to vector<8x1xf32>
    %87 = arith.divf %85, %86 : vector<8x1xf32>
    %88 = vector.broadcast %87 : vector<8x1xf32> to vector<8x128xf32>
    %89 = arith.subf %83, %88 : vector<8x128xf32>
    %90 = arith.mulf %89, %89 : vector<8x128xf32>
    %cst_43 = arith.constant dense<0.000000e+00> : vector<8xf32>
    %91 = vector.multi_reduction <add>, %90, %cst_43 [1] : vector<8x128xf32> to vector<8xf32>
    %92 = vector.shape_cast %91 : vector<8xf32> to vector<8x1xf32>
    %cst_44 = arith.constant 1.280000e+02 : f32
    %93 = vector.broadcast %cst_44 : f32 to vector<8x1xf32>
    %94 = arith.divf %92, %93 : vector<8x1xf32>
    %cst_45 = arith.constant 9.99999996E-13 : f32
    %95 = vector.broadcast %cst_45 : f32 to vector<8x1xf32>
    %96 = arith.addf %94, %95 : vector<8x1xf32>
    %97 = math.rsqrt %96 : vector<8x1xf32>
    %98 = vector.broadcast %97 : vector<8x1xf32> to vector<8x128xf32>
    %99 = arith.mulf %89, %98 : vector<8x128xf32>
    %100 = vector.broadcast %77 : vector<1x128xf32> to vector<8x128xf32>
    %101 = arith.mulf %100, %99 : vector<8x128xf32>
    %102 = vector.broadcast %78 : vector<1x128xf32> to vector<8x128xf32>
    %103 = arith.addf %101, %102 : vector<8x128xf32>
    %c0_46 = arith.constant 0 : index
    %c0_47 = arith.constant 0 : index
    %c0_48 = arith.constant 0 : index
    %104 = vector.load %arg13[%c0_46, %c0_47, %c0_48] : memref<1x8x128xf32, #tpu.memory_space<vmem>>, vector<1x8x128xf32>
    %105 = vector.shape_cast %104 : vector<1x8x128xf32> to vector<8x128xf32>
    %106 = vector.shape_cast %103 : vector<8x128xf32> to vector<1x8x128xf32>
    tpu.vector_store %arg13[%c0_46, %c0_47, %c0_48], %106 {strides = array<i32>} : memref<1x8x128xf32, #tpu.memory_space<vmem>>, vector<1x8x128xf32>,
    %107 = arith.addf %82, %3 : vector<8x128xf32>
    %cst_49 = arith.constant dense<0.000000e+00> : vector<8xf32>
    %108 = vector.multi_reduction <add>, %107, %cst_49 [1] : vector<8x128xf32> to vector<8xf32>
    %109 = vector.shape_cast %108 : vector<8xf32> to vector<8x1xf32>
    %cst_50 = arith.constant 1.280000e+02 : f32
    %110 = vector.broadcast %cst_50 : f32 to vector<8x1xf32>
    %111 = arith.divf %109, %110 : vector<8x1xf32>
    %112 = vector.broadcast %111 : vector<8x1xf32> to vector<8x128xf32>
    %113 = arith.subf %107, %112 : vector<8x128xf32>
    %114 = arith.mulf %113, %113 : vector<8x128xf32>
    %cst_51 = arith.constant dense<0.000000e+00> : vector<8xf32>
    %115 = vector.multi_reduction <add>, %114, %cst_51 [1] : vector<8x128xf32> to vector<8xf32>
    %116 = vector.shape_cast %115 : vector<8xf32> to vector<8x1xf32>
    %cst_52 = arith.constant 1.280000e+02 : f32
    %117 = vector.broadcast %cst_52 : f32 to vector<8x1xf32>
    %118 = arith.divf %116, %117 : vector<8x1xf32>
    %cst_53 = arith.constant 9.99999996E-13 : f32
    %119 = vector.broadcast %cst_53 : f32 to vector<8x1xf32>
    %120 = arith.addf %118, %119 : vector<8x1xf32>
    %121 = math.rsqrt %120 : vector<8x1xf32>
    %122 = vector.broadcast %121 : vector<8x1xf32> to vector<8x128xf32>
    %123 = arith.mulf %113, %122 : vector<8x128xf32>
    %124 = vector.broadcast %79 : vector<1x128xf32> to vector<8x128xf32>
    %125 = arith.mulf %124, %123 : vector<8x128xf32>
    %126 = vector.broadcast %80 : vector<1x128xf32> to vector<8x128xf32>
    %127 = arith.addf %125, %126 : vector<8x128xf32>
    %c0_54 = arith.constant 0 : index
    %c0_55 = arith.constant 0 : index
    %c0_56 = arith.constant 0 : index
    %128 = vector.load %arg14[%c0_54, %c0_55, %c0_56] : memref<1x8x128xf32, #tpu.memory_space<vmem>>, vector<1x8x128xf32>
    %129 = vector.shape_cast %128 : vector<1x8x128xf32> to vector<8x128xf32>
    %130 = vector.shape_cast %127 : vector<8x128xf32> to vector<1x8x128xf32>
    tpu.vector_store %arg14[%c0_54, %c0_55, %c0_56], %130 {strides = array<i32>} : memref<1x8x128xf32, #tpu.memory_space<vmem>>, vector<1x8x128xf32>,
    return
  }
  func.func @transform_0(%arg0: i32, %arg1: i32, %arg2: i32) -> (i32, i32, i32) {
    %c0_i32 = arith.constant 0 : i32
    %c0_i32_0 = arith.constant 0 : i32
    return %arg0, %arg1, %c0_i32 : i32, i32, i32
  }
  func.func @transform_1(%arg0: i32, %arg1: i32, %arg2: i32) -> (i32, i32, i32) {
    %c1_i32 = arith.constant 1 : i32
    %0 = arith.muli %arg1, %c1_i32 : i32
    %c1_i32_0 = arith.constant 1 : i32
    %1 = arith.subi %0, %c1_i32_0 : i32
    %c0_i32 = arith.constant 0 : i32
    %2 = arith.maxsi %1, %c0_i32 : i32
    %c0_i32_1 = arith.constant 0 : i32
    %c0_i32_2 = arith.constant 0 : i32
    return %arg0, %2, %c0_i32_1 : i32, i32, i32
  }
  func.func @transform_2(%arg0: i32, %arg1: i32, %arg2: i32) -> (i32, i32, i32) {
    %c1_i32 = arith.constant 1 : i32
    %0 = arith.addi %arg1, %c1_i32 : i32
    %c1_i32_0 = arith.constant 1 : i32
    %1 = arith.muli %0, %c1_i32_0 : i32
    %c2_i32 = arith.constant 2 : i32
    %2 = arith.minsi %1, %c2_i32 : i32
    %c0_i32 = arith.constant 0 : i32
    %c0_i32_1 = arith.constant 0 : i32
    return %arg0, %2, %c0_i32 : i32, i32, i32
  }
  func.func @transform_3(%arg0: i32, %arg1: i32, %arg2: i32) -> (i32, i32, i32) {
    %c0_i32 = arith.constant 0 : i32
    %c0_i32_0 = arith.constant 0 : i32
    return %arg0, %arg1, %c0_i32 : i32, i32, i32
  }
  func.func @transform_4(%arg0: i32, %arg1: i32, %arg2: i32) -> (i32, i32, i32) {
    %c1_i32 = arith.constant 1 : i32
    %0 = arith.muli %arg1, %c1_i32 : i32
    %c1_i32_0 = arith.constant 1 : i32
    %1 = arith.subi %0, %c1_i32_0 : i32
    %c0_i32 = arith.constant 0 : i32
    %2 = arith.maxsi %1, %c0_i32 : i32
    %c0_i32_1 = arith.constant 0 : i32
    %c0_i32_2 = arith.constant 0 : i32
    return %arg0, %2, %c0_i32_1 : i32, i32, i32
  }
  func.func @transform_5(%arg0: i32, %arg1: i32, %arg2: i32) -> (i32, i32, i32) {
    %c1_i32 = arith.constant 1 : i32
    %0 = arith.addi %arg1, %c1_i32 : i32
    %c1_i32_0 = arith.constant 1 : i32
    %1 = arith.muli %0, %c1_i32_0 : i32
    %c2_i32 = arith.constant 2 : i32
    %2 = arith.minsi %1, %c2_i32 : i32
    %c0_i32 = arith.constant 0 : i32
    %c0_i32_1 = arith.constant 0 : i32
    return %arg0, %2, %c0_i32 : i32, i32, i32
  }
  func.func @transform_6(%arg0: i32, %arg1: i32, %arg2: i32) -> (i32, i32) {
    %c0_i32 = arith.constant 0 : i32
    %c0_i32_0 = arith.constant 0 : i32
    return %c0_i32, %arg2 : i32, i32
  }
  func.func @transform_7(%arg0: i32, %arg1: i32, %arg2: i32) -> (i32, i32) {
    %c0_i32 = arith.constant 0 : i32
    %c0_i32_0 = arith.constant 0 : i32
    return %c0_i32, %arg2 : i32, i32
  }
  func.func @transform_8(%arg0: i32, %arg1: i32, %arg2: i32) -> (i32, i32) {
    %c0_i32 = arith.constant 0 : i32
    %c0_i32_0 = arith.constant 0 : i32
    return %arg2, %c0_i32 : i32, i32
  }
  func.func @transform_9(%arg0: i32, %arg1: i32, %arg2: i32) -> (i32, i32) {
    %c0_i32 = arith.constant 0 : i32
    %c0_i32_0 = arith.constant 0 : i32
    %c0_i32_1 = arith.constant 0 : i32
    return %c0_i32, %c0_i32_0 : i32, i32
  }
  func.func @transform_10(%arg0: i32, %arg1: i32, %arg2: i32) -> (i32, i32, i32) {
    %c0_i32 = arith.constant 0 : i32
    %c0_i32_0 = arith.constant 0 : i32
    return %arg0, %arg1, %c0_i32 : i32, i32, i32
  }
  func.func @transform_11(%arg0: i32, %arg1: i32, %arg2: i32) -> (i32, i32, i32) {
    %c0_i32 = arith.constant 0 : i32
    %c0_i32_0 = arith.constant 0 : i32
    return %arg0, %arg1, %c0_i32 : i32, i32, i32
  }
}

module attributes {stable_mosaic.version = 11 : i64} {
  func.func @_intermediate_kernel(%arg0: i32, %arg1: i32, %arg2: i32, %arg3: memref<1x8x128xf32, #tpu.memory_space<vmem>>, %arg4: memref<1x8x128xf32, #tpu.memory_space<vmem>>, %arg5: memref<1x8x128xf32, #tpu.memory_space<vmem>>, %arg6: memref<1x8x128xf32, #tpu.memory_space<vmem>>, %arg7: memref<1x8x128xf32, #tpu.memory_space<vmem>>, %arg8: memref<1x8x128xf32, #tpu.memory_space<vmem>>, %arg9: memref<768x256xf32, #tpu.memory_space<vmem>>, %arg10: memref<1x256xf32, #tpu.memory_space<vmem>>, %arg11: memref<256x128xf32, #tpu.memory_space<vmem>>, %arg12: memref<8x128xf32, #tpu.memory_space<vmem>>, %arg13: memref<1x8x128xf32, #tpu.memory_space<vmem>>, %arg14: memref<1x8x128xf32, #tpu.memory_space<vmem>>, %arg15: memref<8x128xf32, #tpu.memory_space<vmem>>) attributes {dimension_semantics = [#tpu.dimension_semantics<parallel>, #tpu.dimension_semantics<parallel>, #tpu.dimension_semantics<arbitrary>], iteration_bounds = array<i64: 2, 3, 1>, scalar_prefetch = 0 : i64, scratch_operands = 1 : i64, tpu.core_type = #tpu.core_type<tc>, window_params = [{transform_indices = @transform_0, window_bounds = array<i64: 1, 8, 128>}, {transform_indices = @transform_1, window_bounds = array<i64: 1, 8, 128>}, {transform_indices = @transform_2, window_bounds = array<i64: 1, 8, 128>}, {transform_indices = @transform_3, window_bounds = array<i64: 1, 8, 128>}, {transform_indices = @transform_4, window_bounds = array<i64: 1, 8, 128>}, {transform_indices = @transform_5, window_bounds = array<i64: 1, 8, 128>}, {transform_indices = @transform_6, window_bounds = array<i64: 768, 256>}, {transform_indices = @transform_7, window_bounds = array<i64: 1, 256>}, {transform_indices = @transform_8, window_bounds = array<i64: 256, 128>}, {pipeline_mode = #tpu.pipeline_mode<synchronous>, transform_indices = @transform_9, window_bounds = array<i64: 8, 128>}, {transform_indices = @transform_10, window_bounds = array<i64: 1, 8, 128>}, {transform_indices = @transform_11, window_bounds = array<i64: 1, 8, 128>}]} {
    %c0 = arith.constant 0 : index
    %c0_0 = arith.constant 0 : index
    %c0_1 = arith.constant 0 : index
    %0 = vector.load %arg3[%c0, %c0_0, %c0_1] : memref<1x8x128xf32, #tpu.memory_space<vmem>>, vector<1x8x128xf32>
    %1 = vector.shape_cast %0 : vector<1x8x128xf32> to vector<8x128xf32>
    %c0_2 = arith.constant 0 : index
    %c0_3 = arith.constant 0 : index
    %c0_4 = arith.constant 0 : index
    %2 = vector.load %arg6[%c0_2, %c0_3, %c0_4] : memref<1x8x128xf32, #tpu.memory_space<vmem>>, vector<1x8x128xf32>
    %3 = vector.shape_cast %2 : vector<1x8x128xf32> to vector<8x128xf32>
    %cst = arith.constant 0.000000e+00 : f32
    %4 = vector.broadcast %cst : f32 to vector<1x128xf32>
    %c0_i32 = arith.constant 0 : i32
    %5 = arith.cmpi sgt, %arg1, %c0_i32 : i32
    %c0_5 = arith.constant 0 : index
    %c7 = arith.constant 7 : index
    %c0_6 = arith.constant 0 : index
    %6 = vector.load %arg4[%c0_5, %c7, %c0_6] : memref<1x8x128xf32, #tpu.memory_space<vmem>>, vector<1x1x128xf32>
    %7 = vector.shape_cast %6 : vector<1x1x128xf32> to vector<1x128xf32>
    %8 = arith.select %5, %7, %4 : vector<1x128xf32>
    %c0_i32_7 = arith.constant 0 : i32
    %9 = arith.cmpi sgt, %arg1, %c0_i32_7 : i32
    %c0_8 = arith.constant 0 : index
    %c7_9 = arith.constant 7 : index
    %c0_10 = arith.constant 0 : index
    %10 = vector.load %arg7[%c0_8, %c7_9, %c0_10] : memref<1x8x128xf32, #tpu.memory_space<vmem>>, vector<1x1x128xf32>
    %11 = vector.shape_cast %10 : vector<1x1x128xf32> to vector<1x128xf32>
    %12 = arith.select %9, %11, %4 : vector<1x128xf32>
    %c2_i32 = arith.constant 2 : i32
    %13 = arith.cmpi slt, %arg1, %c2_i32 : i32
    %c0_11 = arith.constant 0 : index
    %c0_12 = arith.constant 0 : index
    %c0_13 = arith.constant 0 : index
    %14 = vector.load %arg5[%c0_11, %c0_12, %c0_13] : memref<1x8x128xf32, #tpu.memory_space<vmem>>, vector<1x1x128xf32>
    %15 = vector.shape_cast %14 : vector<1x1x128xf32> to vector<1x128xf32>
    %16 = arith.select %13, %15, %4 : vector<1x128xf32>
    %c2_i32_14 = arith.constant 2 : i32
    %17 = arith.cmpi slt, %arg1, %c2_i32_14 : i32
    %c0_15 = arith.constant 0 : index
    %c0_16 = arith.constant 0 : index
    %c0_17 = arith.constant 0 : index
    %18 = vector.load %arg8[%c0_15, %c0_16, %c0_17] : memref<1x8x128xf32, #tpu.memory_space<vmem>>, vector<1x1x128xf32>
    %19 = vector.shape_cast %18 : vector<1x1x128xf32> to vector<1x128xf32>
    %20 = arith.select %17, %19, %4 : vector<1x128xf32>
    %21 = tpu.iota {dimensions = array<i32: 0>} : vector<8x1xi32>
    %22 = tpu.iota {dimensions = array<i32: 0>} : vector<8x8xi32>
    %23 = tpu.iota {dimensions = array<i32: 1>} : vector<8x8xi32>
    %c1_i32 = arith.constant 1 : i32
    %24 = vector.broadcast %c1_i32 : i32 to vector<8x8xi32>
    %25 = arith.addi %23, %24 : vector<8x8xi32>
    %26 = arith.cmpi eq, %22, %25 : vector<8x8xi32>
    %27 = arith.extui %26 : vector<8x8xi1> to vector<8x8xi32>
    %28 = arith.sitofp %27 : vector<8x8xi32> to vector<8x8xf32>
    %c1_i32_18 = arith.constant 1 : i32
    %29 = vector.broadcast %c1_i32_18 : i32 to vector<8x8xi32>
    %30 = arith.subi %23, %29 : vector<8x8xi32>
    %31 = arith.cmpi eq, %22, %30 : vector<8x8xi32>
    %32 = arith.extui %31 : vector<8x8xi1> to vector<8x8xi32>
    %33 = arith.sitofp %32 : vector<8x8xi32> to vector<8x8xf32>
    %c0_i32_19 = arith.constant 0 : i32
    %34 = vector.broadcast %c0_i32_19 : i32 to vector<8x1xi32>
    %35 = arith.cmpi eq, %21, %34 : vector<8x1xi32>
    %cst_20 = arith.constant dense<0.000000e+00> : vector<8x128xf32>
    %36 = tpu.matmul %28, %1, %cst_20 {dimension_numbers = #tpu.dot_dimension_numbers<[1], [0], [0], [1], [0, 0, 1, 1], [], []>} : vector<8x8xf32>, vector<8x128xf32>, vector<8x128xf32> -> vector<8x128xf32>
    %37 = vector.shape_cast %35 : vector<8x1xi1> to vector<8x1xi1>
    %38 = vector.broadcast %37 : vector<8x1xi1> to vector<8x128xi1>
    %39 = vector.shape_cast %8 : vector<1x128xf32> to vector<1x128xf32>
    %40 = vector.broadcast %39 : vector<1x128xf32> to vector<8x128xf32>
    %41 = arith.select %38, %40, %36 : vector<8x128xi1>, vector<8x128xf32>
    %c0_i32_21 = arith.constant 0 : i32
    %42 = vector.broadcast %c0_i32_21 : i32 to vector<8x1xi32>
    %43 = arith.cmpi eq, %21, %42 : vector<8x1xi32>
    %cst_22 = arith.constant dense<0.000000e+00> : vector<8x128xf32>
    %44 = tpu.matmul %28, %3, %cst_22 {dimension_numbers = #tpu.dot_dimension_numbers<[1], [0], [0], [1], [0, 0, 1, 1], [], []>} : vector<8x8xf32>, vector<8x128xf32>, vector<8x128xf32> -> vector<8x128xf32>
    %45 = vector.shape_cast %43 : vector<8x1xi1> to vector<8x1xi1>
    %46 = vector.broadcast %45 : vector<8x1xi1> to vector<8x128xi1>
    %47 = vector.shape_cast %12 : vector<1x128xf32> to vector<1x128xf32>
    %48 = vector.broadcast %47 : vector<1x128xf32> to vector<8x128xf32>
    %49 = arith.select %46, %48, %44 : vector<8x128xi1>, vector<8x128xf32>
    %c7_i32 = arith.constant 7 : i32
    %50 = vector.broadcast %c7_i32 : i32 to vector<8x1xi32>
    %51 = arith.cmpi eq, %21, %50 : vector<8x1xi32>
    %cst_23 = arith.constant dense<0.000000e+00> : vector<8x128xf32>
    %52 = tpu.matmul %33, %1, %cst_23 {dimension_numbers = #tpu.dot_dimension_numbers<[1], [0], [0], [1], [0, 0, 1, 1], [], []>} : vector<8x8xf32>, vector<8x128xf32>, vector<8x128xf32> -> vector<8x128xf32>
    %53 = vector.shape_cast %51 : vector<8x1xi1> to vector<8x1xi1>
    %54 = vector.broadcast %53 : vector<8x1xi1> to vector<8x128xi1>
    %55 = vector.shape_cast %16 : vector<1x128xf32> to vector<1x128xf32>
    %56 = vector.broadcast %55 : vector<1x128xf32> to vector<8x128xf32>
    %57 = arith.select %54, %56, %52 : vector<8x128xi1>, vector<8x128xf32>
    %c7_i32_24 = arith.constant 7 : i32
    %58 = vector.broadcast %c7_i32_24 : i32 to vector<8x1xi32>
    %59 = arith.cmpi eq, %21, %58 : vector<8x1xi32>
    %cst_25 = arith.constant dense<0.000000e+00> : vector<8x128xf32>
    %60 = tpu.matmul %33, %3, %cst_25 {dimension_numbers = #tpu.dot_dimension_numbers<[1], [0], [0], [1], [0, 0, 1, 1], [], []>} : vector<8x8xf32>, vector<8x128xf32>, vector<8x128xf32> -> vector<8x128xf32>
    %61 = vector.shape_cast %59 : vector<8x1xi1> to vector<8x1xi1>
    %62 = vector.broadcast %61 : vector<8x1xi1> to vector<8x128xi1>
    %63 = vector.shape_cast %20 : vector<1x128xf32> to vector<1x128xf32>
    %64 = vector.broadcast %63 : vector<1x128xf32> to vector<8x128xf32>
    %65 = arith.select %62, %64, %60 : vector<8x128xi1>, vector<8x128xf32>
    %66 = tpu.concatenate %1, %3, %41, %49, %57, %65 in 1 : vector<8x128xf32>, vector<8x128xf32>, vector<8x128xf32>, vector<8x128xf32>, vector<8x128xf32>, vector<8x128xf32> -> vector<8x768xf32>
    %c0_26 = arith.constant 0 : index
    %c0_27 = arith.constant 0 : index
    %67 = vector.load %arg9[%c0_26, %c0_27] : memref<768x256xf32, #tpu.memory_space<vmem>>, vector<768x256xf32>
    %cst_28 = arith.constant dense<0.000000e+00> : vector<8x256xf32>
    %68 = tpu.matmul %66, %67, %cst_28 {dimension_numbers = #tpu.dot_dimension_numbers<[1], [0], [0], [1], [0, 0, 1, 1], [], []>} : vector<8x768xf32>, vector<768x256xf32>, vector<8x256xf32> -> vector<8x256xf32>
    %c0_29 = arith.constant 0 : index
    %c0_30 = arith.constant 0 : index
    %69 = vector.load %arg10[%c0_29, %c0_30] : memref<1x256xf32, #tpu.memory_space<vmem>>, vector<1x256xf32>
    %70 = vector.broadcast %69 : vector<1x256xf32> to vector<8x256xf32>
    %71 = arith.addf %68, %70 : vector<8x256xf32>
    %cst_31 = arith.constant 0.000000e+00 : f32
    %72 = vector.broadcast %cst_31 : f32 to vector<8x256xf32>
    %73 = arith.maximumf %71, %72 : vector<8x256xf32>
    %c0_32 = arith.constant 0 : index
    %c0_33 = arith.constant 0 : index
    %74 = vector.load %arg11[%c0_32, %c0_33] : memref<256x128xf32, #tpu.memory_space<vmem>>, vector<256x128xf32>
    %cst_34 = arith.constant dense<0.000000e+00> : vector<8x128xf32>
    %75 = tpu.matmul %73, %74, %cst_34 {dimension_numbers = #tpu.dot_dimension_numbers<[1], [0], [0], [1], [0, 0, 1, 1], [], []>} : vector<8x256xf32>, vector<256x128xf32>, vector<8x128xf32> -> vector<8x128xf32>
    %c0_35 = arith.constant 0 : index
    %c0_36 = arith.constant 0 : index
    %76 = vector.load %arg12[%c0_35, %c0_36] : memref<8x128xf32, #tpu.memory_space<vmem>>, vector<1x128xf32>
    %c1 = arith.constant 1 : index
    %c0_37 = arith.constant 0 : index
    %77 = vector.load %arg12[%c1, %c0_37] : memref<8x128xf32, #tpu.memory_space<vmem>>, vector<1x128xf32>
    %c2 = arith.constant 2 : index
    %c0_38 = arith.constant 0 : index
    %78 = vector.load %arg12[%c2, %c0_38] : memref<8x128xf32, #tpu.memory_space<vmem>>, vector<1x128xf32>
    %c3 = arith.constant 3 : index
    %c0_39 = arith.constant 0 : index
    %79 = vector.load %arg12[%c3, %c0_39] : memref<8x128xf32, #tpu.memory_space<vmem>>, vector<1x128xf32>
    %c4 = arith.constant 4 : index
    %c0_40 = arith.constant 0 : index
    %80 = vector.load %arg12[%c4, %c0_40] : memref<8x128xf32, #tpu.memory_space<vmem>>, vector<1x128xf32>
    %81 = vector.broadcast %76 : vector<1x128xf32> to vector<8x128xf32>
    %82 = arith.addf %75, %81 : vector<8x128xf32>
    %83 = arith.addf %82, %1 : vector<8x128xf32>
    %cst_41 = arith.constant dense<0.000000e+00> : vector<8xf32>
    %84 = vector.multi_reduction <add>, %83, %cst_41 [1] : vector<8x128xf32> to vector<8xf32>
    %85 = vector.shape_cast %84 : vector<8xf32> to vector<8x1xf32>
    %cst_42 = arith.constant 1.280000e+02 : f32
    %86 = vector.broadcast %cst_42 : f32 to vector<8x1xf32>
    %87 = arith.divf %85, %86 : vector<8x1xf32>
    %88 = vector.broadcast %87 : vector<8x1xf32> to vector<8x128xf32>
    %89 = arith.subf %83, %88 : vector<8x128xf32>
    %90 = arith.mulf %89, %89 : vector<8x128xf32>
    %cst_43 = arith.constant dense<0.000000e+00> : vector<8xf32>
    %91 = vector.multi_reduction <add>, %90, %cst_43 [1] : vector<8x128xf32> to vector<8xf32>
    %92 = vector.shape_cast %91 : vector<8xf32> to vector<8x1xf32>
    %cst_44 = arith.constant 1.280000e+02 : f32
    %93 = vector.broadcast %cst_44 : f32 to vector<8x1xf32>
    %94 = arith.divf %92, %93 : vector<8x1xf32>
    %cst_45 = arith.constant 9.99999996E-13 : f32
    %95 = vector.broadcast %cst_45 : f32 to vector<8x1xf32>
    %96 = arith.addf %94, %95 : vector<8x1xf32>
    %97 = math.rsqrt %96 : vector<8x1xf32>
    %98 = vector.broadcast %97 : vector<8x1xf32> to vector<8x128xf32>
    %99 = arith.mulf %89, %98 : vector<8x128xf32>
    %100 = vector.broadcast %77 : vector<1x128xf32> to vector<8x128xf32>
    %101 = arith.mulf %100, %99 : vector<8x128xf32>
    %102 = vector.broadcast %78 : vector<1x128xf32> to vector<8x128xf32>
    %103 = arith.addf %101, %102 : vector<8x128xf32>
    %c0_46 = arith.constant 0 : index
    %c0_47 = arith.constant 0 : index
    %c0_48 = arith.constant 0 : index
    %104 = vector.load %arg13[%c0_46, %c0_47, %c0_48] : memref<1x8x128xf32, #tpu.memory_space<vmem>>, vector<1x8x128xf32>
    %105 = vector.shape_cast %104 : vector<1x8x128xf32> to vector<8x128xf32>
    %106 = vector.shape_cast %103 : vector<8x128xf32> to vector<1x8x128xf32>
    tpu.vector_store %arg13[%c0_46, %c0_47, %c0_48], %106 {strides = array<i32>} : memref<1x8x128xf32, #tpu.memory_space<vmem>>, vector<1x8x128xf32>,
    %107 = arith.addf %82, %3 : vector<8x128xf32>
    %cst_49 = arith.constant dense<0.000000e+00> : vector<8xf32>
    %108 = vector.multi_reduction <add>, %107, %cst_49 [1] : vector<8x128xf32> to vector<8xf32>
    %109 = vector.shape_cast %108 : vector<8xf32> to vector<8x1xf32>
    %cst_50 = arith.constant 1.280000e+02 : f32
    %110 = vector.broadcast %cst_50 : f32 to vector<8x1xf32>
    %111 = arith.divf %109, %110 : vector<8x1xf32>
    %112 = vector.broadcast %111 : vector<8x1xf32> to vector<8x128xf32>
    %113 = arith.subf %107, %112 : vector<8x128xf32>
    %114 = arith.mulf %113, %113 : vector<8x128xf32>
    %cst_51 = arith.constant dense<0.000000e+00> : vector<8xf32>
    %115 = vector.multi_reduction <add>, %114, %cst_51 [1] : vector<8x128xf32> to vector<8xf32>
    %116 = vector.shape_cast %115 : vector<8xf32> to vector<8x1xf32>
    %cst_52 = arith.constant 1.280000e+02 : f32
    %117 = vector.broadcast %cst_52 : f32 to vector<8x1xf32>
    %118 = arith.divf %116, %117 : vector<8x1xf32>
    %cst_53 = arith.constant 9.99999996E-13 : f32
    %119 = vector.broadcast %cst_53 : f32 to vector<8x1xf32>
    %120 = arith.addf %118, %119 : vector<8x1xf32>
    %121 = math.rsqrt %120 : vector<8x1xf32>
    %122 = vector.broadcast %121 : vector<8x1xf32> to vector<8x128xf32>
    %123 = arith.mulf %113, %122 : vector<8x128xf32>
    %124 = vector.broadcast %79 : vector<1x128xf32> to vector<8x128xf32>
    %125 = arith.mulf %124, %123 : vector<8x128xf32>
    %126 = vector.broadcast %80 : vector<1x128xf32> to vector<8x128xf32>
    %127 = arith.addf %125, %126 : vector<8x128xf32>
    %c0_54 = arith.constant 0 : index
    %c0_55 = arith.constant 0 : index
    %c0_56 = arith.constant 0 : index
    %128 = vector.load %arg14[%c0_54, %c0_55, %c0_56] : memref<1x8x128xf32, #tpu.memory_space<vmem>>, vector<1x8x128xf32>
    %129 = vector.shape_cast %128 : vector<1x8x128xf32> to vector<8x128xf32>
    %130 = vector.shape_cast %127 : vector<8x128xf32> to vector<1x8x128xf32>
    tpu.vector_store %arg14[%c0_54, %c0_55, %c0_56], %130 {strides = array<i32>} : memref<1x8x128xf32, #tpu.memory_space<vmem>>, vector<1x8x128xf32>,
    return
  }
  func.func @transform_0(%arg0: i32, %arg1: i32, %arg2: i32) -> (i32, i32, i32) {
    %c0_i32 = arith.constant 0 : i32
    %c0_i32_0 = arith.constant 0 : i32
    return %arg0, %arg1, %c0_i32 : i32, i32, i32
  }
  func.func @transform_1(%arg0: i32, %arg1: i32, %arg2: i32) -> (i32, i32, i32) {
    %c1_i32 = arith.constant 1 : i32
    %0 = arith.muli %arg1, %c1_i32 : i32
    %c1_i32_0 = arith.constant 1 : i32
    %1 = arith.subi %0, %c1_i32_0 : i32
    %c0_i32 = arith.constant 0 : i32
    %2 = arith.maxsi %1, %c0_i32 : i32
    %c0_i32_1 = arith.constant 0 : i32
    %c0_i32_2 = arith.constant 0 : i32
    return %arg0, %2, %c0_i32_1 : i32, i32, i32
  }
  func.func @transform_2(%arg0: i32, %arg1: i32, %arg2: i32) -> (i32, i32, i32) {
    %c1_i32 = arith.constant 1 : i32
    %0 = arith.addi %arg1, %c1_i32 : i32
    %c1_i32_0 = arith.constant 1 : i32
    %1 = arith.muli %0, %c1_i32_0 : i32
    %c2_i32 = arith.constant 2 : i32
    %2 = arith.minsi %1, %c2_i32 : i32
    %c0_i32 = arith.constant 0 : i32
    %c0_i32_1 = arith.constant 0 : i32
    return %arg0, %2, %c0_i32 : i32, i32, i32
  }
  func.func @transform_3(%arg0: i32, %arg1: i32, %arg2: i32) -> (i32, i32, i32) {
    %c0_i32 = arith.constant 0 : i32
    %c0_i32_0 = arith.constant 0 : i32
    return %arg0, %arg1, %c0_i32 : i32, i32, i32
  }
  func.func @transform_4(%arg0: i32, %arg1: i32, %arg2: i32) -> (i32, i32, i32) {
    %c1_i32 = arith.constant 1 : i32
    %0 = arith.muli %arg1, %c1_i32 : i32
    %c1_i32_0 = arith.constant 1 : i32
    %1 = arith.subi %0, %c1_i32_0 : i32
    %c0_i32 = arith.constant 0 : i32
    %2 = arith.maxsi %1, %c0_i32 : i32
    %c0_i32_1 = arith.constant 0 : i32
    %c0_i32_2 = arith.constant 0 : i32
    return %arg0, %2, %c0_i32_1 : i32, i32, i32
  }
  func.func @transform_5(%arg0: i32, %arg1: i32, %arg2: i32) -> (i32, i32, i32) {
    %c1_i32 = arith.constant 1 : i32
    %0 = arith.addi %arg1, %c1_i32 : i32
    %c1_i32_0 = arith.constant 1 : i32
    %1 = arith.muli %0, %c1_i32_0 : i32
    %c2_i32 = arith.constant 2 : i32
    %2 = arith.minsi %1, %c2_i32 : i32
    %c0_i32 = arith.constant 0 : i32
    %c0_i32_1 = arith.constant 0 : i32
    return %arg0, %2, %c0_i32 : i32, i32, i32
  }
  func.func @transform_6(%arg0: i32, %arg1: i32, %arg2: i32) -> (i32, i32) {
    %c0_i32 = arith.constant 0 : i32
    %c0_i32_0 = arith.constant 0 : i32
    return %c0_i32, %arg2 : i32, i32
  }
  func.func @transform_7(%arg0: i32, %arg1: i32, %arg2: i32) -> (i32, i32) {
    %c0_i32 = arith.constant 0 : i32
    %c0_i32_0 = arith.constant 0 : i32
    return %c0_i32, %arg2 : i32, i32
  }
  func.func @transform_8(%arg0: i32, %arg1: i32, %arg2: i32) -> (i32, i32) {
    %c0_i32 = arith.constant 0 : i32
    %c0_i32_0 = arith.constant 0 : i32
    return %arg2, %c0_i32 : i32, i32
  }
  func.func @transform_9(%arg0: i32, %arg1: i32, %arg2: i32) -> (i32, i32) {
    %c0_i32 = arith.constant 0 : i32
    %c0_i32_0 = arith.constant 0 : i32
    %c0_i32_1 = arith.constant 0 : i32
    return %c0_i32, %c0_i32_0 : i32, i32
  }
  func.func @transform_10(%arg0: i32, %arg1: i32, %arg2: i32) -> (i32, i32, i32) {
    %c0_i32 = arith.constant 0 : i32
    %c0_i32_0 = arith.constant 0 : i32
    return %arg0, %arg1, %c0_i32 : i32, i32, i32
  }
  func.func @transform_11(%arg0: i32, %arg1: i32, %arg2: i32) -> (i32, i32, i32) {
    %c0_i32 = arith.constant 0 : i32
    %c0_i32_0 = arith.constant 0 : i32
    return %arg0, %arg1, %c0_i32 : i32, i32, i32
  }
}

</mosaic_0001>

<bundles_post_ra>
// kernel: _lambda_.1
= control target key start
LH: loop header
LB: loop body
LE: loop exit
PB: predicated region body
PF: predicated region fallthrough
CT: control target
= control target key end

     0   :  { %17 = vsyncpa [#allocation4], 0  ;;  %s1884_s17 = smov 0   ;;  %s1886_s18 = smov 0   ;;  %s2224_s0 = inlined_call_operand.vmem [shape: f32[2,24,128], index: 0, kind: input, shape index: {}, may-alias: {0,1,2}]   ;;  %s2225_s1 = inlined_call_operand.vmem [shape: f32[2,24,128], index: 1, kind: input, shape index: {}, may-alias: {0,1,2}]   ;;  %s2226_s2 = inlined_call_operand.vmem [shape: f32[2,24,128], index: 2, kind: input, shape index: {}, may-alias: {0,1,2}]   ;;  %s2227_s3 = inlined_call_operand.vmem [shape: f32[2,24,128], index: 3, kind: input, shape index: {}, may-alias: {3,4,5}]   ;;  %s2228_s4 = inlined_call_operand.vmem [shape: f32[2,24,128], index: 4, kind: input, shape index: {}, may-alias: {3,4,5}]   ;;  %s2229_s5 = inlined_call_operand.vmem [shape: f32[2,24,128], index: 5, kind: input, shape index: {}, may-alias: {3,4,5}]   ;;  %s2230_s6 = inlined_call_operand.hbm [shape: f32[768,256], index: 6, kind: input, shape index: {}]   ;;  %s2231_s7 = inlined_call_operand.vmem [shape: f32[1,256], index: 7, kind: input, shape index: {}]   ;;  %s2232_s8 = inlined_call_operand.vmem [shape: f32[256,128], index: 8, kind: input, shape index: {}]   ;;  %s2233_s9 = inlined_call_operand.vmem [shape: f32[8,128], index: 9, kind: input, shape index: {}]   ;;  %s2234_s10 = inlined_call_operand.vmem [shape: f32[2,24,128], index: 10, kind: output, shape index: {0}]   ;;  %s2235_s11 = inlined_call_operand.vmem [shape: f32[2,24,128], index: 11, kind: output, shape index: {1}]  }
   0x1   :  { %s1888_s19 = smov 0   ;;  %s1890_s20 = smov 0  }
   0x2   :  { %s1892_s21 = smov 0  }
   0x3 LB: > { %s1635_s22 = sadd.s32 4294967295, %s1818_s21   ;;  %s38_s23 = sadd.s32 1, %s1810_s19  ;;  %s1818_s21 = sphi %s1892_s21, %s23_s21   ;;  %s1814_s20 = sphi %s1890_s20, %s2246_s20   ;;  %s1810_s19 = sphi %s1888_s19, %s2245_s19   ;;  %s1806_s18 = sphi %s1886_s18, %s2244_s18   ;;  %s1802_s17 = sphi %s1884_s17, %s2243_s17  }
   0x4   : > { %p40_p0 = scmp.ge.s32.totalorder %s38_s23, 3  ;;  %s42_s24 = sadd.s32 1, %s1814_s20 }
   0x5   : > { %p1641_p1 = scmp.ge.s32.totalorder %s1818_s21, 1  ;;  %p394_p2 = scmp.lt.s32.totalorder %s1818_s21, 7 }
   0x6   : > { %s2248_s23 = smov (%p40_p0, %s38_s23), 0  ;;  %s2250_s24 = smov (!%p40_p0, %s42_s24), %s1814_s20 }
   0x7   : > { %p1917_p3 = pnand %p1641_p1, %p394_p2  ;;  %p44_p4 = scmp.ge.s32.totalorder %s2250_s24, 2 }
   0x8   : > { %p1921_p5 = scmp.eq.s32.totalorder %s1635_s22, 0  ;;  %s408_s29 = sshll.u32 %s2230_s6, 4  ;;  %s409_s29 = int_to_ptr.hbm [resolvable:$true] %s408_s29 }
   0x9   : > { %p1685_p6 = pneg %p1917_p3  ;;  %s2252_s24 = smov (%p44_p4, %s2250_s24), 0 }
   0xa   : > { %s1820_s30 = smov [#allocation3]   ;;  %s1821_s13 = smov 256  }
   0xb   : > { %s410_s12 = sshll.u32 %s1820_s30, 4  ;;  %p1686_p7 = pnand %p1921_p5, %p1685_p6  ;;  %s411_s12 = int_to_ptr.vmem [resolvable:$true] %s410_s12 }
   0xc   : > { %s1822_s14 = smov 16   ;;  %536 = sbr.rel (%p1917_p3) target bundleno = 661 (0x295), region = 60 }
   0xd   : > { %1688 = dma.hbm_to_vmem [thread:$0]  (!%p1686_p7), %s409_s29, 24576, %s411_s12, [#allocation4], %s1821_s13, %s1821_s13, %s1822_s14  }
  0x11   : > { %1797 = dma.done.wait (%p1921_p5), [#allocation4], 24576  }
  0x12   : > { %1799 = vsyncadd (%p1921_p5), [#allocation4], 4294942720  ;;  %v884_v0 = vld [vmem:[#allocation3 + $0x2f0] sm:$0xff]  ;;  %v882_v2 = vld [vmem:[#allocation3 + $0x2e0] sm:$0xff]  ;;  %s1941_s15 = sadd.s32 4294967295, %s1802_s17  ;;  %p652_p8 = scmp.lt.s32.totalorder %s1806_s18, 1 }
  0x13   : > { %v820_v1 = vld [vmem:[#allocation3 + $0xf0] sm:$0xff]  ;;  %1028 = vmatpush.msra.mxu2 %v884_v0  ;;  %v818_v4 = vld [vmem:[#allocation3 + $0xe0] sm:$0xff]  ;;  %p661_p9 = scmp.gt.s32.totalorder %s1941_s15, 0  ;;  %v821_v62 = vld [vmem:[#allocation3 + $0xf8] sm:$0xff]  ;;  %p1650_p10 = scmp.lt.s32.totalorder %s1941_s15, 2 }
  0x14   : > { %988 = vmatpush.msra.mxu0 %v820_v1  ;;  %v916_v3 = vld [vmem:[#allocation3 + $0x3f0] sm:$0xff]  ;;  %v914_v7 = vld [vmem:[#allocation3 + $0x3e0] sm:$0xff]  ;;  %v853_v1 = vld [vmem:[#allocation3 + $0x1f8] sm:$0xff]  ;;  %s2254_s18 = smov (!%p652_p8, %s1806_s18), 1  ;;  %p654_p11 = scmp.lt.s32.totalorder %s1802_s17, 2 }
  0x15   : > { %v852_v5 = vld [vmem:[#allocation3 + $0x1f0] sm:$0xff]  ;;  %1048 = vmatpush.msra.mxu3 %v916_v3  ;;  %1029 = vmatpush.msra.mxu2 %v882_v2  ;;  %v850_v9 = vld [vmem:[#allocation3 + $0x1e0] sm:$0xff]  ;;  %v819_v2 = vld [vmem:[#allocation3 + $0xe8] sm:$0xff]  ;;  %s662_s16 = scalar_select %p661_p9, %s1941_s15, 0 }
  0x16   : > { %1008 = vmatpush.msra.mxu1 %v852_v5  ;;  %v880_v6 = vld [vmem:[#allocation3 + $0x2d0] sm:$0xff]  ;;  %989 = vmatpush.msra.mxu0 %v818_v4  ;;  %v878_v11 = vld [vmem:[#allocation3 + $0x2c0] sm:$0xff]  ;;  %s1953_s22 = smul.u32 3, %s2254_s18  ;;  %s674_s25 = sadd.s32 1, %s1802_s17 }
  0x17   : > { %v816_v8 = vld [vmem:[#allocation3 + $0xd0] sm:$0xff]  ;;  %1049 = vmatpush.msra.mxu3 %v914_v7  ;;  %v814_v12 = vld [vmem:[#allocation3 + $0xc0] sm:$0xff]  ;;  %1030 = vmatpush.msra.mxu2 %v880_v6  ;;  %v817_v6 = vld [vmem:[#allocation3 + $0xd8] sm:$0xff]  ;;  %s2256_s16 = smov (!%p1650_p10, %s662_s16), 2  ;;  %p754_p12 = scmp.gt.s32.totalorder %s1802_s17, 0 }
  0x18   : > { %v912_v10 = vld [vmem:[#allocation3 + $0x3d0] sm:$0xff]  ;;  %1009 = vmatpush.msra.mxu1 %v850_v9  ;;  %990 = vmatpush.msra.mxu0 %v816_v8  ;;  %v910_v14 = vld [vmem:[#allocation3 + $0x3c0] sm:$0xff]  ;;  %v851_v7 = vld [vmem:[#allocation3 + $0x1e8] sm:$0xff]  ;;  %s1964_s18 = scalar_select %p654_p11, %s1802_s17, 2 }
  0x19   : > { %v848_v13 = vld [vmem:[#allocation3 + $0x1d0] sm:$0xff]  ;;  %v846_v15 = vld [vmem:[#allocation3 + $0x1c0] sm:$0xff]  ;;  %1050 = vmatpush.msra.mxu3 %v912_v10  ;;  %1031 = vmatpush.msra.mxu2 %v878_v11  ;;  %v815_v10 = vld [vmem:[#allocation3 + $0xc8] sm:$0xff]  ;;  %s668_s26 = sadd.s32 %s1953_s22, %s2256_s16  ;;  %p1970_p13 = scmp.lt.s32.totalorder %s674_s25, 2 }
  0x1a   : > { %1010 = vmatpush.msra.mxu1 %v848_v13  ;;  %v876_v16 = vld [vmem:[#allocation3 + $0x2b0] sm:$0xff]  ;;  %991 = vmatpush.msra.mxu0 %v814_v12  ;;  %v874_v20 = vld [vmem:[#allocation3 + $0x2a0] sm:$0xff]  ;;  %v849_v11 = vld [vmem:[#allocation3 + $0x1d8] sm:$0xff]  ;;  %s1976_s28 = scalar_select %p754_p12, 1, 0 }
  0x1b   : > { %v812_v17 = vld [vmem:[#allocation3 + $0xb0] sm:$0xff]  ;;  %1051 = vmatpush.msra.mxu3 %v910_v14  ;;  %v810_v21 = vld [vmem:[#allocation3 + $0xa0] sm:$0xff]  ;;  %1032 = vmatpush.msra.mxu2 %v876_v16  ;;  %v813_v14 = vld [vmem:[#allocation3 + $0xb8] sm:$0xff]  ;;  %s657_s29 = sadd.s32 %s1953_s22, %s1964_s18  ;;  %s1980_s30 = sshll.u32 %s668_s26, 3 }
  0x1c   : > { %v908_v18 = vld [vmem:[#allocation3 + $0x3b0] sm:$0xff]  ;;  %1011 = vmatpush.msra.mxu1 %v846_v15  ;;  %992 = vmatpush.msra.mxu0 %v812_v17  ;;  %v906_v22 = vld [vmem:[#allocation3 + $0x3a0] sm:$0xff]  ;;  %v847_v15 = vld [vmem:[#allocation3 + $0x1c8] sm:$0xff]  ;;  %s2258_s25 = smov (!%p1970_p13, %s674_s25), 2  ;;  %s1988_s12 = sshll.u32 %s657_s29, 3 }
  0x1d   : > { %v844_v19 = vld [vmem:[#allocation3 + $0x1b0] sm:$0xff]  ;;  %v842_v23 = vld [vmem:[#allocation3 + $0x1a0] sm:$0xff]  ;;  %1052 = vmatpush.msra.mxu3 %v908_v18  ;;  %1033 = vmatpush.msra.mxu2 %v874_v20  ;;  %v811_v18 = vld [vmem:[#allocation3 + $0xa8] sm:$0xff]  ;;  %s670_s15 = scalar_lea.vmem %s2225_s1, %s1980_s30  ;;  %s2260_s25 = smov (!%p1970_p13, %s2258_s25), 2 }
  0x1e   : > { %1012 = vmatpush.msra.mxu1 %v844_v19  ;;  %v872_v24 = vld [vmem:[#allocation3 + $0x290] sm:$0xff]  ;;  %993 = vmatpush.msra.mxu0 %v810_v21  ;;  %v870_v28 = vld [vmem:[#allocation3 + $0x280] sm:$0xff]  ;;  %v845_v19 = vld [vmem:[#allocation3 + $0x1b8] sm:$0xff]  ;;  %s659_s26 = scalar_lea.vmem %s2224_s0, %s1988_s12  ;;  %s706_s29 = scalar_lea.vmem %s2228_s4, %s1980_s30 }
  0x1f   : > { %v808_v25 = vld [vmem:[#allocation3 + $0x90] sm:$0xff]  ;;  %1053 = vmatpush.msra.mxu3 %v906_v22  ;;  %v806_v29 = vld [vmem:[#allocation3 + $0x80] sm:$0xff]  ;;  %1034 = vmatpush.msra.mxu2 %v872_v24  ;;  %v809_v22 = vld [vmem:[#allocation3 + $0x98] sm:$0xff]  ;;  %s2011_s13 = sadd.s32 %s1953_s22, %s2260_s25  ;;  %s751_s14 = scalar_lea.vmem %s2235_s11, %s1988_s12 }
  0x20   : > { %v904_v26 = vld [vmem:[#allocation3 + $0x390] sm:$0xff]  ;;  %1013 = vmatpush.msra.mxu1 %v842_v23  ;;  %994 = vmatpush.msra.mxu0 %v808_v25  ;;  %v902_v30 = vld [vmem:[#allocation3 + $0x380] sm:$0xff]  ;;  %v843_v23 = vld [vmem:[#allocation3 + $0x1a8] sm:$0xff]  ;;  %s2025_s22 = scalar_select %p654_p11, 1, 0 }
  0x21   : > { %v840_v27 = vld [vmem:[#allocation3 + $0x190] sm:$0xff]  ;;  %v838_v31 = vld [vmem:[#allocation3 + $0x180] sm:$0xff]  ;;  %1054 = vmatpush.msra.mxu3 %v904_v26  ;;  %1035 = vmatpush.msra.mxu2 %v870_v28  ;;  %v807_v26 = vld [vmem:[#allocation3 + $0x88] sm:$0xff]  ;;  %s1659_s25 = sshll.u32 %s2011_s13, 3 }
  0x22   : > { %1014 = vmatpush.msra.mxu1 %v840_v27  ;;  %v868_v32 = vld [vmem:[#allocation3 + $0x270] sm:$0xff]  ;;  %995 = vmatpush.msra.mxu0 %v806_v29  ;;  %v866_v36 = vld [vmem:[#allocation3 + $0x260] sm:$0xff]  ;;  %v841_v27 = vld [vmem:[#allocation3 + $0x198] sm:$0xff]  ;;  %s684_s18 = scalar_lea.vmem %s2226_s2, %s1659_s25 }
  0x23   : > { %v804_v33 = vld [vmem:[#allocation3 + $0x70] sm:$0xff]  ;;  %1055 = vmatpush.msra.mxu3 %v902_v30  ;;  %v802_v37 = vld [vmem:[#allocation3 + $0x60] sm:$0xff]  ;;  %1036 = vmatpush.msra.mxu2 %v868_v32  ;;  %v805_v30 = vld [vmem:[#allocation3 + $0x78] sm:$0xff] }
  0x24   : > { %v900_v34 = vld [vmem:[#allocation3 + $0x370] sm:$0xff]  ;;  %1015 = vmatpush.msra.mxu1 %v838_v31  ;;  %996 = vmatpush.msra.mxu0 %v804_v33  ;;  %v898_v38 = vld [vmem:[#allocation3 + $0x360] sm:$0xff]  ;;  %v839_v31 = vld [vmem:[#allocation3 + $0x188] sm:$0xff] }
  0x25   : > { %v836_v35 = vld [vmem:[#allocation3 + $0x170] sm:$0xff]  ;;  %v834_v39 = vld [vmem:[#allocation3 + $0x160] sm:$0xff]  ;;  %1056 = vmatpush.msra.mxu3 %v900_v34  ;;  %1037 = vmatpush.msra.mxu2 %v866_v36  ;;  %v803_v34 = vld [vmem:[#allocation3 + $0x68] sm:$0xff]  ;;  %v757_v36 = vstv %s1976_s28  ;;  %s720_s28 = scalar_lea.vmem %s2229_s5, %s1659_s25 }
  0x26   : > { %1016 = vmatpush.msra.mxu1 %v836_v35  ;;  %v864_v40 = vld [vmem:[#allocation3 + $0x250] sm:$0xff]  ;;  %997 = vmatpush.msra.mxu0 %v802_v37  ;;  %v862_v44 = vld [vmem:[#allocation3 + $0x240] sm:$0xff]  ;;  %v837_v35 = vld [vmem:[#allocation3 + $0x178] sm:$0xff]  ;;  %vm2002_vm0 = vcmp.eq.s32.totalorder %v757_v36, 1 }
  0x27   : > { %v800_v41 = vld [vmem:[#allocation3 + $0x50] sm:$0xff]  ;;  %1057 = vmatpush.msra.mxu3 %v898_v38  ;;  %v798_v45 = vld [vmem:[#allocation3 + $0x40] sm:$0xff]  ;;  %1038 = vmatpush.msra.mxu2 %v864_v40  ;;  %v835_v40 = vld [vmem:[#allocation3 + $0x168] sm:$0xff] }
  0x28   : > { %v896_v42 = vld [vmem:[#allocation3 + $0x350] sm:$0xff]  ;;  %1017 = vmatpush.msra.mxu1 %v834_v39  ;;  %998 = vmatpush.msra.mxu0 %v800_v41  ;;  %v894_v46 = vld [vmem:[#allocation3 + $0x340] sm:$0xff]  ;;  %v801_v39 = vld [vmem:[#allocation3 + $0x58] sm:$0xff]  ;;  %v770_v41 = vlaneseq }
  0x29   : > { %v832_v43 = vld [vmem:[#allocation3 + $0x150] sm:$0xff]  ;;  %v830_v47 = vld [vmem:[#allocation3 + $0x140] sm:$0xff]  ;;  %1058 = vmatpush.msra.mxu3 %v896_v42  ;;  %1039 = vmatpush.msra.mxu2 %v862_v44  ;;  %v879_v36 = vld [vmem:[#allocation3 + $0x2c8] sm:$0xff] }
  0x2a   : > { %1018 = vmatpush.msra.mxu1 %v832_v43  ;;  %v860_v48 = vld [vmem:[#allocation3 + $0x230] sm:$0xff]  ;;  %999 = vmatpush.msra.mxu0 %v798_v45  ;;  %v858_v52 = vld [vmem:[#allocation3 + $0x220] sm:$0xff]  ;;  %v911_v45 = vld [vmem:[#allocation3 + $0x3c8] sm:$0xff] }
  0x2b   : > { %v796_v49 = vld [vmem:[#allocation3 + $0x30] sm:$0xff]  ;;  %1059 = vmatpush.msra.mxu3 %v894_v46  ;;  %v794_v53 = vld [vmem:[#allocation3 + $0x20] sm:$0xff]  ;;  %1040 = vmatpush.msra.mxu2 %v860_v48  ;;  %v799_v46 = vld [vmem:[#allocation3 + $0x48] sm:$0xff] }
  0x2c   : > { %v892_v50 = vld [vmem:[#allocation3 + $0x330] sm:$0xff]  ;;  %1019 = vmatpush.msra.mxu1 %v830_v47  ;;  %1000 = vmatpush.msra.mxu0 %v796_v49  ;;  %v890_v54 = vld [vmem:[#allocation3 + $0x320] sm:$0xff]  ;;  %v833_v47 = vld [vmem:[#allocation3 + $0x158] sm:$0xff] }
  0x2d   : > { %v828_v51 = vld [vmem:[#allocation3 + $0x130] sm:$0xff]  ;;  %v826_v55 = vld [vmem:[#allocation3 + $0x120] sm:$0xff]  ;;  %1060 = vmatpush.msra.mxu3 %v892_v50  ;;  %1041 = vmatpush.msra.mxu2 %v858_v52  ;;  %v797_v50 = vld [vmem:[#allocation3 + $0x38] sm:$0xff] }
  0x2e   : > { %1020 = vmatpush.msra.mxu1 %v828_v51  ;;  %v856_v56 = vld [vmem:[#allocation3 + $0x210] sm:$0xff]  ;;  %1001 = vmatpush.msra.mxu0 %v794_v53  ;;  %v854_v60 = vld [vmem:[#allocation3 + $0x200] sm:$0xff]  ;;  %v831_v51 = vld [vmem:[#allocation3 + $0x148] sm:$0xff] }
  0x2f   : > { %v792_v57 = vld [vmem:[#allocation3 + $0x10] sm:$0xff]  ;;  %1061 = vmatpush.msra.mxu3 %v890_v54  ;;  %v790_v61 = vld [vmem:[#allocation3] sm:$0xff]  ;;  %1042 = vmatpush.msra.mxu2 %v856_v56  ;;  %v2017_v54 = vshrl.u32 %v770_v41, 7  ;;  %v975_v41 = vld [vmem:[#allocation3 + $0x5c8] sm:$0xff] }
  0x30   : > { %v888_v58 = vld [vmem:[#allocation3 + $0x310] sm:$0xff]  ;;  %1021 = vmatpush.msra.mxu1 %v826_v55  ;;  %1002 = vmatpush.msra.mxu0 %v792_v57  ;;  %v886_v63 = vld [vmem:[#allocation3 + $0x300] sm:$0xff] }
  0x31   : > { %v824_v59 = vld [vmem:[#allocation3 + $0x110] sm:$0xff]  ;;  %1062 = vmatpush.msra.mxu3 %v888_v58  ;;  %1043 = vmatpush.msra.mxu2 %v854_v60  ;;  %v822_v3 = vld [vmem:[#allocation3 + $0x100] sm:$0xff]  ;;  %v795_v58 = vld [vmem:[#allocation3 + $0x28] sm:$0xff]  ;;  %vm772_vm1 = vcmp.eq.s32.totalorder %v2017_v54, 0  ;;  %vm781_vm3 = vcmp.eq.s32.totalorder %v2017_v54, 7 }
  0x32   : > { %1022 = vmatpush.msra.mxu1 %v824_v59  ;;  %v948_v0 = vld [vmem:[#allocation3 + $0x4f0] sm:$0xff]  ;;  %1003 = vmatpush.msra.mxu0 %v790_v61  ;;  %v946_v4 = vld [vmem:[#allocation3 + $0x4e0] sm:$0xff]  ;;  %v829_v59 = vld [vmem:[#allocation3 + $0x138] sm:$0xff] }
  0x33   : > { %1108 = vmatpush.msrb.mxu2 %v821_v62  ;;  %1063 = vmatpush.msra.mxu3 %v886_v63  ;;  %v980_v5 = vld [vmem:[#allocation3 + $0x5f0] sm:$0xff]  ;;  %v978_v9 = vld [vmem:[#allocation3 + $0x5e0] sm:$0xff]  ;;  %v969_v54 = vld [vmem:[#allocation3 + $0x598] sm:$0xff] }
  0x34   : > { %1068 = vmatpush.msrb.mxu0 %v948_v0  ;;  %1023 = vmatpush.msra.mxu1 %v822_v3  ;;  %v944_v8 = vld [vmem:[#allocation3 + $0x4d0] sm:$0xff]  ;;  %v942_v12 = vld [vmem:[#allocation3 + $0x4c0] sm:$0xff]  ;;  %v827_v3 = vld [vmem:[#allocation3 + $0x128] sm:$0xff] }
  0x35   : > { %1128 = vmatpush.msrb.mxu3 %v853_v1  ;;  %1109 = vmatpush.msrb.mxu2 %v819_v2  ;;  %v976_v13 = vld [vmem:[#allocation3 + $0x5d0] sm:$0xff]  ;;  %v974_v17 = vld [vmem:[#allocation3 + $0x5c0] sm:$0xff]  ;;  %v793_v2 = vld [vmem:[#allocation3 + $0x18] sm:$0xff] }
  0x36   : > { %1069 = vmatpush.msrb.mxu0 %v946_v4  ;;  %1088 = vmatpush.msrb.mxu1 %v980_v5  ;;  %v940_v16 = vld [vmem:[#allocation3 + $0x4b0] sm:$0xff]  ;;  %v938_v20 = vld [vmem:[#allocation3 + $0x4a0] sm:$0xff] }
  0x37   : > { %1110 = vmatpush.msrb.mxu2 %v817_v6  ;;  %1129 = vmatpush.msrb.mxu3 %v851_v7  ;;  %v972_v21 = vld [vmem:[#allocation3 + $0x5b0] sm:$0xff]  ;;  %v970_v25 = vld [vmem:[#allocation3 + $0x5a0] sm:$0xff]  ;;  %v791_v6 = vld [vmem:[#allocation3 + $0x8] sm:$0xff] }
  0x38   : > { %1070 = vmatpush.msrb.mxu0 %v944_v8  ;;  %1089 = vmatpush.msrb.mxu1 %v978_v9  ;;  %v936_v24 = vld [vmem:[#allocation3 + $0x490] sm:$0xff]  ;;  %v934_v28 = vld [vmem:[#allocation3 + $0x480] sm:$0xff]  ;;  %v825_v7 = vld [vmem:[#allocation3 + $0x118] sm:$0xff] }
  0x39   : > { %1111 = vmatpush.msrb.mxu2 %v815_v10  ;;  %1130 = vmatpush.msrb.mxu3 %v849_v11  ;;  %v968_v29 = vld [vmem:[#allocation3 + $0x590] sm:$0xff]  ;;  %v966_v33 = vld [vmem:[#allocation3 + $0x580] sm:$0xff]  ;;  %v765_v10 = vstv %s2025_s22 }
  0x3a   : > { %1071 = vmatpush.msrb.mxu0 %v942_v12  ;;  %1090 = vmatpush.msrb.mxu1 %v976_v13  ;;  %v932_v32 = vld [vmem:[#allocation3 + $0x470] sm:$0xff]  ;;  %v930_v37 = vld [vmem:[#allocation3 + $0x460] sm:$0xff]  ;;  %v949_v13 = vld [vmem:[#allocation3 + $0x4f8] sm:$0xff]  ;;  %vm2050_vm2 = vcmp.eq.s32.totalorder %v765_v10, 1 }
  0x3b   : > { %1112 = vmatpush.msrb.mxu2 %v813_v14  ;;  %1131 = vmatpush.msrb.mxu3 %v847_v15  ;;  %v964_v38 = vld [vmem:[#allocation3 + $0x570] sm:$0xff]  ;;  %v962_v43 = vld [vmem:[#allocation3 + $0x560] sm:$0xff]  ;;  %v823_v15 = vld [vmem:[#allocation3 + $0x108] sm:$0xff] }
  0x3c   : > { %1072 = vmatpush.msrb.mxu0 %v940_v16  ;;  %1091 = vmatpush.msrb.mxu1 %v974_v17  ;;  %v928_v42 = vld [vmem:[#allocation3 + $0x450] sm:$0xff]  ;;  %v755_v44 = vld [vmem:[%s670_s15 + $0x7] sm:$0x1]  ;;  %s695_s15 = scalar_lea.vmem %s2227_s3, %s1988_s12  ;;  %v763_v16 = vld [vmem:[%s684_s18] sm:$0x1]  ;;  %s743_s18 = scalar_lea.vmem %s2234_s10, %s1988_s12 }
  0x3d   : > { %1113 = vmatpush.msrb.mxu2 %v811_v18  ;;  %1132 = vmatpush.msrb.mxu3 %v845_v19  ;;  %v926_v48 = vld [vmem:[#allocation3 + $0x440] sm:$0xff]  ;;  %v960_v49 = vld [vmem:[#allocation3 + $0x550] sm:$0xff]  ;;  %v759_v53 = vsel %vm2002_vm0, %v755_v44, 0.0  ;;  %v885_v19 = vld [vmem:[#allocation3 + $0x2f8] sm:$0xff] }
  0x3e   : > { %1073 = vmatpush.msrb.mxu0 %v938_v20  ;;  %1092 = vmatpush.msrb.mxu1 %v972_v21  ;;  %v2013_v52 = vld [vmem:[%s659_s26] sm:$0xff]  ;;  %v924_v56 = vld [vmem:[#allocation3 + $0x430] sm:$0xff]  ;;  %v776_v63 = vperm.slane %v759_v53, 0  ;;  %v947_v20 = vld [vmem:[#allocation3 + $0x4e8] sm:$0xff] }
  0x3f   : > { %1114 = vmatpush.msrb.mxu2 %v809_v22  ;;  %1133 = vmatpush.msrb.mxu3 %v843_v23  ;;  %v760_v55 = vld [vmem:[%s706_s29 + $0x7] sm:$0x1]  ;;  %v956_v61 = vld [vmem:[#allocation3 + $0x530] sm:$0xff]  ;;  %v773_v62 = vrot.slane %v2013_v52, 7  ;;  %v981_v21 = vld [vmem:[#allocation3 + $0x5f8] sm:$0xff] }
  0x40   : > { %1074 = vmatpush.msrb.mxu0 %v936_v24  ;;  %1093 = vmatpush.msrb.mxu1 %v970_v25  ;;  %v958_v57 = vld [vmem:[#allocation3 + $0x540] sm:$0xff]  ;;  %v761_v1 = vsel %vm2002_vm0, %v760_v55, 0.0  ;;  %v920_v4 = vld [vmem:[#allocation3 + $0x410] sm:$0xff]  ;;  %v883_v24 = vld [vmem:[#allocation3 + $0x2e8] sm:$0xff]  ;;  %v767_v25 = vsel %vm2050_vm2, %v763_v16, 0.0 }
  0x41   : > { %1115 = vmatpush.msrb.mxu2 %v807_v26  ;;  %1134 = vmatpush.msrb.mxu3 %v841_v27  ;;  %v922_v60 = vld [vmem:[#allocation3 + $0x420] sm:$0xff]  ;;  %v779_v9 = vperm.slane %v761_v1, 0  ;;  %v2043_v11 = vsel %vm772_vm1, %v776_v63, %v773_v62  ;;  %v952_v14 = vld [vmem:[#allocation3 + $0x510] sm:$0xff]  ;;  %v945_v26 = vld [vmem:[#allocation3 + $0x4d8] sm:$0xff] }
  0x42   : > { %1075 = vmatpush.msrb.mxu0 %v934_v28  ;;  %1094 = vmatpush.msrb.mxu1 %v968_v29  ;;  %v2029_v0 = vld [vmem:[%s695_s15] sm:$0xff]  ;;  %v917_v27 = vld [vmem:[#allocation3 + $0x3f8] sm:$0xff]  ;;  %v979_v28 = vld [vmem:[#allocation3 + $0x5e8] sm:$0xff] }
  0x43   : > { %1116 = vmatpush.msrb.mxu2 %v805_v30  ;;  %1135 = vmatpush.msrb.mxu3 %v839_v31  ;;  %v954_v5 = vld [vmem:[#allocation3 + $0x520] sm:$0xff]  ;;  %v778_v8 = vrot.slane %v2029_v0, 7  ;;  %v881_v30 = vld [vmem:[#allocation3 + $0x2d8] sm:$0xff]  ;;  %v943_v31 = vld [vmem:[#allocation3 + $0x4c8] sm:$0xff] }
  0x44   : > { %1076 = vmatpush.msrb.mxu0 %v932_v32  ;;  %1095 = vmatpush.msrb.mxu1 %v966_v33  ;;  %v918_v12 = vld [vmem:[#allocation3 + $0x400] sm:$0xff]  ;;  %v782_v32 = vrot.slane %v2013_v52, 1  ;;  %v785_v33 = vperm.slane %v767_v25, 0  ;;  %v877_v44 = vld [vmem:[#allocation3 + $0x2b8] sm:$0xff]  ;;  %v907_v55 = vld [vmem:[#allocation3 + $0x3a8] sm:$0xff] }
  0x45   : > { %1117 = vmatpush.msrb.mxu2 %v803_v34  ;;  %1136 = vmatpush.msrb.mxu3 %v837_v35  ;;  %v2057_v18 = vsel %vm772_vm1, %v779_v9, %v778_v8  ;;  %v768_v22 = vld [vmem:[%s720_s28] sm:$0x1]  ;;  %v915_v34 = vld [vmem:[#allocation3 + $0x3e8] sm:$0xff]  ;;  %v977_v35 = vld [vmem:[#allocation3 + $0x5d8] sm:$0xff] }
  0x46   : > { %1077 = vmatpush.msrb.mxu0 %v930_v37  ;;  %1096 = vmatpush.msrb.mxu1 %v964_v38  ;;  %v950_v23 = vld [vmem:[#allocation3 + $0x500] sm:$0xff]  ;;  %v769_v29 = vsel %vm2050_vm2, %v768_v22, 0.0  ;;  %v941_v37 = vld [vmem:[#allocation3 + $0x4b8] sm:$0xff]  ;;  %v787_v38 = vrot.slane %v2029_v0, 1  ;;  %v903_v62 = vld [vmem:[#allocation3 + $0x388] sm:$0xff] }
  0x47   : > { %1118 = vmatpush.msrb.mxu2 %v801_v39  ;;  %1137 = vmatpush.msrb.mxu3 %v835_v40  ;;  %v788_v39 = vperm.slane %v769_v29, 0  ;;  %v913_v40 = vld [vmem:[#allocation3 + $0x3d8] sm:$0xff]  ;;  %v931_v63 = vld [vmem:[#allocation3 + $0x468] sm:$0xff] }
  0x48   : > { %1078 = vmatpush.msrb.mxu0 %v928_v42  ;;  %1097 = vmatpush.msrb.mxu1 %v962_v43  ;;  %v2071_v42 = vsel %vm781_vm3, %v785_v33, %v782_v32  ;;  %v939_v43 = vld [vmem:[#allocation3 + $0x4a8] sm:$0xff]  ;;  %v873_v53 = vld [vmem:[#allocation3 + $0x298] sm:$0xff]  ;;  %v1244_v33 = vld [vmem:[%s2232_s8 + $0x70] sm:$0xff] }
  0x49   : > { %1119 = vmatpush.msrb.mxu2 %v799_v46  ;;  %1138 = vmatpush.msrb.mxu3 %v833_v47  ;;  %v973_v46 = vld [vmem:[#allocation3 + $0x5b8] sm:$0xff]  ;;  %v2075_v47 = vsel %vm781_vm3, %v788_v39, %v787_v38  ;;  %v927_v8 = vld [vmem:[#allocation3 + $0x448] sm:$0xff]  ;;  %v1236_v39 = vld [vmem:[%s2232_s8 + $0x30] sm:$0xff] }
  0x4a   : > { %1079 = vmatpush.msrb.mxu0 %v926_v48  ;;  %1098 = vmatpush.msrb.mxu1 %v960_v49  ;;  %v875_v48 = vld [vmem:[#allocation3 + $0x2a8] sm:$0xff]  ;;  %v909_v49 = vld [vmem:[#allocation3 + $0x3b8] sm:$0xff] }
  0x4b   : > { %1120 = vmatpush.msrb.mxu2 %v797_v50  ;;  %1139 = vmatpush.msrb.mxu3 %v831_v51  ;;  %v937_v50 = vld [vmem:[#allocation3 + $0x498] sm:$0xff]  ;;  %v971_v51 = vld [vmem:[#allocation3 + $0x5a8] sm:$0xff] }
  0x4c   : > { %1080 = vmatpush.msrb.mxu0 %v924_v56  ;;  %1099 = vmatpush.msrb.mxu1 %v958_v57  ;;  %v935_v56 = vld [vmem:[#allocation3 + $0x488] sm:$0xff]  ;;  %v965_v1 = vld [vmem:[#allocation3 + $0x578] sm:$0xff] }
  0x4d   : > { %1121 = vmatpush.msrb.mxu2 %v795_v58  ;;  %1140 = vmatpush.msrb.mxu3 %v829_v59  ;;  %v871_v57 = vld [vmem:[#allocation3 + $0x288] sm:$0xff]  ;;  %v905_v58 = vld [vmem:[#allocation3 + $0x398] sm:$0xff] }
  0x4e   : > { %1081 = vmatpush.msrb.mxu0 %v922_v60  ;;  %1100 = vmatpush.msrb.mxu1 %v956_v61  ;;  %v933_v59 = vld [vmem:[#allocation3 + $0x478] sm:$0xff]  ;;  %v967_v60 = vld [vmem:[#allocation3 + $0x588] sm:$0xff] }
  0x4f   : > { %1122 = vmatpush.msrb.mxu2 %v793_v2  ;;  %1141 = vmatpush.msrb.mxu3 %v827_v3  ;;  %v869_v61 = vld [vmem:[#allocation3 + $0x278] sm:$0xff]  ;;  %v867_v2 = vld [vmem:[#allocation3 + $0x268] sm:$0xff] }
  0x50   : > { %1082 = vmatpush.msrb.mxu0 %v920_v4  ;;  %1101 = vmatpush.msrb.mxu1 %v954_v5  ;;  %v901_v3 = vld [vmem:[#allocation3 + $0x378] sm:$0xff]  ;;  %v963_v5 = vld [vmem:[#allocation3 + $0x568] sm:$0xff] }
  0x51   : > { %1123 = vmatpush.msrb.mxu2 %v791_v6  ;;  %1142 = vmatpush.msrb.mxu3 %v825_v7  ;;  %v929_v4 = vld [vmem:[#allocation3 + $0x458] sm:$0xff]  ;;  %v899_v7 = vld [vmem:[#allocation3 + $0x368] sm:$0xff] }
  0x52   : > { %1044 = vmatmul.f32.vlgmr.msra.gmra.mxu2 %v2043_v11  ;;  %1083 = vmatpush.msrb.mxu0 %v918_v12  ;;  %v865_v6 = vld [vmem:[#allocation3 + $0x258] sm:$0xff]  ;;  %v863_v10 = vld [vmem:[#allocation3 + $0x248] sm:$0xff] }
  0x53   : > { %1188 = vmatpush.msra.mxu2 %v949_v13  ;;  %1102 = vmatpush.msrb.mxu1 %v952_v14  ;;  %v961_v9 = vld [vmem:[#allocation3 + $0x558] sm:$0xff]  ;;  %v959_v14 = vld [vmem:[#allocation3 + $0x548] sm:$0xff] }
  0x54   : > { %1143 = vmatpush.msrb.mxu3 %v823_v15  ;;  %1004 = vmatmul.f32.vlgmr.msra.gmra.mxu0 %v2013_v52  ;;  %v897_v12 = vld [vmem:[#allocation3 + $0x358] sm:$0xff]  ;;  %v895_v16 = vld [vmem:[#allocation3 + $0x348] sm:$0xff] }
  0x55   : > { %1064 = vmatmul.f32.vlgmr.msra.gmra.mxu3 %v2057_v18  ;;  %1148 = vmatpush.msra.mxu0 %v885_v19  ;;  %v925_v13 = vld [vmem:[#allocation3 + $0x438] sm:$0xff]  ;;  %v923_v17 = vld [vmem:[#allocation3 + $0x428] sm:$0xff] }
  0x56   : > { %1189 = vmatpush.msra.mxu2 %v947_v20  ;;  %1208 = vmatpush.msra.mxu3 %v981_v21  ;;  %v861_v15 = vld [vmem:[#allocation3 + $0x238] sm:$0xff]  ;;  %v859_v20 = vld [vmem:[#allocation3 + $0x228] sm:$0xff] }
  0x57   : > { %1103 = vmatpush.msrb.mxu1 %v950_v23  ;;  %1149 = vmatpush.msra.mxu0 %v883_v24  ;;  %v957_v19 = vld [vmem:[#allocation3 + $0x538] sm:$0xff]  ;;  %v955_v23 = vld [vmem:[#allocation3 + $0x528] sm:$0xff] }
  0x58   : > { %1024 = vmatmul.f32.vlgmr.msra.gmra.mxu1 %v2029_v0  ;;  %1190 = vmatpush.msra.mxu2 %v945_v26  ;;  %v893_v21 = vld [vmem:[#allocation3 + $0x338] sm:$0xff]  ;;  %v891_v25 = vld [vmem:[#allocation3 + $0x328] sm:$0xff] }
  0x59   : > { %1168 = vmatpush.msra.mxu1 %v917_v27  ;;  %1209 = vmatpush.msra.mxu3 %v979_v28  ;;  %v921_v22 = vld [vmem:[#allocation3 + $0x418] sm:$0xff]  ;;  %v919_v26 = vld [vmem:[#allocation3 + $0x408] sm:$0xff] }
  0x5a   : > { %1150 = vmatpush.msra.mxu0 %v881_v30  ;;  %1191 = vmatpush.msra.mxu2 %v943_v31  ;;  %v857_v24 = vld [vmem:[#allocation3 + $0x218] sm:$0xff]  ;;  %v855_v28 = vld [vmem:[#allocation3 + $0x208] sm:$0xff] }
  0x5b   : > { %1169 = vmatpush.msra.mxu1 %v915_v34  ;;  %1210 = vmatpush.msra.mxu3 %v977_v35  ;;  %v953_v27 = vld [vmem:[#allocation3 + $0x518] sm:$0xff]  ;;  %v951_v30 = vld [vmem:[#allocation3 + $0x508] sm:$0xff]  ;;  %v1242_v35 = vld [vmem:[%s2232_s8 + $0x60] sm:$0xff] }
  0x5c   : > { %1151 = vmatpush.msra.mxu0 %v879_v36  ;;  %1192 = vmatpush.msra.mxu2 %v941_v37  ;;  %v889_v29 = vld [vmem:[#allocation3 + $0x318] sm:$0xff]  ;;  %v887_v31 = vld [vmem:[#allocation3 + $0x308] sm:$0xff]  ;;  %v1240_v36 = vld [vmem:[%s2232_s8 + $0x50] sm:$0xff] }
  0x5d   : > { %1170 = vmatpush.msra.mxu1 %v913_v40  ;;  %1211 = vmatpush.msra.mxu3 %v975_v41  ;;  %v1245_v32 = vld [vmem:[%s2232_s8 + $0x78] sm:$0xff]  ;;  %v1243_v34 = vld [vmem:[%s2232_s8 + $0x68] sm:$0xff]  ;;  %v1238_v37 = vld [vmem:[%s2232_s8 + $0x40] sm:$0xff] }
  0x5e   : > { %1084 = vmatmul.f32.vlgmr.msrb.gmra.mxu0 %v2071_v42  ;;  %1193 = vmatpush.msra.mxu2 %v939_v43  ;;  %v1237_v38 = vld [vmem:[%s2232_s8 + $0x38] sm:$0xff]  ;;  %v1235_v40 = vld [vmem:[%s2232_s8 + $0x28] sm:$0xff]  ;;  %v1234_v41 = vld [vmem:[%s2232_s8 + $0x20] sm:$0xff] }
  0x5f   : > { %1152 = vmatpush.msra.mxu0 %v877_v44  ;;  %1171 = vmatpush.msra.mxu1 %v911_v45  ;;  %v1232_v43 = vld [vmem:[%s2232_s8 + $0x10] sm:$0xff]  ;;  %v1261_v44 = vld [vmem:[%s2232_s8 + $0xf8] sm:$0xff]  ;;  %v1231_v45 = vld [vmem:[%s2232_s8 + $0x8] sm:$0xff] }
  0x60   : > { %1212 = vmatpush.msra.mxu3 %v973_v46  ;;  %1104 = vmatmul.f32.vlgmr.msrb.gmra.mxu1 %v2075_v47  ;;  %v1260_v46 = vld [vmem:[%s2232_s8 + $0xf0] sm:$0xff] }
  0x61   : > { %1153 = vmatpush.msra.mxu0 %v875_v48  ;;  %1172 = vmatpush.msra.mxu1 %v909_v49  ;;  %v1259_v48 = vld [vmem:[%s2232_s8 + $0xe8] sm:$0xff]  ;;  %v1258_v49 = vld [vmem:[%s2232_s8 + $0xe0] sm:$0xff] }
  0x62   : > { %1194 = vmatpush.msra.mxu2 %v937_v50  ;;  %1213 = vmatpush.msra.mxu3 %v971_v51  ;;  %v1257_v50 = vld [vmem:[%s2232_s8 + $0xd8] sm:$0xff]  ;;  %v1256_v51 = vld [vmem:[%s2232_s8 + $0xd0] sm:$0xff] }
  0x63   : > { %1154 = vmatpush.msra.mxu0 %v873_v53  ;;  %1173 = vmatpush.msra.mxu1 %v907_v55  ;;  %v1255_v53 = vld [vmem:[%s2232_s8 + $0xc8] sm:$0xff]  ;;  %v982_v55 = vld [vmem:[%s2231_s7] sm:$0x3] }
  0x64   : > { %1195 = vmatpush.msra.mxu2 %v935_v56  ;;  %1214 = vmatpush.msra.mxu3 %v969_v54  ;;  %v1254_v56 = vld [vmem:[%s2232_s8 + $0xc0] sm:$0xff]  ;;  %v984_v54 = vperm.slane %v982_v55, 0 }
  0x65   : > { %1155 = vmatpush.msra.mxu0 %v871_v57  ;;  %1174 = vmatpush.msra.mxu1 %v905_v58  ;;  %v1253_v57 = vld [vmem:[%s2232_s8 + $0xb8] sm:$0xff] }
  0x66   : > { %1196 = vmatpush.msra.mxu2 %v933_v59  ;;  %1215 = vmatpush.msra.mxu3 %v967_v60  ;;  %v1252_v60 = vld [vmem:[%s2232_s8 + $0xb0] sm:$0xff] }
  0x67   : > { %1156 = vmatpush.msra.mxu0 %v869_v61  ;;  %1175 = vmatpush.msra.mxu1 %v903_v62  ;;  %v1251_v61 = vld [vmem:[%s2232_s8 + $0xa8] sm:$0xff] }
  0x68   : > { %1197 = vmatpush.msra.mxu2 %v931_v63  ;;  %1216 = vmatpush.msra.mxu3 %v965_v1 }
  0x69   : > { %1157 = vmatpush.msra.mxu0 %v867_v2  ;;  %1176 = vmatpush.msra.mxu1 %v901_v3  ;;  %v1250_v2 = vld [vmem:[%s2232_s8 + $0xa0] sm:$0xff] }
  0x6a   : > { %1198 = vmatpush.msra.mxu2 %v929_v4  ;;  %1217 = vmatpush.msra.mxu3 %v963_v5  ;;  %v1249_v5 = vld [vmem:[%s2232_s8 + $0x98] sm:$0xff] }
  0x6b   : > { %1158 = vmatpush.msra.mxu0 %v865_v6  ;;  %1177 = vmatpush.msra.mxu1 %v899_v7  ;;  %v1248_v7 = vld [vmem:[%s2232_s8 + $0x90] sm:$0xff] }
  0x6c   : > { %1199 = vmatpush.msra.mxu2 %v927_v8  ;;  %1218 = vmatpush.msra.mxu3 %v961_v9 }
  0x6d   : > { %1124 = vmatmul.f32.vlgmr.msrb.gmra.mxu2 %v2013_v52  ;;  %1159 = vmatpush.msra.mxu0 %v863_v10  ;;  %v1247_v10 = vld [vmem:[%s2232_s8 + $0x88] sm:$0xff] }
  0x6e   : > { %1178 = vmatpush.msra.mxu1 %v897_v12  ;;  %1200 = vmatpush.msra.mxu2 %v925_v13 }
  0x6f   : > { %1219 = vmatpush.msra.mxu3 %v959_v14  ;;  %1160 = vmatpush.msra.mxu0 %v861_v15  ;;  %v1246_v14 = vld [vmem:[%s2232_s8 + $0x80] sm:$0xff] }
  0x70   : > { %1144 = vmatmul.f32.vlgmr.msrb.gmra.mxu3 %v2029_v0  ;;  %1179 = vmatpush.msra.mxu1 %v895_v16  ;;  %v985_v16 = vperm.slane %v982_v55, 1 }
  0x71   : > { %1201 = vmatpush.msra.mxu2 %v923_v17  ;;  %1220 = vmatpush.msra.mxu3 %v957_v19 }
  0x72   : > { %1161 = vmatpush.msra.mxu0 %v859_v20  ;;  %1180 = vmatpush.msra.mxu1 %v893_v21 }
  0x73   : > { %1202 = vmatpush.msra.mxu2 %v921_v22  ;;  %1221 = vmatpush.msra.mxu3 %v955_v23 }
  0x74   : > { %1162 = vmatpush.msra.mxu0 %v857_v24  ;;  %1181 = vmatpush.msra.mxu1 %v891_v25 }
  0x75   : > { %1203 = vmatpush.msra.mxu2 %v919_v26  ;;  %1222 = vmatpush.msra.mxu3 %v953_v27 }
  0x76   : > { %1204 = vmatmul.f32.vlgmr.msra.gmra.mxu2 %v2071_v42  ;;  %1163 = vmatpush.msra.mxu0 %v855_v28  ;;  %v1233_v42 = vld [vmem:[%s2232_s8 + $0x18] sm:$0xff] }
  0x77   : > { %1182 = vmatpush.msra.mxu1 %v889_v29  ;;  %1223 = vmatpush.msra.mxu3 %v951_v30 }
  0x78   : > { %1164 = vmatmul.f32.vlgmr.msra.gmra.mxu0 %v2043_v11  ;;  %1224 = vmatmul.f32.vlgmr.msra.gmra.mxu3 %v2075_v47  ;;  %v1241_v11 = vld [vmem:[%s2232_s8 + $0x58] sm:$0xff]  ;;  %v1230_v47 = vld [vmem:[%s2232_s8] sm:$0xff] }
  0x79   : > { %1183 = vmatpush.msra.mxu1 %v887_v31  ;;  %1268 = vmatpush.msrb.mxu0 %v1245_v32  ;;  %v1735_v31 = vld [vmem:[%s2233_s9] ss:$0 sm:$0xff] }
  0x7a   : > { %1184 = vmatmul.f32.vlgmr.msra.gmra.mxu1 %v2057_v18  ;;  %v1239_v18 = vld [vmem:[%s2232_s8 + $0x48] sm:$0xff] }
  0x7b   : > { %1269 = vmatpush.msrb.mxu0 %v1244_v33  ;;  %1288 = vmatpush.msrb.mxu1 %v1261_v44 }
  0x7d   : > { %1270 = vmatpush.msrb.mxu0 %v1243_v34  ;;  %1289 = vmatpush.msrb.mxu1 %v1260_v46 }
  0x7f   : > { %1271 = vmatpush.msrb.mxu0 %v1242_v35  ;;  %1290 = vmatpush.msrb.mxu1 %v1259_v48 }
  0x81   : > { %1272 = vmatpush.msrb.mxu0 %v1241_v11  ;;  %1291 = vmatpush.msrb.mxu1 %v1258_v49 }
  0x83   : > { %1273 = vmatpush.msrb.mxu0 %v1240_v36  ;;  %1292 = vmatpush.msrb.mxu1 %v1257_v50 }
  0x85   : > { %1274 = vmatpush.msrb.mxu0 %v1239_v18  ;;  %1293 = vmatpush.msrb.mxu1 %v1256_v51  ;;  %v1823_v18 = vmov 128.0  }
  0x86   : > { %1740 = vrcp.f32 %v1823_v18 }
  0x87   : > { %1275 = vmatpush.msrb.mxu0 %v1238_v37  ;;  %1294 = vmatpush.msrb.mxu1 %v1255_v53 }
  0x89   : > { %1276 = vmatpush.msrb.mxu0 %v1237_v38  ;;  %1295 = vmatpush.msrb.mxu1 %v1254_v56 }
  0x8b   : > { %1277 = vmatpush.msrb.mxu0 %v1236_v39  ;;  %1296 = vmatpush.msrb.mxu1 %v1253_v57 }
  0x8c   : > { %v1741_v37 = vpop.eup %1740 }
  0x8d   : > { %1278 = vmatpush.msrb.mxu0 %v1235_v40  ;;  %1297 = vmatpush.msrb.mxu1 %v1252_v60  ;;  %v1312_v38 = vmul.f32 128.0, %v1741_v37  ;;  %vm1316_vm4 = vweird.f32 %v1741_v37 }
  0x8f   : > { %1279 = vmatpush.msrb.mxu0 %v1234_v41  ;;  %1298 = vmatpush.msrb.mxu1 %v1251_v61  ;;  %v1313_v39 = vsub.f32 1.0, %v1312_v38 }
  0x91   : > { %1280 = vmatpush.msrb.mxu0 %v1233_v42  ;;  %1299 = vmatpush.msrb.mxu1 %v1250_v2  ;;  %v1314_v40 = vmul.f32 %v1741_v37, %v1313_v39 }
  0x93   : > { %1281 = vmatpush.msrb.mxu0 %v1232_v43  ;;  %1300 = vmatpush.msrb.mxu1 %v1249_v5  ;;  %v1315_v41 = vadd.f32 %v1741_v37, %v1314_v40 }
  0x95   : > { %1282 = vmatpush.msrb.mxu0 %v1231_v45  ;;  %1301 = vmatpush.msrb.mxu1 %v1248_v7  ;;  %v1317_v42 = vsel %vm1316_vm4, %v1741_v37, %v1315_v41 }
  0x97   : > { %1283 = vmatpush.msrb.mxu0 %v1230_v47  ;;  %1302 = vmatpush.msrb.mxu1 %v1247_v10 }
  0x99   : > { %1303 = vmatpush.msrb.mxu1 %v1246_v14  ;;  %v1739_v14 = vld [vmem:[%s2233_s9 + $0x4] ss:$0 sm:$0xff] }
  0xd1   : > { %v1005_v58 = vpop.f32.mrf.mxu0 }
  0xd2   : > { %v1006_v59 = vadd.f32 %v1005_v58, %v984_v54 }
  0xd5   : > { %v1025_v62 = vpop.f32.mrf.mxu1  ;;  %v1045_v63 = vpop.f32.mrf.mxu2 }
  0xd6   : > { %v1026_v1 = vadd.f32 %v1025_v62, %v1006_v59 }
  0xd8   : > { %v1046_v3 = vadd.f32 %v1045_v63, %v1026_v1  ;;  %v1065_v4 = vpop.f32.mrf.mxu3  ;;  %v1736_v1 = vld [vmem:[%s2233_s9 + $0x1] ss:$0 sm:$0xff] }
  0xda   : > { %v1066_v6 = vadd.f32 %v1065_v4, %v1046_v3  ;;  %v1737_v4 = vld [vmem:[%s2233_s9 + $0x2] ss:$0 sm:$0xff] }
  0xdb   : > { %v1085_v8 = vpop.f32.mrf.mxu0 }
  0xdc   : > { %v1086_v9 = vadd.f32 %v1085_v8, %v1066_v6 }
  0xdd   : > { %v1105_v12 = vpop.f32.mrf.mxu1 }
  0xde   : > { %v1106_v13 = vadd.f32 %v1105_v12, %v1086_v9  ;;  %v1738_v12 = vld [vmem:[%s2233_s9 + $0x3] ss:$0 sm:$0xff] }
  0xe0   : > { %v1228_v15 = vmax.f32 %v1106_v13, 0.0 }
  0xe2   : > { %1284 = vmatmul.f32.vlgmr.msrb.gmra.mxu0 %v1228_v15 }
  0xf0   : > { %v1125_v17 = vpop.f32.mrf.mxu2 }
  0xf1   : > { %v1126_v19 = vadd.f32 %v1125_v17, %v985_v16 }
  0xf3   : > { %v1145_v20 = vpop.f32.mrf.mxu3 }
  0xf4   : > { %v1146_v21 = vadd.f32 %v1145_v20, %v1126_v19 }
  0xf5   : > { %v1165_v22 = vpop.f32.mrf.mxu0 }
  0xf6   : > { %v1166_v23 = vadd.f32 %v1165_v22, %v1146_v21 }
  0xf7   : > { %v1185_v24 = vpop.f32.mrf.mxu1 }
  0xf8   : > { %v1186_v25 = vadd.f32 %v1185_v24, %v1166_v23 }
  0xf9   : > { %v1205_v26 = vpop.f32.mrf.mxu2 }
  0xfa   : > { %v1206_v27 = vadd.f32 %v1205_v26, %v1186_v25 }
  0xfb   : > { %v1225_v28 = vpop.f32.mrf.mxu3 }
  0xfc   : > { %v1226_v29 = vadd.f32 %v1225_v28, %v1206_v27 }
  0xfe   : > { %v1229_v30 = vmax.f32 %v1226_v29, 0.0 }
 0x100   : > { %1304 = vmatmul.f32.vlgmr.msrb.gmra.mxu1 %v1229_v30 }
 0x15f   : > { %v1285_v32 = vpop.f32.mrf.mxu0 }
 0x160   : > { %v1286_v33 = vadd.f32 %v1735_v31, %v1285_v32 }
 0x17d   : > { %v1305_v34 = vpop.f32.mrf.mxu1 }
 0x17e   : > { %v1306_v35 = vadd.f32 %v1305_v34, %v1286_v33 }
 0x180   : > { %v1308_v11 = vadd.f32 %v1306_v35, %v2013_v52  ;;  %v1341_v36 = vadd.f32 %v1306_v35, %v2029_v0 }
 0x182   : > { %1309 = vadd.xlane.f32.xlu0 %v1308_v11 }
 0x18a   : > { %1342 = vadd.xlane.f32.xlu0 %v1341_v36 }
 0x1f5   : > { %v1310_v43 = vpop.xlane.xlu0 %1309 }
 0x1f6   : > { %v1318_v44 = vmul.f32 %v1317_v42, %v1310_v43 }
 0x1f8   : > { %v1319_v45 = vsub.f32 %v1308_v11, %v1318_v44 }
 0x1fa   : > { %v1320_v46 = vmul.f32 %v1319_v45, %v1319_v45 }
 0x1fc   : > { %1321 = vadd.xlane.f32.xlu1 %v1320_v46 }
 0x1fd   : > { %v1343_v47 = vpop.xlane.xlu0 %1342 }
 0x1fe   : > { %v1344_v52 = vmul.f32 %v1343_v47, %v1317_v42 }
 0x200   : > { %v1345_v48 = vsub.f32 %v1341_v36, %v1344_v52 }
 0x202   : > { %v1346_v49 = vmul.f32 %v1345_v48, %v1345_v48 }
 0x204   : > { %1347 = vadd.xlane.f32.xlu1 %v1346_v49 }
 0x26f   : > { %v1322_v0 = vpop.xlane.xlu1 %1321 }
 0x270   : > { %v1323_v50 = vmul.f32 %v1322_v0, %v1317_v42 }
 0x272   : > { %v1324_v51 = vadd.f32 1e-12, %v1323_v50 }
 0x274   : > { %1742 = vrsqrt.f32 %v1324_v51  ;;  %vm1331_vm6 = vweird.f32 %v1324_v51 }
 0x277   : > { %v1348_v53 = vpop.xlane.xlu1 %1347 }
 0x278   : > { %v1349_v55 = vmul.f32 %v1348_v53, %v1317_v42 }
 0x27a   : > { %v1743_v56 = vpop.eup %1742  ;;  %v1350_v54 = vadd.f32 1e-12, %v1349_v55 }
 0x27b   : > { %v1326_v57 = vmul.f32 %v1743_v56, %v1324_v51  ;;  %vm1332_vm5 = vweird.f32 %v1743_v56 }
 0x27c   : > { %1744 = vrsqrt.f32 %v1350_v54  ;;  %vm1333_vm7 = vmor %vm1331_vm6, %vm1332_vm5  ;;  %vm1357_vm9 = vweird.f32 %v1350_v54 }
 0x27d   : > { %v1327_v58 = vmul.f32 %v1743_v56, %v1326_v57 }
 0x27f   : > { %v1328_v59 = vmul.f32 0.5, %v1327_v58 }
 0x281   : > { %v1329_v60 = vsub.f32 1.5, %v1328_v59 }
 0x282   : > { %v1745_v61 = vpop.eup %1744 }
 0x283   : > { %v1330_v62 = vmul.f32 %v1743_v56, %v1329_v60  ;;  %v1352_v63 = vmul.f32 %v1745_v61, %v1350_v54  ;;  %vm1358_vm8 = vweird.f32 %v1745_v61 }
 0x284   : > { %vm1359_vm10 = vmor %vm1357_vm9, %vm1358_vm8 }
 0x285   : > { %v1334_v2 = vsel %vm1333_vm7, %v1743_v56, %v1330_v62  ;;  %v1353_v3 = vmul.f32 %v1745_v61, %v1352_v63 }
 0x286   : > { %v1335_v5 = vmul.f32 %v1334_v2, %v1319_v45 }
 0x287   : > { %v1354_v6 = vmul.f32 0.5, %v1353_v3 }
 0x288   : > { %v1337_v7 = vmul.f32 %v1736_v1, %v1335_v5 }
 0x289   : > { %v1355_v8 = vsub.f32 1.5, %v1354_v6 }
 0x28a   : > { %v1339_v9 = vadd.f32 %v1737_v4, %v1337_v7 }
 0x28b   : > { %v1356_v10 = vmul.f32 %v1745_v61, %v1355_v8 }
 0x28c   : > { %1340 = vst [vmem:[%s743_s18] sm:$0xff] %v1339_v9 }
 0x28d   : > { %v1360_v13 = vsel %vm1359_vm10, %v1745_v61, %v1356_v10 }
 0x28e   : > { %v1361_v15 = vmul.f32 %v1360_v13, %v1345_v48 }
 0x290   : > { %v1363_v16 = vmul.f32 %v1738_v12, %v1361_v15 }
 0x292   : > { %v1365_v17 = vadd.f32 %v1739_v14, %v1363_v16 }
 0x294   : > { %1366 = vst [vmem:[%s751_s14] sm:$0xff] %v1365_v17 }
 0x295 PF: > { %s23_s21 = sadd.s32 1, %s1818_s21   ;;  %s2243_s17 = smov %s1810_s19 }
 0x296   : > { %p20_p0 = scmp.ge.s32.totalorder %s23_s21, 8   ;;  %s2244_s18 = smov %s1814_s20 }
 0x297   : > { %s2245_s19 = smov %s2248_s23  ;;  %s2246_s20 = smov %s2252_s24 }
 0x298   :  { %22 = sbr.rel (!%p20_p0) target bundleno = 3 (0x3), region = 129 }
 0x29d   :  { %1416 = vsyncpa [#allocation4], 1 }
 0x29e   :  { %1418 = vsyncpa [#allocation4 + $0x1], 1 }

// kernel: _lambda_.1
= control target key start
LH: loop header
LB: loop body
LE: loop exit
PB: predicated region body
PF: predicated region fallthrough
CT: control target
= control target key end

     0   :  { %17 = vsyncpa [#allocation4], 0  ;;  %s1884_s17 = smov 0   ;;  %s1886_s18 = smov 0   ;;  %s2224_s0 = inlined_call_operand.vmem [shape: f32[2,24,128], index: 0, kind: input, shape index: {}, may-alias: {0,1,2}]   ;;  %s2225_s1 = inlined_call_operand.vmem [shape: f32[2,24,128], index: 1, kind: input, shape index: {}, may-alias: {0,1,2}]   ;;  %s2226_s2 = inlined_call_operand.vmem [shape: f32[2,24,128], index: 2, kind: input, shape index: {}, may-alias: {0,1,2}]   ;;  %s2227_s3 = inlined_call_operand.vmem [shape: f32[2,24,128], index: 3, kind: input, shape index: {}, may-alias: {3,4,5}]   ;;  %s2228_s4 = inlined_call_operand.vmem [shape: f32[2,24,128], index: 4, kind: input, shape index: {}, may-alias: {3,4,5}]   ;;  %s2229_s5 = inlined_call_operand.vmem [shape: f32[2,24,128], index: 5, kind: input, shape index: {}, may-alias: {3,4,5}]   ;;  %s2230_s6 = inlined_call_operand.hbm [shape: f32[768,256], index: 6, kind: input, shape index: {}]   ;;  %s2231_s7 = inlined_call_operand.vmem [shape: f32[1,256], index: 7, kind: input, shape index: {}]   ;;  %s2232_s8 = inlined_call_operand.vmem [shape: f32[256,128], index: 8, kind: input, shape index: {}]   ;;  %s2233_s9 = inlined_call_operand.vmem [shape: f32[8,128], index: 9, kind: input, shape index: {}]   ;;  %s2234_s10 = inlined_call_operand.vmem [shape: f32[2,24,128], index: 10, kind: output, shape index: {0}]   ;;  %s2235_s11 = inlined_call_operand.vmem [shape: f32[2,24,128], index: 11, kind: output, shape index: {1}]  }
   0x1   :  { %s1888_s19 = smov 0   ;;  %s1890_s20 = smov 0  }
   0x2   :  { %s1892_s21 = smov 0  }
   0x3 LB: > { %s1635_s22 = sadd.s32 4294967295, %s1818_s21   ;;  %s38_s23 = sadd.s32 1, %s1810_s19  ;;  %s1818_s21 = sphi %s1892_s21, %s23_s21   ;;  %s1814_s20 = sphi %s1890_s20, %s2246_s20   ;;  %s1810_s19 = sphi %s1888_s19, %s2245_s19   ;;  %s1806_s18 = sphi %s1886_s18, %s2244_s18   ;;  %s1802_s17 = sphi %s1884_s17, %s2243_s17  }
   0x4   : > { %p40_p0 = scmp.ge.s32.totalorder %s38_s23, 3  ;;  %s42_s24 = sadd.s32 1, %s1814_s20 }
   0x5   : > { %p1641_p1 = scmp.ge.s32.totalorder %s1818_s21, 1  ;;  %p394_p2 = scmp.lt.s32.totalorder %s1818_s21, 7 }
   0x6   : > { %s2248_s23 = smov (%p40_p0, %s38_s23), 0  ;;  %s2250_s24 = smov (!%p40_p0, %s42_s24), %s1814_s20 }
   0x7   : > { %p1917_p3 = pnand %p1641_p1, %p394_p2  ;;  %p44_p4 = scmp.ge.s32.totalorder %s2250_s24, 2 }
   0x8   : > { %p1921_p5 = scmp.eq.s32.totalorder %s1635_s22, 0  ;;  %s408_s29 = sshll.u32 %s2230_s6, 4  ;;  %s409_s29 = int_to_ptr.hbm [resolvable:$true] %s408_s29 }
   0x9   : > { %p1685_p6 = pneg %p1917_p3  ;;  %s2252_s24 = smov (%p44_p4, %s2250_s24), 0 }
   0xa   : > { %s1820_s30 = smov [#allocation3]   ;;  %s1821_s13 = smov 256  }
   0xb   : > { %s410_s12 = sshll.u32 %s1820_s30, 4  ;;  %p1686_p7 = pnand %p1921_p5, %p1685_p6  ;;  %s411_s12 = int_to_ptr.vmem [resolvable:$true] %s410_s12 }
   0xc   : > { %s1822_s14 = smov 16   ;;  %536 = sbr.rel (%p1917_p3) target bundleno = 661 (0x295), region = 60 }
   0xd   : > { %1688 = dma.hbm_to_vmem [thread:$0]  (!%p1686_p7), %s409_s29, 24576, %s411_s12, [#allocation4], %s1821_s13, %s1821_s13, %s1822_s14  }
  0x11   : > { %1797 = dma.done.wait (%p1921_p5), [#allocation4], 24576  }
  0x12   : > { %1799 = vsyncadd (%p1921_p5), [#allocation4], 4294942720  ;;  %v884_v0 = vld [vmem:[#allocation3 + $0x2f0] sm:$0xff]  ;;  %v882_v2 = vld [vmem:[#allocation3 + $0x2e0] sm:$0xff]  ;;  %s1941_s15 = sadd.s32 4294967295, %s1802_s17  ;;  %p652_p8 = scmp.lt.s32.totalorder %s1806_s18, 1 }
  0x13   : > { %v820_v1 = vld [vmem:[#allocation3 + $0xf0] sm:$0xff]  ;;  %1028 = vmatpush.msra.mxu2 %v884_v0  ;;  %v818_v4 = vld [vmem:[#allocation3 + $0xe0] sm:$0xff]  ;;  %p661_p9 = scmp.gt.s32.totalorder %s1941_s15, 0  ;;  %v821_v62 = vld [vmem:[#allocation3 + $0xf8] sm:$0xff]  ;;  %p1650_p10 = scmp.lt.s32.totalorder %s1941_s15, 2 }
  0x14   : > { %988 = vmatpush.msra.mxu0 %v820_v1  ;;  %v916_v3 = vld [vmem:[#allocation3 + $0x3f0] sm:$0xff]  ;;  %v914_v7 = vld [vmem:[#allocation3 + $0x3e0] sm:$0xff]  ;;  %v853_v1 = vld [vmem:[#allocation3 + $0x1f8] sm:$0xff]  ;;  %s2254_s18 = smov (!%p652_p8, %s1806_s18), 1  ;;  %p654_p11 = scmp.lt.s32.totalorder %s1802_s17, 2 }
  0x15   : > { %v852_v5 = vld [vmem:[#allocation3 + $0x1f0] sm:$0xff]  ;;  %1048 = vmatpush.msra.mxu3 %v916_v3  ;;  %1029 = vmatpush.msra.mxu2 %v882_v2  ;;  %v850_v9 = vld [vmem:[#allocation3 + $0x1e0] sm:$0xff]  ;;  %v819_v2 = vld [vmem:[#allocation3 + $0xe8] sm:$0xff]  ;;  %s662_s16 = scalar_select %p661_p9, %s1941_s15, 0 }
  0x16   : > { %1008 = vmatpush.msra.mxu1 %v852_v5  ;;  %v880_v6 = vld [vmem:[#allocation3 + $0x2d0] sm:$0xff]  ;;  %989 = vmatpush.msra.mxu0 %v818_v4  ;;  %v878_v11 = vld [vmem:[#allocation3 + $0x2c0] sm:$0xff]  ;;  %s1953_s22 = smul.u32 3, %s2254_s18  ;;  %s674_s25 = sadd.s32 1, %s1802_s17 }
  0x17   : > { %v816_v8 = vld [vmem:[#allocation3 + $0xd0] sm:$0xff]  ;;  %1049 = vmatpush.msra.mxu3 %v914_v7  ;;  %v814_v12 = vld [vmem:[#allocation3 + $0xc0] sm:$0xff]  ;;  %1030 = vmatpush.msra.mxu2 %v880_v6  ;;  %v817_v6 = vld [vmem:[#allocation3 + $0xd8] sm:$0xff]  ;;  %s2256_s16 = smov (!%p1650_p10, %s662_s16), 2  ;;  %p754_p12 = scmp.gt.s32.totalorder %s1802_s17, 0 }
  0x18   : > { %v912_v10 = vld [vmem:[#allocation3 + $0x3d0] sm:$0xff]  ;;  %1009 = vmatpush.msra.mxu1 %v850_v9  ;;  %990 = vmatpush.msra.mxu0 %v816_v8  ;;  %v910_v14 = vld [vmem:[#allocation3 + $0x3c0] sm:$0xff]  ;;  %v851_v7 = vld [vmem:[#allocation3 + $0x1e8] sm:$0xff]  ;;  %s1964_s18 = scalar_select %p654_p11, %s1802_s17, 2 }
  0x19   : > { %v848_v13 = vld [vmem:[#allocation3 + $0x1d0] sm:$0xff]  ;;  %v846_v15 = vld [vmem:[#allocation3 + $0x1c0] sm:$0xff]  ;;  %1050 = vmatpush.msra.mxu3 %v912_v10  ;;  %1031 = vmatpush.msra.mxu2 %v878_v11  ;;  %v815_v10 = vld [vmem:[#allocation3 + $0xc8] sm:$0xff]  ;;  %s668_s26 = sadd.s32 %s1953_s22, %s2256_s16  ;;  %p1970_p13 = scmp.lt.s32.totalorder %s674_s25, 2 }
  0x1a   : > { %1010 = vmatpush.msra.mxu1 %v848_v13  ;;  %v876_v16 = vld [vmem:[#allocation3 + $0x2b0] sm:$0xff]  ;;  %991 = vmatpush.msra.mxu0 %v814_v12  ;;  %v874_v20 = vld [vmem:[#allocation3 + $0x2a0] sm:$0xff]  ;;  %v849_v11 = vld [vmem:[#allocation3 + $0x1d8] sm:$0xff]  ;;  %s1976_s28 = scalar_select %p754_p12, 1, 0 }
  0x1b   : > { %v812_v17 = vld [vmem:[#allocation3 + $0xb0] sm:$0xff]  ;;  %1051 = vmatpush.msra.mxu3 %v910_v14  ;;  %v810_v21 = vld [vmem:[#allocation3 + $0xa0] sm:$0xff]  ;;  %1032 = vmatpush.msra.mxu2 %v876_v16  ;;  %v813_v14 = vld [vmem:[#allocation3 + $0xb8] sm:$0xff]  ;;  %s657_s29 = sadd.s32 %s1953_s22, %s1964_s18  ;;  %s1980_s30 = sshll.u32 %s668_s26, 3 }
  0x1c   : > { %v908_v18 = vld [vmem:[#allocation3 + $0x3b0] sm:$0xff]  ;;  %1011 = vmatpush.msra.mxu1 %v846_v15  ;;  %992 = vmatpush.msra.mxu0 %v812_v17  ;;  %v906_v22 = vld [vmem:[#allocation3 + $0x3a0] sm:$0xff]  ;;  %v847_v15 = vld [vmem:[#allocation3 + $0x1c8] sm:$0xff]  ;;  %s2258_s25 = smov (!%p1970_p13, %s674_s25), 2  ;;  %s1988_s12 = sshll.u32 %s657_s29, 3 }
  0x1d   : > { %v844_v19 = vld [vmem:[#allocation3 + $0x1b0] sm:$0xff]  ;;  %v842_v23 = vld [vmem:[#allocation3 + $0x1a0] sm:$0xff]  ;;  %1052 = vmatpush.msra.mxu3 %v908_v18  ;;  %1033 = vmatpush.msra.mxu2 %v874_v20  ;;  %v811_v18 = vld [vmem:[#allocation3 + $0xa8] sm:$0xff]  ;;  %s670_s15 = scalar_lea.vmem %s2225_s1, %s1980_s30  ;;  %s2260_s25 = smov (!%p1970_p13, %s2258_s25), 2 }
  0x1e   : > { %1012 = vmatpush.msra.mxu1 %v844_v19  ;;  %v872_v24 = vld [vmem:[#allocation3 + $0x290] sm:$0xff]  ;;  %993 = vmatpush.msra.mxu0 %v810_v21  ;;  %v870_v28 = vld [vmem:[#allocation3 + $0x280] sm:$0xff]  ;;  %v845_v19 = vld [vmem:[#allocation3 + $0x1b8] sm:$0xff]  ;;  %s659_s26 = scalar_lea.vmem %s2224_s0, %s1988_s12  ;;  %s706_s29 = scalar_lea.vmem %s2228_s4, %s1980_s30 }
  0x1f   : > { %v808_v25 = vld [vmem:[#allocation3 + $0x90] sm:$0xff]  ;;  %1053 = vmatpush.msra.mxu3 %v906_v22  ;;  %v806_v29 = vld [vmem:[#allocation3 + $0x80] sm:$0xff]  ;;  %1034 = vmatpush.msra.mxu2 %v872_v24  ;;  %v809_v22 = vld [vmem:[#allocation3 + $0x98] sm:$0xff]  ;;  %s2011_s13 = sadd.s32 %s1953_s22, %s2260_s25  ;;  %s751_s14 = scalar_lea.vmem %s2235_s11, %s1988_s12 }
  0x20   : > { %v904_v26 = vld [vmem:[#allocation3 + $0x390] sm:$0xff]  ;;  %1013 = vmatpush.msra.mxu1 %v842_v23  ;;  %994 = vmatpush.msra.mxu0 %v808_v25  ;;  %v902_v30 = vld [vmem:[#allocation3 + $0x380] sm:$0xff]  ;;  %v843_v23 = vld [vmem:[#allocation3 + $0x1a8] sm:$0xff]  ;;  %s2025_s22 = scalar_select %p654_p11, 1, 0 }
  0x21   : > { %v840_v27 = vld [vmem:[#allocation3 + $0x190] sm:$0xff]  ;;  %v838_v31 = vld [vmem:[#allocation3 + $0x180] sm:$0xff]  ;;  %1054 = vmatpush.msra.mxu3 %v904_v26  ;;  %1035 = vmatpush.msra.mxu2 %v870_v28  ;;  %v807_v26 = vld [vmem:[#allocation3 + $0x88] sm:$0xff]  ;;  %s1659_s25 = sshll.u32 %s2011_s13, 3 }
  0x22   : > { %1014 = vmatpush.msra.mxu1 %v840_v27  ;;  %v868_v32 = vld [vmem:[#allocation3 + $0x270] sm:$0xff]  ;;  %995 = vmatpush.msra.mxu0 %v806_v29  ;;  %v866_v36 = vld [vmem:[#allocation3 + $0x260] sm:$0xff]  ;;  %v841_v27 = vld [vmem:[#allocation3 + $0x198] sm:$0xff]  ;;  %s684_s18 = scalar_lea.vmem %s2226_s2, %s1659_s25 }
  0x23   : > { %v804_v33 = vld [vmem:[#allocation3 + $0x70] sm:$0xff]  ;;  %1055 = vmatpush.msra.mxu3 %v902_v30  ;;  %v802_v37 = vld [vmem:[#allocation3 + $0x60] sm:$0xff]  ;;  %1036 = vmatpush.msra.mxu2 %v868_v32  ;;  %v805_v30 = vld [vmem:[#allocation3 + $0x78] sm:$0xff] }
  0x24   : > { %v900_v34 = vld [vmem:[#allocation3 + $0x370] sm:$0xff]  ;;  %1015 = vmatpush.msra.mxu1 %v838_v31  ;;  %996 = vmatpush.msra.mxu0 %v804_v33  ;;  %v898_v38 = vld [vmem:[#allocation3 + $0x360] sm:$0xff]  ;;  %v839_v31 = vld [vmem:[#allocation3 + $0x188] sm:$0xff] }
  0x25   : > { %v836_v35 = vld [vmem:[#allocation3 + $0x170] sm:$0xff]  ;;  %v834_v39 = vld [vmem:[#allocation3 + $0x160] sm:$0xff]  ;;  %1056 = vmatpush.msra.mxu3 %v900_v34  ;;  %1037 = vmatpush.msra.mxu2 %v866_v36  ;;  %v803_v34 = vld [vmem:[#allocation3 + $0x68] sm:$0xff]  ;;  %v757_v36 = vstv %s1976_s28  ;;  %s720_s28 = scalar_lea.vmem %s2229_s5, %s1659_s25 }
  0x26   : > { %1016 = vmatpush.msra.mxu1 %v836_v35  ;;  %v864_v40 = vld [vmem:[#allocation3 + $0x250] sm:$0xff]  ;;  %997 = vmatpush.msra.mxu0 %v802_v37  ;;  %v862_v44 = vld [vmem:[#allocation3 + $0x240] sm:$0xff]  ;;  %v837_v35 = vld [vmem:[#allocation3 + $0x178] sm:$0xff]  ;;  %vm2002_vm0 = vcmp.eq.s32.totalorder %v757_v36, 1 }
  0x27   : > { %v800_v41 = vld [vmem:[#allocation3 + $0x50] sm:$0xff]  ;;  %1057 = vmatpush.msra.mxu3 %v898_v38  ;;  %v798_v45 = vld [vmem:[#allocation3 + $0x40] sm:$0xff]  ;;  %1038 = vmatpush.msra.mxu2 %v864_v40  ;;  %v835_v40 = vld [vmem:[#allocation3 + $0x168] sm:$0xff] }
  0x28   : > { %v896_v42 = vld [vmem:[#allocation3 + $0x350] sm:$0xff]  ;;  %1017 = vmatpush.msra.mxu1 %v834_v39  ;;  %998 = vmatpush.msra.mxu0 %v800_v41  ;;  %v894_v46 = vld [vmem:[#allocation3 + $0x340] sm:$0xff]  ;;  %v801_v39 = vld [vmem:[#allocation3 + $0x58] sm:$0xff]  ;;  %v770_v41 = vlaneseq }
  0x29   : > { %v832_v43 = vld [vmem:[#allocation3 + $0x150] sm:$0xff]  ;;  %v830_v47 = vld [vmem:[#allocation3 + $0x140] sm:$0xff]  ;;  %1058 = vmatpush.msra.mxu3 %v896_v42  ;;  %1039 = vmatpush.msra.mxu2 %v862_v44  ;;  %v879_v36 = vld [vmem:[#allocation3 + $0x2c8] sm:$0xff] }
  0x2a   : > { %1018 = vmatpush.msra.mxu1 %v832_v43  ;;  %v860_v48 = vld [vmem:[#allocation3 + $0x230] sm:$0xff]  ;;  %999 = vmatpush.msra.mxu0 %v798_v45  ;;  %v858_v52 = vld [vmem:[#allocation3 + $0x220] sm:$0xff]  ;;  %v911_v45 = vld [vmem:[#allocation3 + $0x3c8] sm:$0xff] }
  0x2b   : > { %v796_v49 = vld [vmem:[#allocation3 + $0x30] sm:$0xff]  ;;  %1059 = vmatpush.msra.mxu3 %v894_v46  ;;  %v794_v53 = vld [vmem:[#allocation3 + $0x20] sm:$0xff]  ;;  %1040 = vmatpush.msra.mxu2 %v860_v48  ;;  %v799_v46 = vld [vmem:[#allocation3 + $0x48] sm:$0xff] }
  0x2c   : > { %v892_v50 = vld [vmem:[#allocation3 + $0x330] sm:$0xff]  ;;  %1019 = vmatpush.msra.mxu1 %v830_v47  ;;  %1000 = vmatpush.msra.mxu0 %v796_v49  ;;  %v890_v54 = vld [vmem:[#allocation3 + $0x320] sm:$0xff]  ;;  %v833_v47 = vld [vmem:[#allocation3 + $0x158] sm:$0xff] }
  0x2d   : > { %v828_v51 = vld [vmem:[#allocation3 + $0x130] sm:$0xff]  ;;  %v826_v55 = vld [vmem:[#allocation3 + $0x120] sm:$0xff]  ;;  %1060 = vmatpush.msra.mxu3 %v892_v50  ;;  %1041 = vmatpush.msra.mxu2 %v858_v52  ;;  %v797_v50 = vld [vmem:[#allocation3 + $0x38] sm:$0xff] }
  0x2e   : > { %1020 = vmatpush.msra.mxu1 %v828_v51  ;;  %v856_v56 = vld [vmem:[#allocation3 + $0x210] sm:$0xff]  ;;  %1001 = vmatpush.msra.mxu0 %v794_v53  ;;  %v854_v60 = vld [vmem:[#allocation3 + $0x200] sm:$0xff]  ;;  %v831_v51 = vld [vmem:[#allocation3 + $0x148] sm:$0xff] }
  0x2f   : > { %v792_v57 = vld [vmem:[#allocation3 + $0x10] sm:$0xff]  ;;  %1061 = vmatpush.msra.mxu3 %v890_v54  ;;  %v790_v61 = vld [vmem:[#allocation3] sm:$0xff]  ;;  %1042 = vmatpush.msra.mxu2 %v856_v56  ;;  %v2017_v54 = vshrl.u32 %v770_v41, 7  ;;  %v975_v41 = vld [vmem:[#allocation3 + $0x5c8] sm:$0xff] }
  0x30   : > { %v888_v58 = vld [vmem:[#allocation3 + $0x310] sm:$0xff]  ;;  %1021 = vmatpush.msra.mxu1 %v826_v55  ;;  %1002 = vmatpush.msra.mxu0 %v792_v57  ;;  %v886_v63 = vld [vmem:[#allocation3 + $0x300] sm:$0xff] }
  0x31   : > { %v824_v59 = vld [vmem:[#allocation3 + $0x110] sm:$0xff]  ;;  %1062 = vmatpush.msra.mxu3 %v888_v58  ;;  %1043 = vmatpush.msra.mxu2 %v854_v60  ;;  %v822_v3 = vld [vmem:[#allocation3 + $0x100] sm:$0xff]  ;;  %v795_v58 = vld [vmem:[#allocation3 + $0x28] sm:$0xff]  ;;  %vm772_vm1 = vcmp.eq.s32.totalorder %v2017_v54, 0  ;;  %vm781_vm3 = vcmp.eq.s32.totalorder %v2017_v54, 7 }
  0x32   : > { %1022 = vmatpush.msra.mxu1 %v824_v59  ;;  %v948_v0 = vld [vmem:[#allocation3 + $0x4f0] sm:$0xff]  ;;  %1003 = vmatpush.msra.mxu0 %v790_v61  ;;  %v946_v4 = vld [vmem:[#allocation3 + $0x4e0] sm:$0xff]  ;;  %v829_v59 = vld [vmem:[#allocation3 + $0x138] sm:$0xff] }
  0x33   : > { %1108 = vmatpush.msrb.mxu2 %v821_v62  ;;  %1063 = vmatpush.msra.mxu3 %v886_v63  ;;  %v980_v5 = vld [vmem:[#allocation3 + $0x5f0] sm:$0xff]  ;;  %v978_v9 = vld [vmem:[#allocation3 + $0x5e0] sm:$0xff]  ;;  %v969_v54 = vld [vmem:[#allocation3 + $0x598] sm:$0xff] }
  0x34   : > { %1068 = vmatpush.msrb.mxu0 %v948_v0  ;;  %1023 = vmatpush.msra.mxu1 %v822_v3  ;;  %v944_v8 = vld [vmem:[#allocation3 + $0x4d0] sm:$0xff]  ;;  %v942_v12 = vld [vmem:[#allocation3 + $0x4c0] sm:$0xff]  ;;  %v827_v3 = vld [vmem:[#allocation3 + $0x128] sm:$0xff] }
  0x35   : > { %1128 = vmatpush.msrb.mxu3 %v853_v1  ;;  %1109 = vmatpush.msrb.mxu2 %v819_v2  ;;  %v976_v13 = vld [vmem:[#allocation3 + $0x5d0] sm:$0xff]  ;;  %v974_v17 = vld [vmem:[#allocation3 + $0x5c0] sm:$0xff]  ;;  %v793_v2 = vld [vmem:[#allocation3 + $0x18] sm:$0xff] }
  0x36   : > { %1069 = vmatpush.msrb.mxu0 %v946_v4  ;;  %1088 = vmatpush.msrb.mxu1 %v980_v5  ;;  %v940_v16 = vld [vmem:[#allocation3 + $0x4b0] sm:$0xff]  ;;  %v938_v20 = vld [vmem:[#allocation3 + $0x4a0] sm:$0xff] }
  0x37   : > { %1110 = vmatpush.msrb.mxu2 %v817_v6  ;;  %1129 = vmatpush.msrb.mxu3 %v851_v7  ;;  %v972_v21 = vld [vmem:[#allocation3 + $0x5b0] sm:$0xff]  ;;  %v970_v25 = vld [vmem:[#allocation3 + $0x5a0] sm:$0xff]  ;;  %v791_v6 = vld [vmem:[#allocation3 + $0x8] sm:$0xff] }
  0x38   : > { %1070 = vmatpush.msrb.mxu0 %v944_v8  ;;  %1089 = vmatpush.msrb.mxu1 %v978_v9  ;;  %v936_v24 = vld [vmem:[#allocation3 + $0x490] sm:$0xff]  ;;  %v934_v28 = vld [vmem:[#allocation3 + $0x480] sm:$0xff]  ;;  %v825_v7 = vld [vmem:[#allocation3 + $0x118] sm:$0xff] }
  0x39   : > { %1111 = vmatpush.msrb.mxu2 %v815_v10  ;;  %1130 = vmatpush.msrb.mxu3 %v849_v11  ;;  %v968_v29 = vld [vmem:[#allocation3 + $0x590] sm:$0xff]  ;;  %v966_v33 = vld [vmem:[#allocation3 + $0x580] sm:$0xff]  ;;  %v765_v10 = vstv %s2025_s22 }
  0x3a   : > { %1071 = vmatpush.msrb.mxu0 %v942_v12  ;;  %1090 = vmatpush.msrb.mxu1 %v976_v13  ;;  %v932_v32 = vld [vmem:[#allocation3 + $0x470] sm:$0xff]  ;;  %v930_v37 = vld [vmem:[#allocation3 + $0x460] sm:$0xff]  ;;  %v949_v13 = vld [vmem:[#allocation3 + $0x4f8] sm:$0xff]  ;;  %vm2050_vm2 = vcmp.eq.s32.totalorder %v765_v10, 1 }
  0x3b   : > { %1112 = vmatpush.msrb.mxu2 %v813_v14  ;;  %1131 = vmatpush.msrb.mxu3 %v847_v15  ;;  %v964_v38 = vld [vmem:[#allocation3 + $0x570] sm:$0xff]  ;;  %v962_v43 = vld [vmem:[#allocation3 + $0x560] sm:$0xff]  ;;  %v823_v15 = vld [vmem:[#allocation3 + $0x108] sm:$0xff] }
  0x3c   : > { %1072 = vmatpush.msrb.mxu0 %v940_v16  ;;  %1091 = vmatpush.msrb.mxu1 %v974_v17  ;;  %v928_v42 = vld [vmem:[#allocation3 + $0x450] sm:$0xff]  ;;  %v755_v44 = vld [vmem:[%s670_s15 + $0x7] sm:$0x1]  ;;  %s695_s15 = scalar_lea.vmem %s2227_s3, %s1988_s12  ;;  %v763_v16 = vld [vmem:[%s684_s18] sm:$0x1]  ;;  %s743_s18 = scalar_lea.vmem %s2234_s10, %s1988_s12 }
  0x3d   : > { %1113 = vmatpush.msrb.mxu2 %v811_v18  ;;  %1132 = vmatpush.msrb.mxu3 %v845_v19  ;;  %v926_v48 = vld [vmem:[#allocation3 + $0x440] sm:$0xff]  ;;  %v960_v49 = vld [vmem:[#allocation3 + $0x550] sm:$0xff]  ;;  %v759_v53 = vsel %vm2002_vm0, %v755_v44, 0.0  ;;  %v885_v19 = vld [vmem:[#allocation3 + $0x2f8] sm:$0xff] }
  0x3e   : > { %1073 = vmatpush.msrb.mxu0 %v938_v20  ;;  %1092 = vmatpush.msrb.mxu1 %v972_v21  ;;  %v2013_v52 = vld [vmem:[%s659_s26] sm:$0xff]  ;;  %v924_v56 = vld [vmem:[#allocation3 + $0x430] sm:$0xff]  ;;  %v776_v63 = vperm.slane %v759_v53, 0  ;;  %v947_v20 = vld [vmem:[#allocation3 + $0x4e8] sm:$0xff] }
  0x3f   : > { %1114 = vmatpush.msrb.mxu2 %v809_v22  ;;  %1133 = vmatpush.msrb.mxu3 %v843_v23  ;;  %v760_v55 = vld [vmem:[%s706_s29 + $0x7] sm:$0x1]  ;;  %v956_v61 = vld [vmem:[#allocation3 + $0x530] sm:$0xff]  ;;  %v773_v62 = vrot.slane %v2013_v52, 7  ;;  %v981_v21 = vld [vmem:[#allocation3 + $0x5f8] sm:$0xff] }
  0x40   : > { %1074 = vmatpush.msrb.mxu0 %v936_v24  ;;  %1093 = vmatpush.msrb.mxu1 %v970_v25  ;;  %v958_v57 = vld [vmem:[#allocation3 + $0x540] sm:$0xff]  ;;  %v761_v1 = vsel %vm2002_vm0, %v760_v55, 0.0  ;;  %v920_v4 = vld [vmem:[#allocation3 + $0x410] sm:$0xff]  ;;  %v883_v24 = vld [vmem:[#allocation3 + $0x2e8] sm:$0xff]  ;;  %v767_v25 = vsel %vm2050_vm2, %v763_v16, 0.0 }
  0x41   : > { %1115 = vmatpush.msrb.mxu2 %v807_v26  ;;  %1134 = vmatpush.msrb.mxu3 %v841_v27  ;;  %v922_v60 = vld [vmem:[#allocation3 + $0x420] sm:$0xff]  ;;  %v779_v9 = vperm.slane %v761_v1, 0  ;;  %v2043_v11 = vsel %vm772_vm1, %v776_v63, %v773_v62  ;;  %v952_v14 = vld [vmem:[#allocation3 + $0x510] sm:$0xff]  ;;  %v945_v26 = vld [vmem:[#allocation3 + $0x4d8] sm:$0xff] }
  0x42   : > { %1075 = vmatpush.msrb.mxu0 %v934_v28  ;;  %1094 = vmatpush.msrb.mxu1 %v968_v29  ;;  %v2029_v0 = vld [vmem:[%s695_s15] sm:$0xff]  ;;  %v917_v27 = vld [vmem:[#allocation3 + $0x3f8] sm:$0xff]  ;;  %v979_v28 = vld [vmem:[#allocation3 + $0x5e8] sm:$0xff] }
  0x43   : > { %1116 = vmatpush.msrb.mxu2 %v805_v30  ;;  %1135 = vmatpush.msrb.mxu3 %v839_v31  ;;  %v954_v5 = vld [vmem:[#allocation3 + $0x520] sm:$0xff]  ;;  %v778_v8 = vrot.slane %v2029_v0, 7  ;;  %v881_v30 = vld [vmem:[#allocation3 + $0x2d8] sm:$0xff]  ;;  %v943_v31 = vld [vmem:[#allocation3 + $0x4c8] sm:$0xff] }
  0x44   : > { %1076 = vmatpush.msrb.mxu0 %v932_v32  ;;  %1095 = vmatpush.msrb.mxu1 %v966_v33  ;;  %v918_v12 = vld [vmem:[#allocation3 + $0x400] sm:$0xff]  ;;  %v782_v32 = vrot.slane %v2013_v52, 1  ;;  %v785_v33 = vperm.slane %v767_v25, 0  ;;  %v877_v44 = vld [vmem:[#allocation3 + $0x2b8] sm:$0xff]  ;;  %v907_v55 = vld [vmem:[#allocation3 + $0x3a8] sm:$0xff] }
  0x45   : > { %1117 = vmatpush.msrb.mxu2 %v803_v34  ;;  %1136 = vmatpush.msrb.mxu3 %v837_v35  ;;  %v2057_v18 = vsel %vm772_vm1, %v779_v9, %v778_v8  ;;  %v768_v22 = vld [vmem:[%s720_s28] sm:$0x1]  ;;  %v915_v34 = vld [vmem:[#allocation3 + $0x3e8] sm:$0xff]  ;;  %v977_v35 = vld [vmem:[#allocation3 + $0x5d8] sm:$0xff] }
  0x46   : > { %1077 = vmatpush.msrb.mxu0 %v930_v37  ;;  %1096 = vmatpush.msrb.mxu1 %v964_v38  ;;  %v950_v23 = vld [vmem:[#allocation3 + $0x500] sm:$0xff]  ;;  %v769_v29 = vsel %vm2050_vm2, %v768_v22, 0.0  ;;  %v941_v37 = vld [vmem:[#allocation3 + $0x4b8] sm:$0xff]  ;;  %v787_v38 = vrot.slane %v2029_v0, 1  ;;  %v903_v62 = vld [vmem:[#allocation3 + $0x388] sm:$0xff] }
  0x47   : > { %1118 = vmatpush.msrb.mxu2 %v801_v39  ;;  %1137 = vmatpush.msrb.mxu3 %v835_v40  ;;  %v788_v39 = vperm.slane %v769_v29, 0  ;;  %v913_v40 = vld [vmem:[#allocation3 + $0x3d8] sm:$0xff]  ;;  %v931_v63 = vld [vmem:[#allocation3 + $0x468] sm:$0xff] }
  0x48   : > { %1078 = vmatpush.msrb.mxu0 %v928_v42  ;;  %1097 = vmatpush.msrb.mxu1 %v962_v43  ;;  %v2071_v42 = vsel %vm781_vm3, %v785_v33, %v782_v32  ;;  %v939_v43 = vld [vmem:[#allocation3 + $0x4a8] sm:$0xff]  ;;  %v873_v53 = vld [vmem:[#allocation3 + $0x298] sm:$0xff]  ;;  %v1244_v33 = vld [vmem:[%s2232_s8 + $0x70] sm:$0xff] }
  0x49   : > { %1119 = vmatpush.msrb.mxu2 %v799_v46  ;;  %1138 = vmatpush.msrb.mxu3 %v833_v47  ;;  %v973_v46 = vld [vmem:[#allocation3 + $0x5b8] sm:$0xff]  ;;  %v2075_v47 = vsel %vm781_vm3, %v788_v39, %v787_v38  ;;  %v927_v8 = vld [vmem:[#allocation3 + $0x448] sm:$0xff]  ;;  %v1236_v39 = vld [vmem:[%s2232_s8 + $0x30] sm:$0xff] }
  0x4a   : > { %1079 = vmatpush.msrb.mxu0 %v926_v48  ;;  %1098 = vmatpush.msrb.mxu1 %v960_v49  ;;  %v875_v48 = vld [vmem:[#allocation3 + $0x2a8] sm:$0xff]  ;;  %v909_v49 = vld [vmem:[#allocation3 + $0x3b8] sm:$0xff] }
  0x4b   : > { %1120 = vmatpush.msrb.mxu2 %v797_v50  ;;  %1139 = vmatpush.msrb.mxu3 %v831_v51  ;;  %v937_v50 = vld [vmem:[#allocation3 + $0x498] sm:$0xff]  ;;  %v971_v51 = vld [vmem:[#allocation3 + $0x5a8] sm:$0xff] }
  0x4c   : > { %1080 = vmatpush.msrb.mxu0 %v924_v56  ;;  %1099 = vmatpush.msrb.mxu1 %v958_v57  ;;  %v935_v56 = vld [vmem:[#allocation3 + $0x488] sm:$0xff]  ;;  %v965_v1 = vld [vmem:[#allocation3 + $0x578] sm:$0xff] }
  0x4d   : > { %1121 = vmatpush.msrb.mxu2 %v795_v58  ;;  %1140 = vmatpush.msrb.mxu3 %v829_v59  ;;  %v871_v57 = vld [vmem:[#allocation3 + $0x288] sm:$0xff]  ;;  %v905_v58 = vld [vmem:[#allocation3 + $0x398] sm:$0xff] }
  0x4e   : > { %1081 = vmatpush.msrb.mxu0 %v922_v60  ;;  %1100 = vmatpush.msrb.mxu1 %v956_v61  ;;  %v933_v59 = vld [vmem:[#allocation3 + $0x478] sm:$0xff]  ;;  %v967_v60 = vld [vmem:[#allocation3 + $0x588] sm:$0xff] }
  0x4f   : > { %1122 = vmatpush.msrb.mxu2 %v793_v2  ;;  %1141 = vmatpush.msrb.mxu3 %v827_v3  ;;  %v869_v61 = vld [vmem:[#allocation3 + $0x278] sm:$0xff]  ;;  %v867_v2 = vld [vmem:[#allocation3 + $0x268] sm:$0xff] }
  0x50   : > { %1082 = vmatpush.msrb.mxu0 %v920_v4  ;;  %1101 = vmatpush.msrb.mxu1 %v954_v5  ;;  %v901_v3 = vld [vmem:[#allocation3 + $0x378] sm:$0xff]  ;;  %v963_v5 = vld [vmem:[#allocation3 + $0x568] sm:$0xff] }
  0x51   : > { %1123 = vmatpush.msrb.mxu2 %v791_v6  ;;  %1142 = vmatpush.msrb.mxu3 %v825_v7  ;;  %v929_v4 = vld [vmem:[#allocation3 + $0x458] sm:$0xff]  ;;  %v899_v7 = vld [vmem:[#allocation3 + $0x368] sm:$0xff] }
  0x52   : > { %1044 = vmatmul.f32.vlgmr.msra.gmra.mxu2 %v2043_v11  ;;  %1083 = vmatpush.msrb.mxu0 %v918_v12  ;;  %v865_v6 = vld [vmem:[#allocation3 + $0x258] sm:$0xff]  ;;  %v863_v10 = vld [vmem:[#allocation3 + $0x248] sm:$0xff] }
  0x53   : > { %1188 = vmatpush.msra.mxu2 %v949_v13  ;;  %1102 = vmatpush.msrb.mxu1 %v952_v14  ;;  %v961_v9 = vld [vmem:[#allocation3 + $0x558] sm:$0xff]  ;;  %v959_v14 = vld [vmem:[#allocation3 + $0x548] sm:$0xff] }
  0x54   : > { %1143 = vmatpush.msrb.mxu3 %v823_v15  ;;  %1004 = vmatmul.f32.vlgmr.msra.gmra.mxu0 %v2013_v52  ;;  %v897_v12 = vld [vmem:[#allocation3 + $0x358] sm:$0xff]  ;;  %v895_v16 = vld [vmem:[#allocation3 + $0x348] sm:$0xff] }
  0x55   : > { %1064 = vmatmul.f32.vlgmr.msra.gmra.mxu3 %v2057_v18  ;;  %1148 = vmatpush.msra.mxu0 %v885_v19  ;;  %v925_v13 = vld [vmem:[#allocation3 + $0x438] sm:$0xff]  ;;  %v923_v17 = vld [vmem:[#allocation3 + $0x428] sm:$0xff] }
  0x56   : > { %1189 = vmatpush.msra.mxu2 %v947_v20  ;;  %1208 = vmatpush.msra.mxu3 %v981_v21  ;;  %v861_v15 = vld [vmem:[#allocation3 + $0x238] sm:$0xff]  ;;  %v859_v20 = vld [vmem:[#allocation3 + $0x228] sm:$0xff] }
  0x57   : > { %1103 = vmatpush.msrb.mxu1 %v950_v23  ;;  %1149 = vmatpush.msra.mxu0 %v883_v24  ;;  %v957_v19 = vld [vmem:[#allocation3 + $0x538] sm:$0xff]  ;;  %v955_v23 = vld [vmem:[#allocation3 + $0x528] sm:$0xff] }
  0x58   : > { %1024 = vmatmul.f32.vlgmr.msra.gmra.mxu1 %v2029_v0  ;;  %1190 = vmatpush.msra.mxu2 %v945_v26  ;;  %v893_v21 = vld [vmem:[#allocation3 + $0x338] sm:$0xff]  ;;  %v891_v25 = vld [vmem:[#allocation3 + $0x328] sm:$0xff] }
  0x59   : > { %1168 = vmatpush.msra.mxu1 %v917_v27  ;;  %1209 = vmatpush.msra.mxu3 %v979_v28  ;;  %v921_v22 = vld [vmem:[#allocation3 + $0x418] sm:$0xff]  ;;  %v919_v26 = vld [vmem:[#allocation3 + $0x408] sm:$0xff] }
  0x5a   : > { %1150 = vmatpush.msra.mxu0 %v881_v30  ;;  %1191 = vmatpush.msra.mxu2 %v943_v31  ;;  %v857_v24 = vld [vmem:[#allocation3 + $0x218] sm:$0xff]  ;;  %v855_v28 = vld [vmem:[#allocation3 + $0x208] sm:$0xff] }
  0x5b   : > { %1169 = vmatpush.msra.mxu1 %v915_v34  ;;  %1210 = vmatpush.msra.mxu3 %v977_v35  ;;  %v953_v27 = vld [vmem:[#allocation3 + $0x518] sm:$0xff]  ;;  %v951_v30 = vld [vmem:[#allocation3 + $0x508] sm:$0xff]  ;;  %v1242_v35 = vld [vmem:[%s2232_s8 + $0x60] sm:$0xff] }
  0x5c   : > { %1151 = vmatpush.msra.mxu0 %v879_v36  ;;  %1192 = vmatpush.msra.mxu2 %v941_v37  ;;  %v889_v29 = vld [vmem:[#allocation3 + $0x318] sm:$0xff]  ;;  %v887_v31 = vld [vmem:[#allocation3 + $0x308] sm:$0xff]  ;;  %v1240_v36 = vld [vmem:[%s2232_s8 + $0x50] sm:$0xff] }
  0x5d   : > { %1170 = vmatpush.msra.mxu1 %v913_v40  ;;  %1211 = vmatpush.msra.mxu3 %v975_v41  ;;  %v1245_v32 = vld [vmem:[%s2232_s8 + $0x78] sm:$0xff]  ;;  %v1243_v34 = vld [vmem:[%s2232_s8 + $0x68] sm:$0xff]  ;;  %v1238_v37 = vld [vmem:[%s2232_s8 + $0x40] sm:$0xff] }
  0x5e   : > { %1084 = vmatmul.f32.vlgmr.msrb.gmra.mxu0 %v2071_v42  ;;  %1193 = vmatpush.msra.mxu2 %v939_v43  ;;  %v1237_v38 = vld [vmem:[%s2232_s8 + $0x38] sm:$0xff]  ;;  %v1235_v40 = vld [vmem:[%s2232_s8 + $0x28] sm:$0xff]  ;;  %v1234_v41 = vld [vmem:[%s2232_s8 + $0x20] sm:$0xff] }
  0x5f   : > { %1152 = vmatpush.msra.mxu0 %v877_v44  ;;  %1171 = vmatpush.msra.mxu1 %v911_v45  ;;  %v1232_v43 = vld [vmem:[%s2232_s8 + $0x10] sm:$0xff]  ;;  %v1261_v44 = vld [vmem:[%s2232_s8 + $0xf8] sm:$0xff]  ;;  %v1231_v45 = vld [vmem:[%s2232_s8 + $0x8] sm:$0xff] }
  0x60   : > { %1212 = vmatpush.msra.mxu3 %v973_v46  ;;  %1104 = vmatmul.f32.vlgmr.msrb.gmra.mxu1 %v2075_v47  ;;  %v1260_v46 = vld [vmem:[%s2232_s8 + $0xf0] sm:$0xff] }
  0x61   : > { %1153 = vmatpush.msra.mxu0 %v875_v48  ;;  %1172 = vmatpush.msra.mxu1 %v909_v49  ;;  %v1259_v48 = vld [vmem:[%s2232_s8 + $0xe8] sm:$0xff]  ;;  %v1258_v49 = vld [vmem:[%s2232_s8 + $0xe0] sm:$0xff] }
  0x62   : > { %1194 = vmatpush.msra.mxu2 %v937_v50  ;;  %1213 = vmatpush.msra.mxu3 %v971_v51  ;;  %v1257_v50 = vld [vmem:[%s2232_s8 + $0xd8] sm:$0xff]  ;;  %v1256_v51 = vld [vmem:[%s2232_s8 + $0xd0] sm:$0xff] }
  0x63   : > { %1154 = vmatpush.msra.mxu0 %v873_v53  ;;  %1173 = vmatpush.msra.mxu1 %v907_v55  ;;  %v1255_v53 = vld [vmem:[%s2232_s8 + $0xc8] sm:$0xff]  ;;  %v982_v55 = vld [vmem:[%s2231_s7] sm:$0x3] }
  0x64   : > { %1195 = vmatpush.msra.mxu2 %v935_v56  ;;  %1214 = vmatpush.msra.mxu3 %v969_v54  ;;  %v1254_v56 = vld [vmem:[%s2232_s8 + $0xc0] sm:$0xff]  ;;  %v984_v54 = vperm.slane %v982_v55, 0 }
  0x65   : > { %1155 = vmatpush.msra.mxu0 %v871_v57  ;;  %1174 = vmatpush.msra.mxu1 %v905_v58  ;;  %v1253_v57 = vld [vmem:[%s2232_s8 + $0xb8] sm:$0xff] }
  0x66   : > { %1196 = vmatpush.msra.mxu2 %v933_v59  ;;  %1215 = vmatpush.msra.mxu3 %v967_v60  ;;  %v1252_v60 = vld [vmem:[%s2232_s8 + $0xb0] sm:$0xff] }
  0x67   : > { %1156 = vmatpush.msra.mxu0 %v869_v61  ;;  %1175 = vmatpush.msra.mxu1 %v903_v62  ;;  %v1251_v61 = vld [vmem:[%s2232_s8 + $0xa8] sm:$0xff] }
  0x68   : > { %1197 = vmatpush.msra.mxu2 %v931_v63  ;;  %1216 = vmatpush.msra.mxu3 %v965_v1 }
  0x69   : > { %1157 = vmatpush.msra.mxu0 %v867_v2  ;;  %1176 = vmatpush.msra.mxu1 %v901_v3  ;;  %v1250_v2 = vld [vmem:[%s2232_s8 + $0xa0] sm:$0xff] }
  0x6a   : > { %1198 = vmatpush.msra.mxu2 %v929_v4  ;;  %1217 = vmatpush.msra.mxu3 %v963_v5  ;;  %v1249_v5 = vld [vmem:[%s2232_s8 + $0x98] sm:$0xff] }
  0x6b   : > { %1158 = vmatpush.msra.mxu0 %v865_v6  ;;  %1177 = vmatpush.msra.mxu1 %v899_v7  ;;  %v1248_v7 = vld [vmem:[%s2232_s8 + $0x90] sm:$0xff] }
  0x6c   : > { %1199 = vmatpush.msra.mxu2 %v927_v8  ;;  %1218 = vmatpush.msra.mxu3 %v961_v9 }
  0x6d   : > { %1124 = vmatmul.f32.vlgmr.msrb.gmra.mxu2 %v2013_v52  ;;  %1159 = vmatpush.msra.mxu0 %v863_v10  ;;  %v1247_v10 = vld [vmem:[%s2232_s8 + $0x88] sm:$0xff] }
  0x6e   : > { %1178 = vmatpush.msra.mxu1 %v897_v12  ;;  %1200 = vmatpush.msra.mxu2 %v925_v13 }
  0x6f   : > { %1219 = vmatpush.msra.mxu3 %v959_v14  ;;  %1160 = vmatpush.msra.mxu0 %v861_v15  ;;  %v1246_v14 = vld [vmem:[%s2232_s8 + $0x80] sm:$0xff] }
  0x70   : > { %1144 = vmatmul.f32.vlgmr.msrb.gmra.mxu3 %v2029_v0  ;;  %1179 = vmatpush.msra.mxu1 %v895_v16  ;;  %v985_v16 = vperm.slane %v982_v55, 1 }
  0x71   : > { %1201 = vmatpush.msra.mxu2 %v923_v17  ;;  %1220 = vmatpush.msra.mxu3 %v957_v19 }
  0x72   : > { %1161 = vmatpush.msra.mxu0 %v859_v20  ;;  %1180 = vmatpush.msra.mxu1 %v893_v21 }
  0x73   : > { %1202 = vmatpush.msra.mxu2 %v921_v22  ;;  %1221 = vmatpush.msra.mxu3 %v955_v23 }
  0x74   : > { %1162 = vmatpush.msra.mxu0 %v857_v24  ;;  %1181 = vmatpush.msra.mxu1 %v891_v25 }
  0x75   : > { %1203 = vmatpush.msra.mxu2 %v919_v26  ;;  %1222 = vmatpush.msra.mxu3 %v953_v27 }
  0x76   : > { %1204 = vmatmul.f32.vlgmr.msra.gmra.mxu2 %v2071_v42  ;;  %1163 = vmatpush.msra.mxu0 %v855_v28  ;;  %v1233_v42 = vld [vmem:[%s2232_s8 + $0x18] sm:$0xff] }
  0x77   : > { %1182 = vmatpush.msra.mxu1 %v889_v29  ;;  %1223 = vmatpush.msra.mxu3 %v951_v30 }
  0x78   : > { %1164 = vmatmul.f32.vlgmr.msra.gmra.mxu0 %v2043_v11  ;;  %1224 = vmatmul.f32.vlgmr.msra.gmra.mxu3 %v2075_v47  ;;  %v1241_v11 = vld [vmem:[%s2232_s8 + $0x58] sm:$0xff]  ;;  %v1230_v47 = vld [vmem:[%s2232_s8] sm:$0xff] }
  0x79   : > { %1183 = vmatpush.msra.mxu1 %v887_v31  ;;  %1268 = vmatpush.msrb.mxu0 %v1245_v32  ;;  %v1735_v31 = vld [vmem:[%s2233_s9] ss:$0 sm:$0xff] }
  0x7a   : > { %1184 = vmatmul.f32.vlgmr.msra.gmra.mxu1 %v2057_v18  ;;  %v1239_v18 = vld [vmem:[%s2232_s8 + $0x48] sm:$0xff] }
  0x7b   : > { %1269 = vmatpush.msrb.mxu0 %v1244_v33  ;;  %1288 = vmatpush.msrb.mxu1 %v1261_v44 }
  0x7d   : > { %1270 = vmatpush.msrb.mxu0 %v1243_v34  ;;  %1289 = vmatpush.msrb.mxu1 %v1260_v46 }
  0x7f   : > { %1271 = vmatpush.msrb.mxu0 %v1242_v35  ;;  %1290 = vmatpush.msrb.mxu1 %v1259_v48 }
  0x81   : > { %1272 = vmatpush.msrb.mxu0 %v1241_v11  ;;  %1291 = vmatpush.msrb.mxu1 %v1258_v49 }
  0x83   : > { %1273 = vmatpush.msrb.mxu0 %v1240_v36  ;;  %1292 = vmatpush.msrb.mxu1 %v1257_v50 }
  0x85   : > { %1274 = vmatpush.msrb.mxu0 %v1239_v18  ;;  %1293 = vmatpush.msrb.mxu1 %v1256_v51  ;;  %v1823_v18 = vmov 128.0  }
  0x86   : > { %1740 = vrcp.f32 %v1823_v18 }
  0x87   : > { %1275 = vmatpush.msrb.mxu0 %v1238_v37  ;;  %1294 = vmatpush.msrb.mxu1 %v1255_v53 }
  0x89   : > { %1276 = vmatpush.msrb.mxu0 %v1237_v38  ;;  %1295 = vmatpush.msrb.mxu1 %v1254_v56 }
  0x8b   : > { %1277 = vmatpush.msrb.mxu0 %v1236_v39  ;;  %1296 = vmatpush.msrb.mxu1 %v1253_v57 }
  0x8c   : > { %v1741_v37 = vpop.eup %1740 }
  0x8d   : > { %1278 = vmatpush.msrb.mxu0 %v1235_v40  ;;  %1297 = vmatpush.msrb.mxu1 %v1252_v60  ;;  %v1312_v38 = vmul.f32 128.0, %v1741_v37  ;;  %vm1316_vm4 = vweird.f32 %v1741_v37 }
  0x8f   : > { %1279 = vmatpush.msrb.mxu0 %v1234_v41  ;;  %1298 = vmatpush.msrb.mxu1 %v1251_v61  ;;  %v1313_v39 = vsub.f32 1.0, %v1312_v38 }
  0x91   : > { %1280 = vmatpush.msrb.mxu0 %v1233_v42  ;;  %1299 = vmatpush.msrb.mxu1 %v1250_v2  ;;  %v1314_v40 = vmul.f32 %v1741_v37, %v1313_v39 }
  0x93   : > { %1281 = vmatpush.msrb.mxu0 %v1232_v43  ;;  %1300 = vmatpush.msrb.mxu1 %v1249_v5  ;;  %v1315_v41 = vadd.f32 %v1741_v37, %v1314_v40 }
  0x95   : > { %1282 = vmatpush.msrb.mxu0 %v1231_v45  ;;  %1301 = vmatpush.msrb.mxu1 %v1248_v7  ;;  %v1317_v42 = vsel %vm1316_vm4, %v1741_v37, %v1315_v41 }
  0x97   : > { %1283 = vmatpush.msrb.mxu0 %v1230_v47  ;;  %1302 = vmatpush.msrb.mxu1 %v1247_v10 }
  0x99   : > { %1303 = vmatpush.msrb.mxu1 %v1246_v14  ;;  %v1739_v14 = vld [vmem:[%s2233_s9 + $0x4] ss:$0 sm:$0xff] }
  0xd1   : > { %v1005_v58 = vpop.f32.mrf.mxu0 }
  0xd2   : > { %v1006_v59 = vadd.f32 %v1005_v58, %v984_v54 }
  0xd5   : > { %v1025_v62 = vpop.f32.mrf.mxu1  ;;  %v1045_v63 = vpop.f32.mrf.mxu2 }
  0xd6   : > { %v1026_v1 = vadd.f32 %v1025_v62, %v1006_v59 }
  0xd8   : > { %v1046_v3 = vadd.f32 %v1045_v63, %v1026_v1  ;;  %v1065_v4 = vpop.f32.mrf.mxu3  ;;  %v1736_v1 = vld [vmem:[%s2233_s9 + $0x1] ss:$0 sm:$0xff] }
  0xda   : > { %v1066_v6 = vadd.f32 %v1065_v4, %v1046_v3  ;;  %v1737_v4 = vld [vmem:[%s2233_s9 + $0x2] ss:$0 sm:$0xff] }
  0xdb   : > { %v1085_v8 = vpop.f32.mrf.mxu0 }
  0xdc   : > { %v1086_v9 = vadd.f32 %v1085_v8, %v1066_v6 }
  0xdd   : > { %v1105_v12 = vpop.f32.mrf.mxu1 }
  0xde   : > { %v1106_v13 = vadd.f32 %v1105_v12, %v1086_v9  ;;  %v1738_v12 = vld [vmem:[%s2233_s9 + $0x3] ss:$0 sm:$0xff] }
  0xe0   : > { %v1228_v15 = vmax.f32 %v1106_v13, 0.0 }
  0xe2   : > { %1284 = vmatmul.f32.vlgmr.msrb.gmra.mxu0 %v1228_v15 }
  0xf0   : > { %v1125_v17 = vpop.f32.mrf.mxu2 }
  0xf1   : > { %v1126_v19 = vadd.f32 %v1125_v17, %v985_v16 }
  0xf3   : > { %v1145_v20 = vpop.f32.mrf.mxu3 }
  0xf4   : > { %v1146_v21 = vadd.f32 %v1145_v20, %v1126_v19 }
  0xf5   : > { %v1165_v22 = vpop.f32.mrf.mxu0 }
  0xf6   : > { %v1166_v23 = vadd.f32 %v1165_v22, %v1146_v21 }
  0xf7   : > { %v1185_v24 = vpop.f32.mrf.mxu1 }
  0xf8   : > { %v1186_v25 = vadd.f32 %v1185_v24, %v1166_v23 }
  0xf9   : > { %v1205_v26 = vpop.f32.mrf.mxu2 }
  0xfa   : > { %v1206_v27 = vadd.f32 %v1205_v26, %v1186_v25 }
  0xfb   : > { %v1225_v28 = vpop.f32.mrf.mxu3 }
  0xfc   : > { %v1226_v29 = vadd.f32 %v1225_v28, %v1206_v27 }
  0xfe   : > { %v1229_v30 = vmax.f32 %v1226_v29, 0.0 }
 0x100   : > { %1304 = vmatmul.f32.vlgmr.msrb.gmra.mxu1 %v1229_v30 }
 0x15f   : > { %v1285_v32 = vpop.f32.mrf.mxu0 }
 0x160   : > { %v1286_v33 = vadd.f32 %v1735_v31, %v1285_v32 }
 0x17d   : > { %v1305_v34 = vpop.f32.mrf.mxu1 }
 0x17e   : > { %v1306_v35 = vadd.f32 %v1305_v34, %v1286_v33 }
 0x180   : > { %v1308_v11 = vadd.f32 %v1306_v35, %v2013_v52  ;;  %v1341_v36 = vadd.f32 %v1306_v35, %v2029_v0 }
 0x182   : > { %1309 = vadd.xlane.f32.xlu0 %v1308_v11 }
 0x18a   : > { %1342 = vadd.xlane.f32.xlu0 %v1341_v36 }
 0x1f5   : > { %v1310_v43 = vpop.xlane.xlu0 %1309 }
 0x1f6   : > { %v1318_v44 = vmul.f32 %v1317_v42, %v1310_v43 }
 0x1f8   : > { %v1319_v45 = vsub.f32 %v1308_v11, %v1318_v44 }
 0x1fa   : > { %v1320_v46 = vmul.f32 %v1319_v45, %v1319_v45 }
 0x1fc   : > { %1321 = vadd.xlane.f32.xlu1 %v1320_v46 }
 0x1fd   : > { %v1343_v47 = vpop.xlane.xlu0 %1342 }
 0x1fe   : > { %v1344_v52 = vmul.f32 %v1343_v47, %v1317_v42 }
 0x200   : > { %v1345_v48 = vsub.f32 %v1341_v36, %v1344_v52 }
 0x202   : > { %v1346_v49 = vmul.f32 %v1345_v48, %v1345_v48 }
 0x204   : > { %1347 = vadd.xlane.f32.xlu1 %v1346_v49 }
 0x26f   : > { %v1322_v0 = vpop.xlane.xlu1 %1321 }
 0x270   : > { %v1323_v50 = vmul.f32 %v1322_v0, %v1317_v42 }
 0x272   : > { %v1324_v51 = vadd.f32 1e-12, %v1323_v50 }
 0x274   : > { %1742 = vrsqrt.f32 %v1324_v51  ;;  %vm1331_vm6 = vweird.f32 %v1324_v51 }
 0x277   : > { %v1348_v53 = vpop.xlane.xlu1 %1347 }
 0x278   : > { %v1349_v55 = vmul.f32 %v1348_v53, %v1317_v42 }
 0x27a   : > { %v1743_v56 = vpop.eup %1742  ;;  %v1350_v54 = vadd.f32 1e-12, %v1349_v55 }
 0x27b   : > { %v1326_v57 = vmul.f32 %v1743_v56, %v1324_v51  ;;  %vm1332_vm5 = vweird.f32 %v1743_v56 }
 0x27c   : > { %1744 = vrsqrt.f32 %v1350_v54  ;;  %vm1333_vm7 = vmor %vm1331_vm6, %vm1332_vm5  ;;  %vm1357_vm9 = vweird.f32 %v1350_v54 }
 0x27d   : > { %v1327_v58 = vmul.f32 %v1743_v56, %v1326_v57 }
 0x27f   : > { %v1328_v59 = vmul.f32 0.5, %v1327_v58 }
 0x281   : > { %v1329_v60 = vsub.f32 1.5, %v1328_v59 }
 0x282   : > { %v1745_v61 = vpop.eup %1744 }
 0x283   : > { %v1330_v62 = vmul.f32 %v1743_v56, %v1329_v60  ;;  %v1352_v63 = vmul.f32 %v1745_v61, %v1350_v54  ;;  %vm1358_vm8 = vweird.f32 %v1745_v61 }
 0x284   : > { %vm1359_vm10 = vmor %vm1357_vm9, %vm1358_vm8 }
 0x285   : > { %v1334_v2 = vsel %vm1333_vm7, %v1743_v56, %v1330_v62  ;;  %v1353_v3 = vmul.f32 %v1745_v61, %v1352_v63 }
 0x286   : > { %v1335_v5 = vmul.f32 %v1334_v2, %v1319_v45 }
 0x287   : > { %v1354_v6 = vmul.f32 0.5, %v1353_v3 }
 0x288   : > { %v1337_v7 = vmul.f32 %v1736_v1, %v1335_v5 }
 0x289   : > { %v1355_v8 = vsub.f32 1.5, %v1354_v6 }
 0x28a   : > { %v1339_v9 = vadd.f32 %v1737_v4, %v1337_v7 }
 0x28b   : > { %v1356_v10 = vmul.f32 %v1745_v61, %v1355_v8 }
 0x28c   : > { %1340 = vst [vmem:[%s743_s18] sm:$0xff] %v1339_v9 }
 0x28d   : > { %v1360_v13 = vsel %vm1359_vm10, %v1745_v61, %v1356_v10 }
 0x28e   : > { %v1361_v15 = vmul.f32 %v1360_v13, %v1345_v48 }
 0x290   : > { %v1363_v16 = vmul.f32 %v1738_v12, %v1361_v15 }
 0x292   : > { %v1365_v17 = vadd.f32 %v1739_v14, %v1363_v16 }
 0x294   : > { %1366 = vst [vmem:[%s751_s14] sm:$0xff] %v1365_v17 }
 0x295 PF: > { %s23_s21 = sadd.s32 1, %s1818_s21   ;;  %s2243_s17 = smov %s1810_s19 }
 0x296   : > { %p20_p0 = scmp.ge.s32.totalorder %s23_s21, 8   ;;  %s2244_s18 = smov %s1814_s20 }
 0x297   : > { %s2245_s19 = smov %s2248_s23  ;;  %s2246_s20 = smov %s2252_s24 }
 0x298   :  { %22 = sbr.rel (!%p20_p0) target bundleno = 3 (0x3), region = 129 }
 0x29d   :  { %1416 = vsyncpa [#allocation4], 1 }
 0x29e   :  { %1418 = vsyncpa [#allocation4 + $0x1], 1 }

// kernel: _lambda_.1
= control target key start
LH: loop header
LB: loop body
LE: loop exit
PB: predicated region body
PF: predicated region fallthrough
CT: control target
= control target key end

     0   :  { %s2274_s0 = inlined_call_operand.vmem [shape: f32[2,24,128], index: 0, kind: input, shape index: {}, may-alias: {0,1,2}]   ;;  %s2275_s1 = inlined_call_operand.vmem [shape: f32[2,24,128], index: 1, kind: input, shape index: {}, may-alias: {0,1,2}]   ;;  %s2276_s2 = inlined_call_operand.vmem [shape: f32[2,24,128], index: 2, kind: input, shape index: {}, may-alias: {0,1,2}]   ;;  %s2277_s3 = inlined_call_operand.vmem [shape: f32[2,24,128], index: 3, kind: input, shape index: {}, may-alias: {3,4,5}]   ;;  %s2278_s4 = inlined_call_operand.vmem [shape: f32[2,24,128], index: 4, kind: input, shape index: {}, may-alias: {3,4,5}]   ;;  %s2279_s5 = inlined_call_operand.vmem [shape: f32[2,24,128], index: 5, kind: input, shape index: {}, may-alias: {3,4,5}]   ;;  %s2280_s6 = inlined_call_operand.hbm [shape: f32[768,256], index: 6, kind: input, shape index: {}]   ;;  %s2281_s7 = inlined_call_operand.vmem [shape: f32[1,256], index: 7, kind: input, shape index: {}]   ;;  %s2282_s8 = inlined_call_operand.vmem [shape: f32[256,128], index: 8, kind: input, shape index: {}]   ;;  %s2283_s9 = inlined_call_operand.vmem [shape: f32[8,128], index: 9, kind: input, shape index: {}]   ;;  %s2284_s10 = inlined_call_operand.vmem [shape: f32[2,24,128], index: 10, kind: output, shape index: {0}]   ;;  %s2285_s11 = inlined_call_operand.vmem [shape: f32[2,24,128], index: 11, kind: output, shape index: {1}]  }
   0x1   :  { %2286 = sst [smem:[#allocation6_spill]] %s2274_s0 }
   0x2   :  { %17 = vsyncpa [#allocation4], 0  ;;  %s1988_s17 = smov 0   ;;  %s1990_s18 = smov 0  }
   0x3   :  { %s1992_s19 = smov 0   ;;  %s1994_s20 = smov 0  }
   0x4   :  { %s1996_s21 = smov 0  }
   0x5 LB: > { %s1728_s22 = sadd.s32 4294967295, %s1921_s21   ;;  %s38_s23 = sadd.s32 1, %s1913_s19  ;;  %s1921_s21 = sphi %s1996_s21, %s23_s21   ;;  %s1917_s20 = sphi %s1994_s20, %s2295_s20   ;;  %s1913_s19 = sphi %s1992_s19, %s2294_s19   ;;  %s1909_s18 = sphi %s1990_s18, %s2293_s18   ;;  %s1905_s17 = sphi %s1988_s17, %s2292_s17  }
   0x6   : > { %p40_p0 = scmp.ge.s32.totalorder %s38_s23, 3  ;;  %s42_s24 = sadd.s32 1, %s1917_s20 }
   0x7   : > { %p1734_p1 = scmp.ge.s32.totalorder %s1921_s21, 1  ;;  %p394_p2 = scmp.lt.s32.totalorder %s1921_s21, 7 }
   0x8   : > { %s2297_s23 = smov (%p40_p0, %s38_s23), 0  ;;  %s2299_s24 = smov (!%p40_p0, %s42_s24), %s1917_s20 }
   0x9   : > { %p2021_p3 = pnand %p1734_p1, %p394_p2  ;;  %p44_p4 = scmp.ge.s32.totalorder %s2299_s24, 2 }
   0xa   : > { %p2025_p5 = scmp.eq.s32.totalorder %s1728_s22, 0  ;;  %s408_s29 = sshll.u32 %s2280_s6, 4  ;;  %s409_s29 = int_to_ptr.hbm [resolvable:$true] %s408_s29 }
   0xb   : > { %p1785_p6 = pneg %p2021_p3  ;;  %s2301_s24 = smov (%p44_p4, %s2299_s24), 0 }
   0xc   : > { %s1923_s30 = smov [#allocation3]   ;;  %s1924_s13 = smov 256  }
   0xd   : > { %s410_s12 = sshll.u32 %s1923_s30, 4  ;;  %p1786_p7 = pnand %p2025_p5, %p1785_p6  ;;  %s411_s12 = int_to_ptr.vmem [resolvable:$true] %s410_s12 }
   0xe   : > { %s1925_s14 = smov 16   ;;  %536 = sbr.rel (%p2021_p3) target bundleno = 740 (0x2e4), region = 60 }
   0xf   : > { %1788 = dma.hbm_to_vmem [thread:$0]  (!%p1786_p7), %s409_s29, 24576, %s411_s12, [#allocation4], %s1924_s13, %s1924_s13, %s1925_s14  }
  0x13   : > { %1900 = dma.done.wait (%p2025_p5), [#allocation4], 24576  }
  0x14   : > { %1902 = vsyncadd (%p2025_p5), [#allocation4], 4294942720  ;;  %p652_p8 = scmp.lt.s32.totalorder %s1909_s18, 1  ;;  %p654_p9 = scmp.lt.s32.totalorder %s1905_s17, 2  ;;  %v770_v0 = vlaneseq  ;;  %v913_v4 = vld [vmem:[#allocation3 + $0xf0] sm:$0xff]  ;;  %v911_v6 = vld [vmem:[#allocation3 + $0xe0] sm:$0xff] }
  0x15   : > { %v945_v5 = vld [vmem:[#allocation3 + $0x1f0] sm:$0xff]  ;;  %s2289_s0 = sld [smem:[#allocation6_spill]]  ;;  %v1926_v7 = vmov 0.0   ;;  %vm783_vm1 = vcmask 64512   ;;  %1081 = vmatpush.msra.mxu0 %v913_v4  ;;  %v943_v12 = vld [vmem:[#allocation3 + $0x1e0] sm:$0xff]  ;;  %s674_s12 = sadd.s32 1, %s1905_s17 }
  0x16   : > { %s2303_s18 = smov (!%p652_p8, %s1909_s18), 1  ;;  %v2047_v1 = vshrl.u32 %v770_v0, 7  ;;  %v773_v2 = vand.u32 127, %v770_v0  ;;  %1101 = vmatpush.msra.mxu1 %v945_v5  ;;  %v909_v13 = vld [vmem:[#allocation3 + $0xd0] sm:$0xff]  ;;  %v907_v15 = vld [vmem:[#allocation3 + $0xc0] sm:$0xff]  ;;  %p675_p10 = scmp.lt.s32.totalorder %s674_s12, 2 }
  0x17   : > { %s655_s15 = scalar_select %p654_p9, %s1905_s17, 2  ;;  %1082 = vmatpush.msra.mxu0 %v911_v6  ;;  %v941_v14 = vld [vmem:[#allocation3 + $0x1d0] sm:$0xff]  ;;  %v939_v18 = vld [vmem:[#allocation3 + $0x1c0] sm:$0xff] }
  0x18   : > { %s2052_s16 = smul.u32 3, %s2303_s18  ;;  %v774_v3 = vadd.s32 1, %v773_v2  ;;  %v1768_v10 = vadd.s32 4294967295, %v773_v2  ;;  %1102 = vmatpush.msra.mxu1 %v943_v12  ;;  %v977_v16 = vld [vmem:[#allocation3 + $0x2f0] sm:$0xff]  ;;  %v975_v19 = vld [vmem:[#allocation3 + $0x2e0] sm:$0xff]  ;;  %s2305_s12 = smov (!%p675_p10, %s674_s12), 2 }
  0x19   : > { %v1009_v17 = vld [vmem:[#allocation3 + $0x3f0] sm:$0xff]  ;;  %1083 = vmatpush.msra.mxu0 %v909_v13  ;;  %v1007_v20 = vld [vmem:[#allocation3 + $0x3e0] sm:$0xff]  ;;  %s2307_s12 = smov (!%p675_p10, %s2305_s12), 2  ;;  %s2089_s13 = sadd.s32 4294967295, %s1905_s17  ;;  %vm782_vm5 = vcmp.eq.s32.totalorder %v2047_v1, 0  ;;  %vm833_vm6 = vcmp.eq.s32.totalorder %v2047_v1, 7 }
  0x1a   : > { %s657_s22 = sadd.s32 %s2052_s16, %s655_s15  ;;  %vm775_vm0 = vcmp.eq.s32.totalorder %v2047_v1, %v774_v3  ;;  %vm779_vm2 = vcmp.eq.s32.totalorder %v2047_v1, %v1768_v10  ;;  %1103 = vmatpush.msra.mxu1 %v941_v14  ;;  %v905_v21 = vld [vmem:[#allocation3 + $0xb0] sm:$0xff]  ;;  %v903_v25 = vld [vmem:[#allocation3 + $0xa0] sm:$0xff]  ;;  %s682_s14 = sadd.s32 %s2052_s16, %s2307_s12  ;;  %v1338_v1 = vld [vmem:[%s2282_s8 + $0x78] sm:$0xff] }
  0x1b   : > { %s2056_s25 = sshll.u32 %s657_s22, 3  ;;  %v1767_v8 = vsel %vm775_vm0, 1.0, %v1926_v7  ;;  %v973_v22 = vld [vmem:[#allocation3 + $0x2d0] sm:$0xff]  ;;  %v1769_v23 = vsel %vm779_vm2, 1.0, %v1926_v7  ;;  %1084 = vmatpush.msra.mxu0 %v907_v15  ;;  %v935_v26 = vld [vmem:[#allocation3 + $0x1a0] sm:$0xff]  ;;  %p661_p11 = scmp.gt.s32.totalorder %s2089_s13, 0 }
  0x1c   : > { %s2062_s28 = scalar_lea.vmem %s2289_s0, %s2056_s25  ;;  %s2071_s30 = scalar_lea.vmem %s2277_s3, %s2056_s25  ;;  %v937_v24 = vld [vmem:[#allocation3 + $0x1b0] sm:$0xff]  ;;  %1104 = vmatpush.msra.mxu1 %v939_v18  ;;  %v971_v29 = vld [vmem:[#allocation3 + $0x2c0] sm:$0xff] }
  0x1d   : > { %v2065_v9 = vld [vmem:[%s2062_s28] sm:$0xff]  ;;  %1085 = vmatpush.msra.mxu0 %v905_v21  ;;  %v1005_v27 = vld [vmem:[#allocation3 + $0x3d0] sm:$0xff]  ;;  %s1752_s15 = sshll.u32 %s682_s14, 3  ;;  %p1743_p12 = scmp.lt.s32.totalorder %s2089_s13, 2 }
  0x1e   : > { %802 = vmatpush.msra.mxu2 %v2065_v9  ;;  %v2075_v11 = vld [vmem:[%s2071_s30] sm:$0xff]  ;;  %1105 = vmatpush.msra.mxu1 %v937_v24  ;;  %v901_v28 = vld [vmem:[#allocation3 + $0x90] sm:$0xff]  ;;  %v946_v24 = vld [vmem:[#allocation3 + $0x1f8] sm:$0xff]  ;;  %s764_s22 = scalar_select %p654_p9, 1, 0 }
  0x1f   : > { %826 = vmatpush.msra.mxu3 %v2075_v11  ;;  %1770 = vmatmul.msk.f32.vlgmr.msra.gmra.mxu2 %vm783_vm1, %v1767_v8  ;;  %v933_v30 = vld [vmem:[#allocation3 + $0x190] sm:$0xff]  ;;  %v1003_v31 = vld [vmem:[#allocation3 + $0x3c0] sm:$0xff]  ;;  %s684_s18 = scalar_lea.vmem %s2276_s2, %s1752_s15  ;;  %s720_s0 = scalar_lea.vmem %s2279_s5, %s1752_s15 }
  0x20   : > { %1771 = vmatmul.msk.f32.vlgmr.msra.gmra.mxu3 %vm783_vm1, %v1767_v8  ;;  %852 = vmatpush.msrb.mxu2 %v2065_v9  ;;  %v899_v32 = vld [vmem:[#allocation3 + $0x80] sm:$0xff]  ;;  %v969_v33 = vld [vmem:[#allocation3 + $0x2b0] sm:$0xff]  ;;  %s662_s14 = scalar_select %p661_p11, %s2089_s13, 0 }
  0x21   : > { %876 = vmatpush.msrb.mxu3 %v2075_v11  ;;  %1086 = vmatpush.msra.mxu0 %v903_v25  ;;  %v931_v34 = vld [vmem:[#allocation3 + $0x180] sm:$0xff]  ;;  %v1001_v35 = vld [vmem:[#allocation3 + $0x3b0] sm:$0xff]  ;;  %p754_p13 = scmp.gt.s32.totalorder %s1905_s17, 0  ;;  %s743_s29 = scalar_lea.vmem %s2284_s10, %s2056_s25 }
  0x22   : > { %1121 = vmatpush.msra.mxu2 %v977_v16  ;;  %1106 = vmatpush.msra.mxu1 %v935_v26  ;;  %v897_v36 = vld [vmem:[#allocation3 + $0x70] sm:$0xff]  ;;  %v967_v37 = vld [vmem:[#allocation3 + $0x2a0] sm:$0xff]  ;;  %v912_v26 = vld [vmem:[#allocation3 + $0xe8] sm:$0xff]  ;;  %s2309_s14 = smov (!%p1743_p12, %s662_s14), 2  ;;  %s751_s13 = scalar_lea.vmem %s2285_s11, %s2056_s25 }
  0x23   : > { %1141 = vmatpush.msra.mxu3 %v1009_v17  ;;  %1087 = vmatpush.msra.mxu0 %v901_v28  ;;  %v929_v38 = vld [vmem:[#allocation3 + $0x170] sm:$0xff]  ;;  %v999_v39 = vld [vmem:[#allocation3 + $0x3a0] sm:$0xff]  ;;  %v944_v28 = vld [vmem:[#allocation3 + $0x1e8] sm:$0xff]  ;;  %s756_s15 = scalar_select %p754_p13, 1, 0 }
  0x24   : > { %1122 = vmatpush.msra.mxu2 %v975_v19  ;;  %1107 = vmatpush.msra.mxu1 %v933_v30  ;;  %v895_v40 = vld [vmem:[#allocation3 + $0x60] sm:$0xff]  ;;  %v965_v41 = vld [vmem:[#allocation3 + $0x290] sm:$0xff]  ;;  %v910_v30 = vld [vmem:[#allocation3 + $0xd8] sm:$0xff] }
  0x25   : > { %1142 = vmatpush.msra.mxu3 %v1007_v20  ;;  %1088 = vmatpush.msra.mxu0 %v899_v32  ;;  %v927_v42 = vld [vmem:[#allocation3 + $0x160] sm:$0xff]  ;;  %v997_v43 = vld [vmem:[#allocation3 + $0x390] sm:$0xff]  ;;  %v942_v32 = vld [vmem:[#allocation3 + $0x1d8] sm:$0xff] }
  0x26   : > { %1123 = vmatpush.msra.mxu2 %v973_v22  ;;  %1108 = vmatpush.msra.mxu1 %v931_v34  ;;  %v893_v44 = vld [vmem:[#allocation3 + $0x50] sm:$0xff]  ;;  %v963_v45 = vld [vmem:[#allocation3 + $0x280] sm:$0xff]  ;;  %v914_v22 = vld [vmem:[#allocation3 + $0xf8] sm:$0xff] }
  0x27   : > { %1772 = vmatmul.msk.f32.vlgmr.msrb.gmra.mxu2 %vm783_vm1, %v1769_v23  ;;  %1143 = vmatpush.msra.mxu3 %v1005_v27  ;;  %v925_v46 = vld [vmem:[#allocation3 + $0x150] sm:$0xff]  ;;  %v995_v47 = vld [vmem:[#allocation3 + $0x380] sm:$0xff] }
  0x28   : > { %1773 = vmatmul.msk.f32.vlgmr.msrb.gmra.mxu3 %vm783_vm1, %v1769_v23  ;;  %1124 = vmatpush.msra.mxu2 %v971_v29  ;;  %v891_v48 = vld [vmem:[#allocation3 + $0x40] sm:$0xff]  ;;  %v961_v49 = vld [vmem:[#allocation3 + $0x270] sm:$0xff] }
  0x29   : > { %1144 = vmatpush.msra.mxu3 %v1003_v31  ;;  %1089 = vmatpush.msra.mxu0 %v897_v36  ;;  %v923_v50 = vld [vmem:[#allocation3 + $0x140] sm:$0xff]  ;;  %v993_v51 = vld [vmem:[#allocation3 + $0x370] sm:$0xff] }
  0x2a   : > { %1125 = vmatpush.msra.mxu2 %v969_v33  ;;  %1109 = vmatpush.msra.mxu1 %v929_v38  ;;  %v889_v52 = vld [vmem:[#allocation3 + $0x30] sm:$0xff]  ;;  %v959_v53 = vld [vmem:[#allocation3 + $0x260] sm:$0xff]  ;;  %v940_v38 = vld [vmem:[#allocation3 + $0x1c8] sm:$0xff] }
  0x2b   : > { %1145 = vmatpush.msra.mxu3 %v1001_v35  ;;  %1090 = vmatpush.msra.mxu0 %v895_v40  ;;  %v921_v54 = vld [vmem:[#allocation3 + $0x130] sm:$0xff]  ;;  %v991_v55 = vld [vmem:[#allocation3 + $0x360] sm:$0xff]  ;;  %v908_v35 = vld [vmem:[#allocation3 + $0xc8] sm:$0xff] }
  0x2c   : > { %1126 = vmatpush.msra.mxu2 %v967_v37  ;;  %1110 = vmatpush.msra.mxu1 %v927_v42  ;;  %v887_v56 = vld [vmem:[#allocation3 + $0x20] sm:$0xff]  ;;  %v957_v57 = vld [vmem:[#allocation3 + $0x250] sm:$0xff]  ;;  %v906_v40 = vld [vmem:[#allocation3 + $0xb8] sm:$0xff] }
  0x2d   : > { %1146 = vmatpush.msra.mxu3 %v999_v39  ;;  %1091 = vmatpush.msra.mxu0 %v893_v44  ;;  %v919_v58 = vld [vmem:[#allocation3 + $0x120] sm:$0xff]  ;;  %v989_v59 = vld [vmem:[#allocation3 + $0x350] sm:$0xff]  ;;  %v904_v42 = vld [vmem:[#allocation3 + $0xa8] sm:$0xff] }
  0x2e   : > { %1127 = vmatpush.msra.mxu2 %v965_v41  ;;  %1111 = vmatpush.msra.mxu1 %v925_v46  ;;  %v885_v60 = vld [vmem:[#allocation3 + $0x10] sm:$0xff]  ;;  %v955_v61 = vld [vmem:[#allocation3 + $0x240] sm:$0xff]  ;;  %v938_v41 = vld [vmem:[#allocation3 + $0x1b8] sm:$0xff] }
  0x2f   : > { %1147 = vmatpush.msra.mxu3 %v997_v43  ;;  %1092 = vmatpush.msra.mxu0 %v891_v48  ;;  %v917_v62 = vld [vmem:[#allocation3 + $0x110] sm:$0xff]  ;;  %v987_v63 = vld [vmem:[#allocation3 + $0x340] sm:$0xff]  ;;  %v936_v44 = vld [vmem:[#allocation3 + $0x1a8] sm:$0xff] }
  0x30   : > { %1128 = vmatpush.msra.mxu2 %v963_v45  ;;  %1112 = vmatpush.msra.mxu1 %v923_v50  ;;  %v883_v0 = vld [vmem:[#allocation3] sm:$0xff]  ;;  %v953_v2 = vld [vmem:[#allocation3 + $0x230] sm:$0xff]  ;;  %v902_v46 = vld [vmem:[#allocation3 + $0x98] sm:$0xff] }
  0x31   : > { %1148 = vmatpush.msra.mxu3 %v995_v47  ;;  %1093 = vmatpush.msra.mxu0 %v889_v52  ;;  %v915_v3 = vld [vmem:[#allocation3 + $0x100] sm:$0xff]  ;;  %v1041_v4 = vld [vmem:[#allocation3 + $0x4f0] sm:$0xff]  ;;  %v934_v48 = vld [vmem:[#allocation3 + $0x198] sm:$0xff] }
  0x32   : > { %1129 = vmatpush.msra.mxu2 %v961_v49  ;;  %1113 = vmatpush.msra.mxu1 %v921_v54  ;;  %v1073_v5 = vld [vmem:[#allocation3 + $0x5f0] sm:$0xff]  ;;  %v1039_v7 = vld [vmem:[#allocation3 + $0x4e0] sm:$0xff]  ;;  %v900_v50 = vld [vmem:[#allocation3 + $0x88] sm:$0xff] }
  0x33   : > { %1149 = vmatpush.msra.mxu3 %v993_v51  ;;  %1094 = vmatpush.msra.mxu0 %v887_v56  ;;  %v985_v6 = vld [vmem:[#allocation3 + $0x330] sm:$0xff]  ;;  %v951_v8 = vld [vmem:[#allocation3 + $0x220] sm:$0xff]  ;;  %v932_v52 = vld [vmem:[#allocation3 + $0x188] sm:$0xff] }
  0x34   : > { %1130 = vmatpush.msra.mxu2 %v959_v53  ;;  %1114 = vmatpush.msra.mxu1 %v919_v58  ;;  %v1071_v10 = vld [vmem:[#allocation3 + $0x5e0] sm:$0xff]  ;;  %v1037_v13 = vld [vmem:[#allocation3 + $0x4d0] sm:$0xff]  ;;  %v898_v56 = vld [vmem:[#allocation3 + $0x78] sm:$0xff] }
  0x35   : > { %1150 = vmatpush.msra.mxu3 %v991_v55  ;;  %1095 = vmatpush.msra.mxu0 %v885_v60  ;;  %v983_v12 = vld [vmem:[#allocation3 + $0x320] sm:$0xff]  ;;  %v949_v14 = vld [vmem:[#allocation3 + $0x210] sm:$0xff]  ;;  %v930_v58 = vld [vmem:[#allocation3 + $0x178] sm:$0xff] }
  0x36   : > { %1131 = vmatpush.msra.mxu2 %v957_v57  ;;  %1115 = vmatpush.msra.mxu1 %v917_v62  ;;  %v1069_v15 = vld [vmem:[#allocation3 + $0x5d0] sm:$0xff]  ;;  %v1035_v17 = vld [vmem:[#allocation3 + $0x4c0] sm:$0xff]  ;;  %v896_v60 = vld [vmem:[#allocation3 + $0x68] sm:$0xff] }
  0x37   : > { %1151 = vmatpush.msra.mxu3 %v989_v59  ;;  %1096 = vmatpush.msra.mxu0 %v883_v0  ;;  %v981_v16 = vld [vmem:[#allocation3 + $0x310] sm:$0xff]  ;;  %v947_v18 = vld [vmem:[#allocation3 + $0x200] sm:$0xff]  ;;  %v928_v62 = vld [vmem:[#allocation3 + $0x168] sm:$0xff] }
  0x38   : > { %1132 = vmatpush.msra.mxu2 %v955_v61  ;;  %1116 = vmatpush.msra.mxu1 %v915_v3  ;;  %v1067_v19 = vld [vmem:[#allocation3 + $0x5c0] sm:$0xff]  ;;  %v1033_v21 = vld [vmem:[#allocation3 + $0x4b0] sm:$0xff]  ;;  %v894_v0 = vld [vmem:[#allocation3 + $0x58] sm:$0xff] }
  0x39   : > { %1152 = vmatpush.msra.mxu3 %v987_v63  ;;  %1161 = vmatpush.msrb.mxu0 %v1041_v4  ;;  %v979_v20 = vld [vmem:[#allocation3 + $0x300] sm:$0xff]  ;;  %v1065_v23 = vld [vmem:[#allocation3 + $0x5b0] sm:$0xff]  ;;  %v978_v3 = vld [vmem:[#allocation3 + $0x2f8] sm:$0xff] }
  0x3a   : > { %1133 = vmatpush.msra.mxu2 %v953_v2  ;;  %1181 = vmatpush.msrb.mxu1 %v1073_v5  ;;  %v1031_v25 = vld [vmem:[#allocation3 + $0x4a0] sm:$0xff]  ;;  %v1029_v29 = vld [vmem:[#allocation3 + $0x490] sm:$0xff]  ;;  %v1010_v4 = vld [vmem:[#allocation3 + $0x3f8] sm:$0xff] }
  0x3b   : > { %1153 = vmatpush.msra.mxu3 %v985_v6  ;;  %1162 = vmatpush.msrb.mxu0 %v1039_v7  ;;  %v1063_v27 = vld [vmem:[#allocation3 + $0x5a0] sm:$0xff]  ;;  %v1061_v31 = vld [vmem:[#allocation3 + $0x590] sm:$0xff]  ;;  %v926_v5 = vld [vmem:[#allocation3 + $0x158] sm:$0xff] }
  0x3c   : > { %1134 = vmatpush.msra.mxu2 %v951_v8  ;;  %1182 = vmatpush.msrb.mxu1 %v1071_v10  ;;  %v1027_v33 = vld [vmem:[#allocation3 + $0x480] sm:$0xff]  ;;  %v1025_v36 = vld [vmem:[#allocation3 + $0x470] sm:$0xff]  ;;  %v976_v6 = vld [vmem:[#allocation3 + $0x2e8] sm:$0xff] }
  0x3d   : > { %1154 = vmatpush.msra.mxu3 %v983_v12  ;;  %1163 = vmatpush.msrb.mxu0 %v1037_v13  ;;  %v1059_v34 = vld [vmem:[#allocation3 + $0x580] sm:$0xff]  ;;  %v1057_v37 = vld [vmem:[#allocation3 + $0x570] sm:$0xff]  ;;  %v892_v7 = vld [vmem:[#allocation3 + $0x48] sm:$0xff] }
  0x3e   : > { %1135 = vmatpush.msra.mxu2 %v949_v14  ;;  %1183 = vmatpush.msrb.mxu1 %v1069_v15  ;;  %v1023_v39 = vld [vmem:[#allocation3 + $0x460] sm:$0xff]  ;;  %v1021_v45 = vld [vmem:[#allocation3 + $0x450] sm:$0xff]  ;;  %v1008_v8 = vld [vmem:[#allocation3 + $0x3e8] sm:$0xff] }
  0x3f   : > { %1155 = vmatpush.msra.mxu3 %v981_v16  ;;  %1164 = vmatpush.msrb.mxu0 %v1035_v17  ;;  %v1055_v43 = vld [vmem:[#allocation3 + $0x560] sm:$0xff]  ;;  %v1053_v47 = vld [vmem:[#allocation3 + $0x550] sm:$0xff]  ;;  %v924_v10 = vld [vmem:[#allocation3 + $0x148] sm:$0xff] }
  0x40   : > { %1136 = vmatpush.msra.mxu2 %v947_v18  ;;  %1184 = vmatpush.msrb.mxu1 %v1067_v19  ;;  %v1019_v49 = vld [vmem:[#allocation3 + $0x440] sm:$0xff]  ;;  %v1017_v53 = vld [vmem:[#allocation3 + $0x430] sm:$0xff]  ;;  %v974_v12 = vld [vmem:[#allocation3 + $0x2d8] sm:$0xff] }
  0x41   : > { %1156 = vmatpush.msra.mxu3 %v979_v20  ;;  %1165 = vmatpush.msrb.mxu0 %v1033_v21  ;;  %v1051_v51 = vld [vmem:[#allocation3 + $0x540] sm:$0xff]  ;;  %v1049_v54 = vld [vmem:[#allocation3 + $0x530] sm:$0xff]  ;;  %v890_v13 = vld [vmem:[#allocation3 + $0x38] sm:$0xff] }
  0x42   : > { %1201 = vmatpush.msrb.mxu2 %v914_v22  ;;  %1185 = vmatpush.msrb.mxu1 %v1065_v23  ;;  %v1015_v55 = vld [vmem:[#allocation3 + $0x420] sm:$0xff]  ;;  %v1013_v59 = vld [vmem:[#allocation3 + $0x410] sm:$0xff]  ;;  %v1006_v14 = vld [vmem:[#allocation3 + $0x3d8] sm:$0xff] }
  0x43   : > { %1221 = vmatpush.msrb.mxu3 %v946_v24  ;;  %1166 = vmatpush.msrb.mxu0 %v1031_v25  ;;  %v1047_v57 = vld [vmem:[#allocation3 + $0x520] sm:$0xff]  ;;  %v1045_v61 = vld [vmem:[#allocation3 + $0x510] sm:$0xff]  ;;  %v922_v15 = vld [vmem:[#allocation3 + $0x138] sm:$0xff] }
  0x44   : > { %1202 = vmatpush.msrb.mxu2 %v912_v26  ;;  %1186 = vmatpush.msrb.mxu1 %v1063_v27  ;;  %v1011_v63 = vld [vmem:[#allocation3 + $0x400] sm:$0xff]  ;;  %v972_v16 = vld [vmem:[#allocation3 + $0x2c8] sm:$0xff]  ;;  %v970_v20 = vld [vmem:[#allocation3 + $0x2b8] sm:$0xff] }
  0x45   : > { %1222 = vmatpush.msrb.mxu3 %v944_v28  ;;  %1167 = vmatpush.msrb.mxu0 %v1029_v29  ;;  %v1043_v2 = vld [vmem:[#allocation3 + $0x500] sm:$0xff]  ;;  %v888_v17 = vld [vmem:[#allocation3 + $0x28] sm:$0xff]  ;;  %v886_v21 = vld [vmem:[#allocation3 + $0x18] sm:$0xff] }
  0x46   : > { %1203 = vmatpush.msrb.mxu2 %v910_v30  ;;  %1187 = vmatpush.msrb.mxu1 %v1061_v31  ;;  %v1004_v18 = vld [vmem:[#allocation3 + $0x3c8] sm:$0xff]  ;;  %v1002_v22 = vld [vmem:[#allocation3 + $0x3b8] sm:$0xff] }
  0x47   : > { %1223 = vmatpush.msrb.mxu3 %v942_v32  ;;  %1168 = vmatpush.msrb.mxu0 %v1027_v33  ;;  %v920_v19 = vld [vmem:[#allocation3 + $0x128] sm:$0xff]  ;;  %v918_v23 = vld [vmem:[#allocation3 + $0x118] sm:$0xff] }
  0x48   : > { %1204 = vmatpush.msrb.mxu2 %v908_v35  ;;  %1188 = vmatpush.msrb.mxu1 %v1059_v34  ;;  %v968_v24 = vld [vmem:[#allocation3 + $0x2a8] sm:$0xff]  ;;  %v966_v26 = vld [vmem:[#allocation3 + $0x298] sm:$0xff] }
  0x49   : > { %1224 = vmatpush.msrb.mxu3 %v940_v38  ;;  %1169 = vmatpush.msrb.mxu0 %v1025_v36  ;;  %v1000_v25 = vld [vmem:[#allocation3 + $0x3a8] sm:$0xff]  ;;  %v998_v27 = vld [vmem:[#allocation3 + $0x398] sm:$0xff]  ;;  %v765_v36 = vstv %s764_s22 }
  0x4a   : > { %1205 = vmatpush.msrb.mxu2 %v906_v40  ;;  %1189 = vmatpush.msrb.mxu1 %v1057_v37  ;;  %v884_v28 = vld [vmem:[#allocation3 + $0x8] sm:$0xff]  ;;  %v962_v32 = vld [vmem:[#allocation3 + $0x278] sm:$0xff]  ;;  %v763_v37 = vld [vmem:[%s684_s18] sm:$0x1]  ;;  %vm2105_vm3 = vcmp.eq.s32.totalorder %v765_v36, 1 }
  0x4b   : > { %1225 = vmatpush.msrb.mxu3 %v938_v41  ;;  %1170 = vmatpush.msrb.mxu0 %v1023_v39  ;;  %v916_v29 = vld [vmem:[#allocation3 + $0x108] sm:$0xff]  ;;  %v994_v33 = vld [vmem:[#allocation3 + $0x378] sm:$0xff]  ;;  %v768_v39 = vld [vmem:[%s720_s0] sm:$0x1]  ;;  %s668_s0 = sadd.s32 %s2052_s16, %s2309_s14 }
  0x4c   : > { %1206 = vmatpush.msrb.mxu2 %v904_v42  ;;  %1190 = vmatpush.msrb.mxu1 %v1055_v43  ;;  %v964_v30 = vld [vmem:[#allocation3 + $0x288] sm:$0xff]  ;;  %v958_v40 = vld [vmem:[#allocation3 + $0x258] sm:$0xff]  ;;  %v767_v42 = vsel %vm2105_vm3, %v763_v37, 0.0  ;;  %v769_v43 = vsel %vm2105_vm3, %v768_v39, 0.0  ;;  %s1748_s22 = sshll.u32 %s668_s0, 3 }
  0x4d   : > { %1226 = vmatpush.msrb.mxu3 %v936_v44  ;;  %1171 = vmatpush.msrb.mxu0 %v1021_v45  ;;  %v996_v31 = vld [vmem:[#allocation3 + $0x388] sm:$0xff]  ;;  %v990_v41 = vld [vmem:[#allocation3 + $0x358] sm:$0xff]  ;;  %s670_s26 = scalar_lea.vmem %s2275_s1, %s1748_s22  ;;  %s706_s18 = scalar_lea.vmem %s2278_s4, %s1748_s22 }
  0x4e   : > { %1207 = vmatpush.msrb.mxu2 %v902_v46  ;;  %1191 = vmatpush.msrb.mxu1 %v1053_v47  ;;  %v960_v34 = vld [vmem:[#allocation3 + $0x268] sm:$0xff]  ;;  %v954_v46 = vld [vmem:[#allocation3 + $0x238] sm:$0xff] }
  0x4f   : > { %1227 = vmatpush.msrb.mxu3 %v934_v48  ;;  %1172 = vmatpush.msrb.mxu0 %v1019_v49  ;;  %v992_v35 = vld [vmem:[#allocation3 + $0x368] sm:$0xff]  ;;  %v986_v47 = vld [vmem:[#allocation3 + $0x338] sm:$0xff] }
  0x50   : > { %1208 = vmatpush.msrb.mxu2 %v900_v50  ;;  %1192 = vmatpush.msrb.mxu1 %v1051_v51  ;;  %v956_v44 = vld [vmem:[#allocation3 + $0x248] sm:$0xff]  ;;  %v950_v50 = vld [vmem:[#allocation3 + $0x218] sm:$0xff] }
  0x51   : > { %1228 = vmatpush.msrb.mxu3 %v932_v52  ;;  %1173 = vmatpush.msrb.mxu0 %v1017_v53  ;;  %v988_v45 = vld [vmem:[#allocation3 + $0x348] sm:$0xff]  ;;  %v982_v51 = vld [vmem:[#allocation3 + $0x318] sm:$0xff] }
  0x52   : > { %1117 = vmatmul.f32.vlgmr.msra.gmra.mxu1 %v2075_v11  ;;  %1097 = vmatmul.f32.vlgmr.msra.gmra.mxu0 %v2065_v9  ;;  %v952_v48 = vld [vmem:[#allocation3 + $0x228] sm:$0xff]  ;;  %v1018_v38 = vld [vmem:[#allocation3 + $0x438] sm:$0xff] }
  0x53   : > { %1193 = vmatpush.msrb.mxu1 %v1049_v54  ;;  %1174 = vmatpush.msrb.mxu0 %v1015_v55  ;;  %v984_v49 = vld [vmem:[#allocation3 + $0x328] sm:$0xff]  ;;  %v757_v54 = vstv %s756_s15  ;;  %v755_v55 = vld [vmem:[%s670_s26 + $0x7] sm:$0x1]  ;;  %v1050_v39 = vld [vmem:[#allocation3 + $0x538] sm:$0xff] }
  0x54   : > { %1209 = vmatpush.msrb.mxu2 %v898_v56  ;;  %1229 = vmatpush.msrb.mxu3 %v930_v58  ;;  %v948_v52 = vld [vmem:[#allocation3 + $0x208] sm:$0xff]  ;;  %vm758_vm4 = vcmp.eq.s32.totalorder %v757_v54, 1  ;;  %v760_v56 = vld [vmem:[%s706_s18 + $0x7] sm:$0x1] }
  0x55   : > { %1194 = vmatpush.msrb.mxu1 %v1047_v57  ;;  %1175 = vmatpush.msrb.mxu0 %v1013_v59  ;;  %v980_v53 = vld [vmem:[#allocation3 + $0x308] sm:$0xff]  ;;  %v759_v57 = vsel %vm758_vm4, %v755_v55, 0.0  ;;  %v761_v58 = vsel %vm758_vm4, %v760_v56, 0.0  ;;  %v1353_v55 = vld [vmem:[%s2282_s8 + $0xf0] sm:$0xff]  ;;  %v1323_v56 = vld [vmem:[%s2282_s8] sm:$0xff] }
  0x56   : > { %1210 = vmatpush.msrb.mxu2 %v896_v60  ;;  %1230 = vmatpush.msrb.mxu3 %v928_v62  ;;  %v809_v59 = vperm.slane %v759_v57, 0  ;;  %v831_v60 = vperm.slane %v761_v58, 0  ;;  %v1042_v62 = vld [vmem:[#allocation3 + $0x4f8] sm:$0xff]  ;;  %v1052_v36 = vld [vmem:[#allocation3 + $0x548] sm:$0xff]  ;;  %v1351_v58 = vld [vmem:[%s2282_s8 + $0xe0] sm:$0xff] }
  0x57   : > { %1195 = vmatpush.msrb.mxu1 %v1045_v61  ;;  %1176 = vmatpush.msrb.mxu0 %v1011_v63  ;;  %v1332_v37 = vld [vmem:[%s2282_s8 + $0x48] sm:$0xff] }
  0x58   : > { %1211 = vmatpush.msrb.mxu2 %v894_v0  ;;  %1231 = vmatpush.msrb.mxu3 %v926_v5  ;;  %v1072_v5 = vld [vmem:[#allocation3 + $0x5e8] sm:$0xff] }
  0x59   : > { %1196 = vmatpush.msrb.mxu1 %v1043_v2  ;;  %1241 = vmatpush.msra.mxu0 %v978_v3  ;;  %v1074_v2 = vld [vmem:[#allocation3 + $0x5f8] sm:$0xff]  ;;  %v1324_v54 = vld [vmem:[%s2282_s8 + $0x8] sm:$0xff] }
  0x5a   : > { %1212 = vmatpush.msrb.mxu2 %v892_v7  ;;  %1232 = vmatpush.msrb.mxu3 %v924_v10  ;;  %v1070_v7 = vld [vmem:[#allocation3 + $0x5d8] sm:$0xff]  ;;  %v1036_v10 = vld [vmem:[#allocation3 + $0x4c8] sm:$0xff] }
  0x5b   : > { %1261 = vmatpush.msra.mxu1 %v1010_v4  ;;  %1242 = vmatpush.msra.mxu0 %v976_v6  ;;  %v1040_v4 = vld [vmem:[#allocation3 + $0x4e8] sm:$0xff]  ;;  %v1038_v6 = vld [vmem:[#allocation3 + $0x4d8] sm:$0xff] }
  0x5c   : > { %1213 = vmatpush.msrb.mxu2 %v890_v13  ;;  %1233 = vmatpush.msrb.mxu3 %v922_v15  ;;  %v1068_v13 = vld [vmem:[#allocation3 + $0x5c8] sm:$0xff] }
  0x5d   : > { %1262 = vmatpush.msra.mxu1 %v1008_v8  ;;  %1243 = vmatpush.msra.mxu0 %v974_v12  ;;  %v859_v8 = vperm.slane %v767_v42, 0  ;;  %v881_v12 = vperm.slane %v769_v43, 0  ;;  %v1048_v42 = vld [vmem:[#allocation3 + $0x528] sm:$0xff]  ;;  %v1330_v43 = vld [vmem:[%s2282_s8 + $0x38] sm:$0xff] }
  0x5e   : > { %1214 = vmatpush.msrb.mxu2 %v888_v17  ;;  %1234 = vmatpush.msrb.mxu3 %v920_v19  ;;  %v1034_v17 = vld [vmem:[#allocation3 + $0x4b8] sm:$0xff]  ;;  %v1352_v57 = vld [vmem:[%s2282_s8 + $0xe8] sm:$0xff] }
  0x5f   : > { %1263 = vmatpush.msra.mxu1 %v1006_v14  ;;  %1244 = vmatpush.msra.mxu0 %v972_v16 }
  0x60   : > { %1215 = vmatpush.msrb.mxu2 %v886_v21  ;;  %1235 = vmatpush.msrb.mxu3 %v918_v23  ;;  %v1064_v21 = vld [vmem:[#allocation3 + $0x5a8] sm:$0xff]  ;;  %v1030_v23 = vld [vmem:[#allocation3 + $0x498] sm:$0xff] }
  0x61   : > { %1264 = vmatpush.msra.mxu1 %v1004_v18  ;;  %1245 = vmatpush.msra.mxu0 %v970_v20  ;;  %v1066_v18 = vld [vmem:[#allocation3 + $0x5b8] sm:$0xff]  ;;  %v1032_v20 = vld [vmem:[#allocation3 + $0x4a8] sm:$0xff] }
  0x62   : > { %1216 = vmatpush.msrb.mxu2 %v884_v28  ;;  %1236 = vmatpush.msrb.mxu3 %v916_v29  ;;  %v1058_v28 = vld [vmem:[#allocation3 + $0x578] sm:$0xff]  ;;  %v1024_v29 = vld [vmem:[#allocation3 + $0x468] sm:$0xff] }
  0x63   : > { %1265 = vmatpush.msra.mxu1 %v1002_v22  ;;  %1246 = vmatpush.msra.mxu0 %v968_v24  ;;  %v1337_v22 = vld [vmem:[%s2282_s8 + $0x70] sm:$0xff]  ;;  %v1062_v24 = vld [vmem:[#allocation3 + $0x598] sm:$0xff] }
  0x65   : > { %1266 = vmatpush.msra.mxu1 %v1000_v25  ;;  %1247 = vmatpush.msra.mxu0 %v966_v26  ;;  %v1336_v25 = vld [vmem:[%s2282_s8 + $0x68] sm:$0xff] }
  0x66   : > { %v1060_v26 = vld [vmem:[#allocation3 + $0x588] sm:$0xff] }
  0x67   : > { %1267 = vmatpush.msra.mxu1 %v998_v27  ;;  %1248 = vmatpush.msra.mxu0 %v964_v30  ;;  %v1026_v27 = vld [vmem:[#allocation3 + $0x478] sm:$0xff]  ;;  %v1056_v30 = vld [vmem:[#allocation3 + $0x568] sm:$0xff] }
  0x69   : > { %1268 = vmatpush.msra.mxu1 %v996_v31  ;;  %1249 = vmatpush.msra.mxu0 %v962_v32  ;;  %v1334_v31 = vld [vmem:[%s2282_s8 + $0x58] sm:$0xff] }
  0x6a   : > { %v1022_v32 = vld [vmem:[#allocation3 + $0x458] sm:$0xff] }
  0x6b   : > { %1269 = vmatpush.msra.mxu1 %v994_v33  ;;  %1250 = vmatpush.msra.mxu0 %v960_v34  ;;  %v1054_v33 = vld [vmem:[#allocation3 + $0x558] sm:$0xff]  ;;  %v1333_v34 = vld [vmem:[%s2282_s8 + $0x50] sm:$0xff] }
  0x6d   : > { %1270 = vmatpush.msra.mxu1 %v992_v35  ;;  %1251 = vmatpush.msra.mxu0 %v958_v40  ;;  %v1020_v35 = vld [vmem:[#allocation3 + $0x448] sm:$0xff]  ;;  %v1331_v40 = vld [vmem:[%s2282_s8 + $0x40] sm:$0xff] }
  0x6f   : > { %1271 = vmatpush.msra.mxu1 %v990_v41  ;;  %1252 = vmatpush.msra.mxu0 %v956_v44  ;;  %v1016_v41 = vld [vmem:[#allocation3 + $0x428] sm:$0xff]  ;;  %v1014_v44 = vld [vmem:[#allocation3 + $0x418] sm:$0xff] }
  0x71   : > { %1272 = vmatpush.msra.mxu1 %v988_v45  ;;  %1253 = vmatpush.msra.mxu0 %v954_v46  ;;  %v1046_v45 = vld [vmem:[#allocation3 + $0x518] sm:$0xff]  ;;  %v1329_v46 = vld [vmem:[%s2282_s8 + $0x30] sm:$0xff] }
  0x73   : > { %1273 = vmatpush.msra.mxu1 %v986_v47  ;;  %1254 = vmatpush.msra.mxu0 %v952_v48  ;;  %v1012_v47 = vld [vmem:[#allocation3 + $0x408] sm:$0xff] }
  0x74   : > { %v1044_v48 = vld [vmem:[#allocation3 + $0x508] sm:$0xff] }
  0x75   : > { %1274 = vmatpush.msra.mxu1 %v984_v49  ;;  %1255 = vmatpush.msra.mxu0 %v950_v50  ;;  %v1328_v49 = vld [vmem:[%s2282_s8 + $0x28] sm:$0xff]  ;;  %v1327_v50 = vld [vmem:[%s2282_s8 + $0x20] sm:$0xff] }
  0x77   : > { %1275 = vmatpush.msra.mxu1 %v982_v51  ;;  %1256 = vmatpush.msra.mxu0 %v948_v52  ;;  %v1326_v51 = vld [vmem:[%s2282_s8 + $0x18] sm:$0xff]  ;;  %v1325_v52 = vld [vmem:[%s2282_s8 + $0x10] sm:$0xff] }
  0x79   : > { %1276 = vmatpush.msra.mxu1 %v980_v53  ;;  %v1354_v53 = vld [vmem:[%s2282_s8 + $0xf8] sm:$0xff] }
  0xa2   : > { %v804_v61 = vpop.f32.mrf.mxu2 }
  0xa3   : > { %v810_v63 = vsel %vm782_vm5, %v809_v59, %v804_v61  ;;  %v828_v0 = vpop.f32.mrf.mxu3  ;;  %v1350_v59 = vld [vmem:[%s2282_s8 + $0xd8] sm:$0xff]  ;;  %v1075_v61 = vld [vmem:[%s2281_s7] sm:$0x3] }
  0xa4   : > { %v832_v3 = vsel %vm782_vm5, %v831_v60, %v828_v0  ;;  %1137 = vmatmul.f32.vlgmr.msra.gmra.mxu2 %v810_v63  ;;  %v1349_v60 = vld [vmem:[%s2282_s8 + $0xd0] sm:$0xff]  ;;  %v1077_v0 = vperm.slane %v1075_v61, 0 }
  0xa5   : > { %1157 = vmatmul.f32.vlgmr.msra.gmra.mxu3 %v832_v3  ;;  %1281 = vmatpush.msra.mxu2 %v1042_v62  ;;  %v1348_v62 = vld [vmem:[%s2282_s8 + $0xc8] sm:$0xff] }
  0xa6   : > { %1301 = vmatpush.msra.mxu3 %v1074_v2  ;;  %v1346_v2 = vld [vmem:[%s2282_s8 + $0xb8] sm:$0xff] }
  0xa7   : > { %1282 = vmatpush.msra.mxu2 %v1040_v4  ;;  %v1345_v4 = vld [vmem:[%s2282_s8 + $0xb0] sm:$0xff] }
  0xa8   : > { %1302 = vmatpush.msra.mxu3 %v1072_v5 }
  0xa9   : > { %1283 = vmatpush.msra.mxu2 %v1038_v6  ;;  %v1344_v6 = vld [vmem:[%s2282_s8 + $0xa8] sm:$0xff] }
  0xaa   : > { %1303 = vmatpush.msra.mxu3 %v1070_v7  ;;  %v854_v14 = vpop.f32.mrf.mxu2 }
  0xab   : > { %v878_v15 = vpop.f32.mrf.mxu3  ;;  %1284 = vmatpush.msra.mxu2 %v1036_v10  ;;  %v2125_v16 = vsel %vm833_vm6, %v859_v8, %v854_v14  ;;  %v1343_v8 = vld [vmem:[%s2282_s8 + $0xa0] sm:$0xff] }
  0xac   : > { %1304 = vmatpush.msra.mxu3 %v1068_v13  ;;  %1177 = vmatmul.f32.vlgmr.msrb.gmra.mxu0 %v2125_v16  ;;  %v2128_v19 = vsel %vm833_vm6, %v881_v12, %v878_v15  ;;  %v1342_v13 = vld [vmem:[%s2282_s8 + $0x98] sm:$0xff] }
  0xad   : > { %1197 = vmatmul.f32.vlgmr.msrb.gmra.mxu1 %v2128_v19  ;;  %1217 = vmatmul.f32.vlgmr.msrb.gmra.mxu2 %v2065_v9  ;;  %v1028_v9 = vld [vmem:[#allocation3 + $0x488] sm:$0xff] }
  0xae   : > { %1285 = vmatpush.msra.mxu2 %v1034_v17  ;;  %1305 = vmatpush.msra.mxu3 %v1066_v18 }
  0xaf   : > { %1237 = vmatmul.f32.vlgmr.msrb.gmra.mxu3 %v2075_v11  ;;  %1361 = vmatpush.msrb.mxu0 %v1338_v1  ;;  %v1335_v11 = vld [vmem:[%s2282_s8 + $0x60] sm:$0xff] }
  0xb0   : > { %1286 = vmatpush.msra.mxu2 %v1032_v20  ;;  %1306 = vmatpush.msra.mxu3 %v1064_v21  ;;  %v1339_v21 = vld [vmem:[%s2282_s8 + $0x80] sm:$0xff] }
  0xb1   : > { %1362 = vmatpush.msrb.mxu0 %v1337_v22  ;;  %1381 = vmatpush.msrb.mxu1 %v1354_v53 }
  0xb2   : > { %1287 = vmatpush.msra.mxu2 %v1030_v23  ;;  %1307 = vmatpush.msra.mxu3 %v1062_v24  ;;  %v1078_v24 = vperm.slane %v1075_v61, 1 }
  0xb3   : > { %1363 = vmatpush.msrb.mxu0 %v1336_v25  ;;  %1382 = vmatpush.msrb.mxu1 %v1353_v55 }
  0xb4   : > { %1288 = vmatpush.msra.mxu2 %v1028_v9  ;;  %1308 = vmatpush.msra.mxu3 %v1060_v26 }
  0xb5   : > { %1257 = vmatmul.f32.vlgmr.msra.gmra.mxu0 %v810_v63  ;;  %1277 = vmatmul.f32.vlgmr.msra.gmra.mxu1 %v832_v3  ;;  %v1347_v63 = vld [vmem:[%s2282_s8 + $0xc0] sm:$0xff] }
  0xb6   : > { %1289 = vmatpush.msra.mxu2 %v1026_v27  ;;  %1309 = vmatpush.msra.mxu3 %v1058_v28 }
  0xb7   : > { %1364 = vmatpush.msrb.mxu0 %v1335_v11  ;;  %1383 = vmatpush.msrb.mxu1 %v1352_v57 }
  0xb8   : > { %1290 = vmatpush.msra.mxu2 %v1024_v29  ;;  %1310 = vmatpush.msra.mxu3 %v1056_v30 }
  0xb9   : > { %1365 = vmatpush.msrb.mxu0 %v1334_v31  ;;  %1384 = vmatpush.msrb.mxu1 %v1351_v58 }
  0xba   : > { %1291 = vmatpush.msra.mxu2 %v1022_v32  ;;  %1311 = vmatpush.msra.mxu3 %v1054_v33 }
  0xbb   : > { %1366 = vmatpush.msrb.mxu0 %v1333_v34  ;;  %1385 = vmatpush.msrb.mxu1 %v1350_v59 }
  0xbc   : > { %1292 = vmatpush.msra.mxu2 %v1020_v35  ;;  %1312 = vmatpush.msra.mxu3 %v1052_v36  ;;  %v1836_v36 = vld [vmem:[%s2283_s9] ss:$0 sm:$0xff] }
  0xbd   : > { %1367 = vmatpush.msrb.mxu0 %v1332_v37  ;;  %1386 = vmatpush.msrb.mxu1 %v1349_v60 }
  0xbe   : > { %1293 = vmatpush.msra.mxu2 %v1018_v38  ;;  %1313 = vmatpush.msra.mxu3 %v1050_v39 }
  0xbf   : > { %1368 = vmatpush.msrb.mxu0 %v1331_v40  ;;  %1387 = vmatpush.msrb.mxu1 %v1348_v62 }
  0xc0   : > { %1294 = vmatpush.msra.mxu2 %v1016_v41  ;;  %1314 = vmatpush.msra.mxu3 %v1048_v42  ;;  %v1847_v41 = vld [vmem:[%s2062_s28] sm:$0xff] }
  0xc1   : > { %1369 = vmatpush.msrb.mxu0 %v1330_v43  ;;  %1388 = vmatpush.msrb.mxu1 %v1347_v63  ;;  %v1848_v43 = vld [vmem:[%s2071_s30] sm:$0xff] }
  0xc2   : > { %1295 = vmatpush.msra.mxu2 %v1014_v44  ;;  %1315 = vmatpush.msra.mxu3 %v1046_v45  ;;  %v1927_v45 = vmov 128.0  }
  0xc3   : > { %1370 = vmatpush.msrb.mxu0 %v1329_v46  ;;  %1389 = vmatpush.msrb.mxu1 %v1346_v2  ;;  %1841 = vrcp.f32 %v1927_v45 }
  0xc4   : > { %1296 = vmatpush.msra.mxu2 %v1012_v47  ;;  %1316 = vmatpush.msra.mxu3 %v1044_v48 }
  0xc5   : > { %1297 = vmatmul.f32.vlgmr.msra.gmra.mxu2 %v2125_v16  ;;  %1317 = vmatmul.f32.vlgmr.msra.gmra.mxu3 %v2128_v19  ;;  %v1341_v16 = vld [vmem:[%s2282_s8 + $0x90] sm:$0xff]  ;;  %v1340_v19 = vld [vmem:[%s2282_s8 + $0x88] sm:$0xff] }
  0xc6   : > { %1371 = vmatpush.msrb.mxu0 %v1328_v49  ;;  %1390 = vmatpush.msrb.mxu1 %v1345_v4 }
  0xc8   : > { %1372 = vmatpush.msrb.mxu0 %v1327_v50  ;;  %1391 = vmatpush.msrb.mxu1 %v1344_v6 }
  0xc9   : > { %v1842_v46 = vpop.eup %1841 }
  0xca   : > { %1373 = vmatpush.msrb.mxu0 %v1326_v51  ;;  %1392 = vmatpush.msrb.mxu1 %v1343_v8  ;;  %v1405_v47 = vmul.f32 128.0, %v1842_v46  ;;  %vm1409_vm7 = vweird.f32 %v1842_v46 }
  0xcc   : > { %1374 = vmatpush.msrb.mxu0 %v1325_v52  ;;  %1393 = vmatpush.msrb.mxu1 %v1342_v13  ;;  %v1406_v48 = vsub.f32 1.0, %v1405_v47  ;;  %v1837_v13 = vld [vmem:[%s2283_s9 + $0x1] ss:$0 sm:$0xff] }
  0xce   : > { %1375 = vmatpush.msrb.mxu0 %v1324_v54  ;;  %1394 = vmatpush.msrb.mxu1 %v1341_v16  ;;  %v1407_v49 = vmul.f32 %v1842_v46, %v1406_v48  ;;  %v1838_v16 = vld [vmem:[%s2283_s9 + $0x2] ss:$0 sm:$0xff] }
  0xcf   : > { %v1098_v3 = vpop.f32.mrf.mxu0  ;;  %v1118_v7 = vpop.f32.mrf.mxu1 }
  0xd0   : > { %1376 = vmatpush.msrb.mxu0 %v1323_v56  ;;  %v1099_v5 = vadd.f32 %v1098_v3, %v1077_v0  ;;  %1395 = vmatpush.msrb.mxu1 %v1340_v19  ;;  %v1408_v50 = vadd.f32 %v1842_v46, %v1407_v49 }
  0xd2   : > { %v1119_v10 = vadd.f32 %v1118_v7, %v1099_v5  ;;  %1396 = vmatpush.msrb.mxu1 %v1339_v21  ;;  %v1410_v51 = vsel %vm1409_vm7, %v1842_v46, %v1408_v50 }
 0x127   : > { %v1138_v12 = vpop.f32.mrf.mxu2 }
 0x128   : > { %v1139_v14 = vadd.f32 %v1138_v12, %v1119_v10  ;;  %v1158_v15 = vpop.f32.mrf.mxu3 }
 0x129   : > { %v1178_v18 = vpop.f32.mrf.mxu0 }
 0x12a   : > { %v1159_v17 = vadd.f32 %v1158_v15, %v1139_v14  ;;  %v1198_v20 = vpop.f32.mrf.mxu1 }
 0x12c   : > { %v1179_v1 = vadd.f32 %v1178_v18, %v1159_v17 }
 0x12e   : > { %v1199_v22 = vadd.f32 %v1198_v20, %v1179_v1 }
 0x130   : > { %v1321_v23 = vmax.f32 %v1199_v22, 0.0  ;;  %v1218_v25 = vpop.f32.mrf.mxu2  ;;  %v1839_v22 = vld [vmem:[%s2283_s9 + $0x3] ss:$0 sm:$0xff] }
 0x131   : > { %v1219_v9 = vadd.f32 %v1218_v25, %v1078_v24  ;;  %v1840_v24 = vld [vmem:[%s2283_s9 + $0x4] ss:$0 sm:$0xff] }
 0x132   : > { %1377 = vmatmul.f32.vlgmr.msrb.gmra.mxu0 %v1321_v23  ;;  %v1238_v26 = vpop.f32.mrf.mxu3  ;;  %v1258_v28 = vpop.f32.mrf.mxu0 }
 0x133   : > { %v1239_v27 = vadd.f32 %v1238_v26, %v1219_v9  ;;  %v1278_v29 = vpop.f32.mrf.mxu1 }
 0x135   : > { %v1259_v11 = vadd.f32 %v1258_v28, %v1239_v27 }
 0x137   : > { %v1279_v30 = vadd.f32 %v1278_v29, %v1259_v11 }
 0x148   : > { %v1298_v31 = vpop.f32.mrf.mxu2  ;;  %v1318_v33 = vpop.f32.mrf.mxu3 }
 0x149   : > { %v1299_v32 = vadd.f32 %v1298_v31, %v1279_v30 }
 0x14b   : > { %v1319_v34 = vadd.f32 %v1318_v33, %v1299_v32 }
 0x14d   : > { %v1322_v35 = vmax.f32 %v1319_v34, 0.0 }
 0x14f   : > { %1397 = vmatmul.f32.vlgmr.msrb.gmra.mxu1 %v1322_v35 }
 0x1af   : > { %v1378_v37 = vpop.f32.mrf.mxu0 }
 0x1b0   : > { %v1379_v38 = vadd.f32 %v1836_v36, %v1378_v37 }
 0x1cc   : > { %v1398_v39 = vpop.f32.mrf.mxu1 }
 0x1cd   : > { %v1399_v40 = vadd.f32 %v1398_v39, %v1379_v38 }
 0x1cf   : > { %v1401_v42 = vadd.f32 %v1847_v41, %v1399_v40  ;;  %v1434_v44 = vadd.f32 %v1848_v43, %v1399_v40 }
 0x1d1   : > { %1402 = vadd.xlane.f32.xlu0 %v1401_v42 }
 0x1d9   : > { %1435 = vadd.xlane.f32.xlu0 %v1434_v44 }
 0x244   : > { %v1403_v52 = vpop.xlane.xlu0 %1402 }
 0x245   : > { %v1411_v53 = vmul.f32 %v1410_v51, %v1403_v52 }
 0x247   : > { %v1412_v54 = vsub.f32 %v1401_v42, %v1411_v53 }
 0x249   : > { %v1413_v55 = vmul.f32 %v1412_v54, %v1412_v54 }
 0x24b   : > { %1414 = vadd.xlane.f32.xlu1 %v1413_v55 }
 0x24c   : > { %v1436_v56 = vpop.xlane.xlu0 %1435 }
 0x24d   : > { %v1437_v57 = vmul.f32 %v1436_v56, %v1410_v51 }
 0x24f   : > { %v1438_v58 = vsub.f32 %v1434_v44, %v1437_v57 }
 0x251   : > { %v1439_v59 = vmul.f32 %v1438_v58, %v1438_v58 }
 0x253   : > { %1440 = vadd.xlane.f32.xlu1 %v1439_v59 }
 0x2be   : > { %v1415_v60 = vpop.xlane.xlu1 %1414 }
 0x2bf   : > { %v1416_v61 = vmul.f32 %v1415_v60, %v1410_v51 }
 0x2c1   : > { %v1417_v62 = vadd.f32 1e-12, %v1416_v61 }
 0x2c3   : > { %1843 = vrsqrt.f32 %v1417_v62  ;;  %vm1424_vm9 = vweird.f32 %v1417_v62 }
 0x2c6   : > { %v1441_v63 = vpop.xlane.xlu1 %1440 }
 0x2c7   : > { %v1442_v0 = vmul.f32 %v1441_v63, %v1410_v51 }
 0x2c9   : > { %v1844_v2 = vpop.eup %1843  ;;  %v1443_v3 = vadd.f32 1e-12, %v1442_v0 }
 0x2ca   : > { %v1419_v4 = vmul.f32 %v1844_v2, %v1417_v62  ;;  %vm1425_vm8 = vweird.f32 %v1844_v2 }
 0x2cb   : > { %1845 = vrsqrt.f32 %v1443_v3  ;;  %vm1426_vm10 = vmor %vm1424_vm9, %vm1425_vm8  ;;  %vm1450_vm12 = vweird.f32 %v1443_v3 }
 0x2cc   : > { %v1420_v5 = vmul.f32 %v1844_v2, %v1419_v4 }
 0x2ce   : > { %v1421_v6 = vmul.f32 0.5, %v1420_v5 }
 0x2d0   : > { %v1422_v7 = vsub.f32 1.5, %v1421_v6 }
 0x2d1   : > { %v1846_v8 = vpop.eup %1845 }
 0x2d2   : > { %v1423_v10 = vmul.f32 %v1844_v2, %v1422_v7  ;;  %v1445_v12 = vmul.f32 %v1846_v8, %v1443_v3  ;;  %vm1451_vm11 = vweird.f32 %v1846_v8 }
 0x2d3   : > { %vm1452_vm13 = vmor %vm1450_vm12, %vm1451_vm11 }
 0x2d4   : > { %v1427_v14 = vsel %vm1426_vm10, %v1844_v2, %v1423_v10  ;;  %v1446_v15 = vmul.f32 %v1846_v8, %v1445_v12 }
 0x2d5   : > { %v1428_v17 = vmul.f32 %v1427_v14, %v1412_v54 }
 0x2d6   : > { %v1447_v18 = vmul.f32 0.5, %v1446_v15 }
 0x2d7   : > { %v1430_v19 = vmul.f32 %v1837_v13, %v1428_v17 }
 0x2d8   : > { %v1448_v1 = vsub.f32 1.5, %v1447_v18 }
 0x2d9   : > { %v1432_v20 = vadd.f32 %v1838_v16, %v1430_v19 }
 0x2da   : > { %v1449_v21 = vmul.f32 %v1846_v8, %v1448_v1 }
 0x2db   : > { %1433 = vst [vmem:[%s743_s29] sm:$0xff] %v1432_v20 }
 0x2dc   : > { %v1453_v23 = vsel %vm1452_vm13, %v1846_v8, %v1449_v21 }
 0x2dd   : > { %v1454_v25 = vmul.f32 %v1453_v23, %v1438_v58 }
 0x2df   : > { %v1456_v9 = vmul.f32 %v1839_v22, %v1454_v25 }
 0x2e1   : > { %v1458_v26 = vadd.f32 %v1840_v24, %v1456_v9 }
 0x2e3   : > { %1459 = vst [vmem:[%s751_s13] sm:$0xff] %v1458_v26 }
 0x2e4 PF: > { %s23_s21 = sadd.s32 1, %s1921_s21   ;;  %s2292_s17 = smov %s1913_s19 }
 0x2e5   : > { %p20_p0 = scmp.ge.s32.totalorder %s23_s21, 8   ;;  %s2293_s18 = smov %s1917_s20 }
 0x2e6   : > { %s2294_s19 = smov %s2297_s23  ;;  %s2295_s20 = smov %s2301_s24 }
 0x2e7   :  { %22 = sbr.rel (!%p20_p0) target bundleno = 5 (0x5), region = 129 }
 0x2ec   :  { %1509 = vsyncpa [#allocation4], 1 }
 0x2ed   :  { %1511 = vsyncpa [#allocation4 + $0x1], 1 }

// kernel: _lambda_.1
= control target key start
LH: loop header
LB: loop body
LE: loop exit
PB: predicated region body
PF: predicated region fallthrough
CT: control target
= control target key end

     0   :  { %s2274_s0 = inlined_call_operand.vmem [shape: f32[2,24,128], index: 0, kind: input, shape index: {}, may-alias: {0,1,2}]   ;;  %s2275_s1 = inlined_call_operand.vmem [shape: f32[2,24,128], index: 1, kind: input, shape index: {}, may-alias: {0,1,2}]   ;;  %s2276_s2 = inlined_call_operand.vmem [shape: f32[2,24,128], index: 2, kind: input, shape index: {}, may-alias: {0,1,2}]   ;;  %s2277_s3 = inlined_call_operand.vmem [shape: f32[2,24,128], index: 3, kind: input, shape index: {}, may-alias: {3,4,5}]   ;;  %s2278_s4 = inlined_call_operand.vmem [shape: f32[2,24,128], index: 4, kind: input, shape index: {}, may-alias: {3,4,5}]   ;;  %s2279_s5 = inlined_call_operand.vmem [shape: f32[2,24,128], index: 5, kind: input, shape index: {}, may-alias: {3,4,5}]   ;;  %s2280_s6 = inlined_call_operand.hbm [shape: f32[768,256], index: 6, kind: input, shape index: {}]   ;;  %s2281_s7 = inlined_call_operand.vmem [shape: f32[1,256], index: 7, kind: input, shape index: {}]   ;;  %s2282_s8 = inlined_call_operand.vmem [shape: f32[256,128], index: 8, kind: input, shape index: {}]   ;;  %s2283_s9 = inlined_call_operand.vmem [shape: f32[8,128], index: 9, kind: input, shape index: {}]   ;;  %s2284_s10 = inlined_call_operand.vmem [shape: f32[2,24,128], index: 10, kind: output, shape index: {0}]   ;;  %s2285_s11 = inlined_call_operand.vmem [shape: f32[2,24,128], index: 11, kind: output, shape index: {1}]  }
   0x1   :  { %2286 = sst [smem:[#allocation6_spill]] %s2274_s0 }
   0x2   :  { %17 = vsyncpa [#allocation4], 0  ;;  %s1988_s17 = smov 0   ;;  %s1990_s18 = smov 0  }
   0x3   :  { %s1992_s19 = smov 0   ;;  %s1994_s20 = smov 0  }
   0x4   :  { %s1996_s21 = smov 0  }
   0x5 LB: > { %s1728_s22 = sadd.s32 4294967295, %s1921_s21   ;;  %s38_s23 = sadd.s32 1, %s1913_s19  ;;  %s1921_s21 = sphi %s1996_s21, %s23_s21   ;;  %s1917_s20 = sphi %s1994_s20, %s2295_s20   ;;  %s1913_s19 = sphi %s1992_s19, %s2294_s19   ;;  %s1909_s18 = sphi %s1990_s18, %s2293_s18   ;;  %s1905_s17 = sphi %s1988_s17, %s2292_s17  }
   0x6   : > { %p40_p0 = scmp.ge.s32.totalorder %s38_s23, 3  ;;  %s42_s24 = sadd.s32 1, %s1917_s20 }
   0x7   : > { %p1734_p1 = scmp.ge.s32.totalorder %s1921_s21, 1  ;;  %p394_p2 = scmp.lt.s32.totalorder %s1921_s21, 7 }
   0x8   : > { %s2297_s23 = smov (%p40_p0, %s38_s23), 0  ;;  %s2299_s24 = smov (!%p40_p0, %s42_s24), %s1917_s20 }
   0x9   : > { %p2021_p3 = pnand %p1734_p1, %p394_p2  ;;  %p44_p4 = scmp.ge.s32.totalorder %s2299_s24, 2 }
   0xa   : > { %p2025_p5 = scmp.eq.s32.totalorder %s1728_s22, 0  ;;  %s408_s29 = sshll.u32 %s2280_s6, 4  ;;  %s409_s29 = int_to_ptr.hbm [resolvable:$true] %s408_s29 }
   0xb   : > { %p1785_p6 = pneg %p2021_p3  ;;  %s2301_s24 = smov (%p44_p4, %s2299_s24), 0 }
   0xc   : > { %s1923_s30 = smov [#allocation3]   ;;  %s1924_s13 = smov 256  }
   0xd   : > { %s410_s12 = sshll.u32 %s1923_s30, 4  ;;  %p1786_p7 = pnand %p2025_p5, %p1785_p6  ;;  %s411_s12 = int_to_ptr.vmem [resolvable:$true] %s410_s12 }
   0xe   : > { %s1925_s14 = smov 16   ;;  %536 = sbr.rel (%p2021_p3) target bundleno = 740 (0x2e4), region = 60 }
   0xf   : > { %1788 = dma.hbm_to_vmem [thread:$0]  (!%p1786_p7), %s409_s29, 24576, %s411_s12, [#allocation4], %s1924_s13, %s1924_s13, %s1925_s14  }
  0x13   : > { %1900 = dma.done.wait (%p2025_p5), [#allocation4], 24576  }
  0x14   : > { %1902 = vsyncadd (%p2025_p5), [#allocation4], 4294942720  ;;  %p652_p8 = scmp.lt.s32.totalorder %s1909_s18, 1  ;;  %p654_p9 = scmp.lt.s32.totalorder %s1905_s17, 2  ;;  %v770_v0 = vlaneseq  ;;  %v913_v4 = vld [vmem:[#allocation3 + $0xf0] sm:$0xff]  ;;  %v911_v6 = vld [vmem:[#allocation3 + $0xe0] sm:$0xff] }
  0x15   : > { %v945_v5 = vld [vmem:[#allocation3 + $0x1f0] sm:$0xff]  ;;  %s2289_s0 = sld [smem:[#allocation6_spill]]  ;;  %v1926_v7 = vmov 0.0   ;;  %vm783_vm1 = vcmask 64512   ;;  %1081 = vmatpush.msra.mxu0 %v913_v4  ;;  %v943_v12 = vld [vmem:[#allocation3 + $0x1e0] sm:$0xff]  ;;  %s674_s12 = sadd.s32 1, %s1905_s17 }
  0x16   : > { %s2303_s18 = smov (!%p652_p8, %s1909_s18), 1  ;;  %v2047_v1 = vshrl.u32 %v770_v0, 7  ;;  %v773_v2 = vand.u32 127, %v770_v0  ;;  %1101 = vmatpush.msra.mxu1 %v945_v5  ;;  %v909_v13 = vld [vmem:[#allocation3 + $0xd0] sm:$0xff]  ;;  %v907_v15 = vld [vmem:[#allocation3 + $0xc0] sm:$0xff]  ;;  %p675_p10 = scmp.lt.s32.totalorder %s674_s12, 2 }
  0x17   : > { %s655_s15 = scalar_select %p654_p9, %s1905_s17, 2  ;;  %1082 = vmatpush.msra.mxu0 %v911_v6  ;;  %v941_v14 = vld [vmem:[#allocation3 + $0x1d0] sm:$0xff]  ;;  %v939_v18 = vld [vmem:[#allocation3 + $0x1c0] sm:$0xff] }
  0x18   : > { %s2052_s16 = smul.u32 3, %s2303_s18  ;;  %v774_v3 = vadd.s32 1, %v773_v2  ;;  %v1768_v10 = vadd.s32 4294967295, %v773_v2  ;;  %1102 = vmatpush.msra.mxu1 %v943_v12  ;;  %v977_v16 = vld [vmem:[#allocation3 + $0x2f0] sm:$0xff]  ;;  %v975_v19 = vld [vmem:[#allocation3 + $0x2e0] sm:$0xff]  ;;  %s2305_s12 = smov (!%p675_p10, %s674_s12), 2 }
  0x19   : > { %v1009_v17 = vld [vmem:[#allocation3 + $0x3f0] sm:$0xff]  ;;  %1083 = vmatpush.msra.mxu0 %v909_v13  ;;  %v1007_v20 = vld [vmem:[#allocation3 + $0x3e0] sm:$0xff]  ;;  %s2307_s12 = smov (!%p675_p10, %s2305_s12), 2  ;;  %s2089_s13 = sadd.s32 4294967295, %s1905_s17  ;;  %vm782_vm5 = vcmp.eq.s32.totalorder %v2047_v1, 0  ;;  %vm833_vm6 = vcmp.eq.s32.totalorder %v2047_v1, 7 }
  0x1a   : > { %s657_s22 = sadd.s32 %s2052_s16, %s655_s15  ;;  %vm775_vm0 = vcmp.eq.s32.totalorder %v2047_v1, %v774_v3  ;;  %vm779_vm2 = vcmp.eq.s32.totalorder %v2047_v1, %v1768_v10  ;;  %1103 = vmatpush.msra.mxu1 %v941_v14  ;;  %v905_v21 = vld [vmem:[#allocation3 + $0xb0] sm:$0xff]  ;;  %v903_v25 = vld [vmem:[#allocation3 + $0xa0] sm:$0xff]  ;;  %s682_s14 = sadd.s32 %s2052_s16, %s2307_s12  ;;  %v1338_v1 = vld [vmem:[%s2282_s8 + $0x78] sm:$0xff] }
  0x1b   : > { %s2056_s25 = sshll.u32 %s657_s22, 3  ;;  %v1767_v8 = vsel %vm775_vm0, 1.0, %v1926_v7  ;;  %v973_v22 = vld [vmem:[#allocation3 + $0x2d0] sm:$0xff]  ;;  %v1769_v23 = vsel %vm779_vm2, 1.0, %v1926_v7  ;;  %1084 = vmatpush.msra.mxu0 %v907_v15  ;;  %v935_v26 = vld [vmem:[#allocation3 + $0x1a0] sm:$0xff]  ;;  %p661_p11 = scmp.gt.s32.totalorder %s2089_s13, 0 }
  0x1c   : > { %s2062_s28 = scalar_lea.vmem %s2289_s0, %s2056_s25  ;;  %s2071_s30 = scalar_lea.vmem %s2277_s3, %s2056_s25  ;;  %v937_v24 = vld [vmem:[#allocation3 + $0x1b0] sm:$0xff]  ;;  %1104 = vmatpush.msra.mxu1 %v939_v18  ;;  %v971_v29 = vld [vmem:[#allocation3 + $0x2c0] sm:$0xff] }
  0x1d   : > { %v2065_v9 = vld [vmem:[%s2062_s28] sm:$0xff]  ;;  %1085 = vmatpush.msra.mxu0 %v905_v21  ;;  %v1005_v27 = vld [vmem:[#allocation3 + $0x3d0] sm:$0xff]  ;;  %s1752_s15 = sshll.u32 %s682_s14, 3  ;;  %p1743_p12 = scmp.lt.s32.totalorder %s2089_s13, 2 }
  0x1e   : > { %802 = vmatpush.msra.mxu2 %v2065_v9  ;;  %v2075_v11 = vld [vmem:[%s2071_s30] sm:$0xff]  ;;  %1105 = vmatpush.msra.mxu1 %v937_v24  ;;  %v901_v28 = vld [vmem:[#allocation3 + $0x90] sm:$0xff]  ;;  %v946_v24 = vld [vmem:[#allocation3 + $0x1f8] sm:$0xff]  ;;  %s764_s22 = scalar_select %p654_p9, 1, 0 }
  0x1f   : > { %826 = vmatpush.msra.mxu3 %v2075_v11  ;;  %1770 = vmatmul.msk.f32.vlgmr.msra.gmra.mxu2 %vm783_vm1, %v1767_v8  ;;  %v933_v30 = vld [vmem:[#allocation3 + $0x190] sm:$0xff]  ;;  %v1003_v31 = vld [vmem:[#allocation3 + $0x3c0] sm:$0xff]  ;;  %s684_s18 = scalar_lea.vmem %s2276_s2, %s1752_s15  ;;  %s720_s0 = scalar_lea.vmem %s2279_s5, %s1752_s15 }
  0x20   : > { %1771 = vmatmul.msk.f32.vlgmr.msra.gmra.mxu3 %vm783_vm1, %v1767_v8  ;;  %852 = vmatpush.msrb.mxu2 %v2065_v9  ;;  %v899_v32 = vld [vmem:[#allocation3 + $0x80] sm:$0xff]  ;;  %v969_v33 = vld [vmem:[#allocation3 + $0x2b0] sm:$0xff]  ;;  %s662_s14 = scalar_select %p661_p11, %s2089_s13, 0 }
  0x21   : > { %876 = vmatpush.msrb.mxu3 %v2075_v11  ;;  %1086 = vmatpush.msra.mxu0 %v903_v25  ;;  %v931_v34 = vld [vmem:[#allocation3 + $0x180] sm:$0xff]  ;;  %v1001_v35 = vld [vmem:[#allocation3 + $0x3b0] sm:$0xff]  ;;  %p754_p13 = scmp.gt.s32.totalorder %s1905_s17, 0  ;;  %s743_s29 = scalar_lea.vmem %s2284_s10, %s2056_s25 }
  0x22   : > { %1121 = vmatpush.msra.mxu2 %v977_v16  ;;  %1106 = vmatpush.msra.mxu1 %v935_v26  ;;  %v897_v36 = vld [vmem:[#allocation3 + $0x70] sm:$0xff]  ;;  %v967_v37 = vld [vmem:[#allocation3 + $0x2a0] sm:$0xff]  ;;  %v912_v26 = vld [vmem:[#allocation3 + $0xe8] sm:$0xff]  ;;  %s2309_s14 = smov (!%p1743_p12, %s662_s14), 2  ;;  %s751_s13 = scalar_lea.vmem %s2285_s11, %s2056_s25 }
  0x23   : > { %1141 = vmatpush.msra.mxu3 %v1009_v17  ;;  %1087 = vmatpush.msra.mxu0 %v901_v28  ;;  %v929_v38 = vld [vmem:[#allocation3 + $0x170] sm:$0xff]  ;;  %v999_v39 = vld [vmem:[#allocation3 + $0x3a0] sm:$0xff]  ;;  %v944_v28 = vld [vmem:[#allocation3 + $0x1e8] sm:$0xff]  ;;  %s756_s15 = scalar_select %p754_p13, 1, 0 }
  0x24   : > { %1122 = vmatpush.msra.mxu2 %v975_v19  ;;  %1107 = vmatpush.msra.mxu1 %v933_v30  ;;  %v895_v40 = vld [vmem:[#allocation3 + $0x60] sm:$0xff]  ;;  %v965_v41 = vld [vmem:[#allocation3 + $0x290] sm:$0xff]  ;;  %v910_v30 = vld [vmem:[#allocation3 + $0xd8] sm:$0xff] }
  0x25   : > { %1142 = vmatpush.msra.mxu3 %v1007_v20  ;;  %1088 = vmatpush.msra.mxu0 %v899_v32  ;;  %v927_v42 = vld [vmem:[#allocation3 + $0x160] sm:$0xff]  ;;  %v997_v43 = vld [vmem:[#allocation3 + $0x390] sm:$0xff]  ;;  %v942_v32 = vld [vmem:[#allocation3 + $0x1d8] sm:$0xff] }
  0x26   : > { %1123 = vmatpush.msra.mxu2 %v973_v22  ;;  %1108 = vmatpush.msra.mxu1 %v931_v34  ;;  %v893_v44 = vld [vmem:[#allocation3 + $0x50] sm:$0xff]  ;;  %v963_v45 = vld [vmem:[#allocation3 + $0x280] sm:$0xff]  ;;  %v914_v22 = vld [vmem:[#allocation3 + $0xf8] sm:$0xff] }
  0x27   : > { %1772 = vmatmul.msk.f32.vlgmr.msrb.gmra.mxu2 %vm783_vm1, %v1769_v23  ;;  %1143 = vmatpush.msra.mxu3 %v1005_v27  ;;  %v925_v46 = vld [vmem:[#allocation3 + $0x150] sm:$0xff]  ;;  %v995_v47 = vld [vmem:[#allocation3 + $0x380] sm:$0xff] }
  0x28   : > { %1773 = vmatmul.msk.f32.vlgmr.msrb.gmra.mxu3 %vm783_vm1, %v1769_v23  ;;  %1124 = vmatpush.msra.mxu2 %v971_v29  ;;  %v891_v48 = vld [vmem:[#allocation3 + $0x40] sm:$0xff]  ;;  %v961_v49 = vld [vmem:[#allocation3 + $0x270] sm:$0xff] }
  0x29   : > { %1144 = vmatpush.msra.mxu3 %v1003_v31  ;;  %1089 = vmatpush.msra.mxu0 %v897_v36  ;;  %v923_v50 = vld [vmem:[#allocation3 + $0x140] sm:$0xff]  ;;  %v993_v51 = vld [vmem:[#allocation3 + $0x370] sm:$0xff] }
  0x2a   : > { %1125 = vmatpush.msra.mxu2 %v969_v33  ;;  %1109 = vmatpush.msra.mxu1 %v929_v38  ;;  %v889_v52 = vld [vmem:[#allocation3 + $0x30] sm:$0xff]  ;;  %v959_v53 = vld [vmem:[#allocation3 + $0x260] sm:$0xff]  ;;  %v940_v38 = vld [vmem:[#allocation3 + $0x1c8] sm:$0xff] }
  0x2b   : > { %1145 = vmatpush.msra.mxu3 %v1001_v35  ;;  %1090 = vmatpush.msra.mxu0 %v895_v40  ;;  %v921_v54 = vld [vmem:[#allocation3 + $0x130] sm:$0xff]  ;;  %v991_v55 = vld [vmem:[#allocation3 + $0x360] sm:$0xff]  ;;  %v908_v35 = vld [vmem:[#allocation3 + $0xc8] sm:$0xff] }
  0x2c   : > { %1126 = vmatpush.msra.mxu2 %v967_v37  ;;  %1110 = vmatpush.msra.mxu1 %v927_v42  ;;  %v887_v56 = vld [vmem:[#allocation3 + $0x20] sm:$0xff]  ;;  %v957_v57 = vld [vmem:[#allocation3 + $0x250] sm:$0xff]  ;;  %v906_v40 = vld [vmem:[#allocation3 + $0xb8] sm:$0xff] }
  0x2d   : > { %1146 = vmatpush.msra.mxu3 %v999_v39  ;;  %1091 = vmatpush.msra.mxu0 %v893_v44  ;;  %v919_v58 = vld [vmem:[#allocation3 + $0x120] sm:$0xff]  ;;  %v989_v59 = vld [vmem:[#allocation3 + $0x350] sm:$0xff]  ;;  %v904_v42 = vld [vmem:[#allocation3 + $0xa8] sm:$0xff] }
  0x2e   : > { %1127 = vmatpush.msra.mxu2 %v965_v41  ;;  %1111 = vmatpush.msra.mxu1 %v925_v46  ;;  %v885_v60 = vld [vmem:[#allocation3 + $0x10] sm:$0xff]  ;;  %v955_v61 = vld [vmem:[#allocation3 + $0x240] sm:$0xff]  ;;  %v938_v41 = vld [vmem:[#allocation3 + $0x1b8] sm:$0xff] }
  0x2f   : > { %1147 = vmatpush.msra.mxu3 %v997_v43  ;;  %1092 = vmatpush.msra.mxu0 %v891_v48  ;;  %v917_v62 = vld [vmem:[#allocation3 + $0x110] sm:$0xff]  ;;  %v987_v63 = vld [vmem:[#allocation3 + $0x340] sm:$0xff]  ;;  %v936_v44 = vld [vmem:[#allocation3 + $0x1a8] sm:$0xff] }
  0x30   : > { %1128 = vmatpush.msra.mxu2 %v963_v45  ;;  %1112 = vmatpush.msra.mxu1 %v923_v50  ;;  %v883_v0 = vld [vmem:[#allocation3] sm:$0xff]  ;;  %v953_v2 = vld [vmem:[#allocation3 + $0x230] sm:$0xff]  ;;  %v902_v46 = vld [vmem:[#allocation3 + $0x98] sm:$0xff] }
  0x31   : > { %1148 = vmatpush.msra.mxu3 %v995_v47  ;;  %1093 = vmatpush.msra.mxu0 %v889_v52  ;;  %v915_v3 = vld [vmem:[#allocation3 + $0x100] sm:$0xff]  ;;  %v1041_v4 = vld [vmem:[#allocation3 + $0x4f0] sm:$0xff]  ;;  %v934_v48 = vld [vmem:[#allocation3 + $0x198] sm:$0xff] }
  0x32   : > { %1129 = vmatpush.msra.mxu2 %v961_v49  ;;  %1113 = vmatpush.msra.mxu1 %v921_v54  ;;  %v1073_v5 = vld [vmem:[#allocation3 + $0x5f0] sm:$0xff]  ;;  %v1039_v7 = vld [vmem:[#allocation3 + $0x4e0] sm:$0xff]  ;;  %v900_v50 = vld [vmem:[#allocation3 + $0x88] sm:$0xff] }
  0x33   : > { %1149 = vmatpush.msra.mxu3 %v993_v51  ;;  %1094 = vmatpush.msra.mxu0 %v887_v56  ;;  %v985_v6 = vld [vmem:[#allocation3 + $0x330] sm:$0xff]  ;;  %v951_v8 = vld [vmem:[#allocation3 + $0x220] sm:$0xff]  ;;  %v932_v52 = vld [vmem:[#allocation3 + $0x188] sm:$0xff] }
  0x34   : > { %1130 = vmatpush.msra.mxu2 %v959_v53  ;;  %1114 = vmatpush.msra.mxu1 %v919_v58  ;;  %v1071_v10 = vld [vmem:[#allocation3 + $0x5e0] sm:$0xff]  ;;  %v1037_v13 = vld [vmem:[#allocation3 + $0x4d0] sm:$0xff]  ;;  %v898_v56 = vld [vmem:[#allocation3 + $0x78] sm:$0xff] }
  0x35   : > { %1150 = vmatpush.msra.mxu3 %v991_v55  ;;  %1095 = vmatpush.msra.mxu0 %v885_v60  ;;  %v983_v12 = vld [vmem:[#allocation3 + $0x320] sm:$0xff]  ;;  %v949_v14 = vld [vmem:[#allocation3 + $0x210] sm:$0xff]  ;;  %v930_v58 = vld [vmem:[#allocation3 + $0x178] sm:$0xff] }
  0x36   : > { %1131 = vmatpush.msra.mxu2 %v957_v57  ;;  %1115 = vmatpush.msra.mxu1 %v917_v62  ;;  %v1069_v15 = vld [vmem:[#allocation3 + $0x5d0] sm:$0xff]  ;;  %v1035_v17 = vld [vmem:[#allocation3 + $0x4c0] sm:$0xff]  ;;  %v896_v60 = vld [vmem:[#allocation3 + $0x68] sm:$0xff] }
  0x37   : > { %1151 = vmatpush.msra.mxu3 %v989_v59  ;;  %1096 = vmatpush.msra.mxu0 %v883_v0  ;;  %v981_v16 = vld [vmem:[#allocation3 + $0x310] sm:$0xff]  ;;  %v947_v18 = vld [vmem:[#allocation3 + $0x200] sm:$0xff]  ;;  %v928_v62 = vld [vmem:[#allocation3 + $0x168] sm:$0xff] }
  0x38   : > { %1132 = vmatpush.msra.mxu2 %v955_v61  ;;  %1116 = vmatpush.msra.mxu1 %v915_v3  ;;  %v1067_v19 = vld [vmem:[#allocation3 + $0x5c0] sm:$0xff]  ;;  %v1033_v21 = vld [vmem:[#allocation3 + $0x4b0] sm:$0xff]  ;;  %v894_v0 = vld [vmem:[#allocation3 + $0x58] sm:$0xff] }
  0x39   : > { %1152 = vmatpush.msra.mxu3 %v987_v63  ;;  %1161 = vmatpush.msrb.mxu0 %v1041_v4  ;;  %v979_v20 = vld [vmem:[#allocation3 + $0x300] sm:$0xff]  ;;  %v1065_v23 = vld [vmem:[#allocation3 + $0x5b0] sm:$0xff]  ;;  %v978_v3 = vld [vmem:[#allocation3 + $0x2f8] sm:$0xff] }
  0x3a   : > { %1133 = vmatpush.msra.mxu2 %v953_v2  ;;  %1181 = vmatpush.msrb.mxu1 %v1073_v5  ;;  %v1031_v25 = vld [vmem:[#allocation3 + $0x4a0] sm:$0xff]  ;;  %v1029_v29 = vld [vmem:[#allocation3 + $0x490] sm:$0xff]  ;;  %v1010_v4 = vld [vmem:[#allocation3 + $0x3f8] sm:$0xff] }
  0x3b   : > { %1153 = vmatpush.msra.mxu3 %v985_v6  ;;  %1162 = vmatpush.msrb.mxu0 %v1039_v7  ;;  %v1063_v27 = vld [vmem:[#allocation3 + $0x5a0] sm:$0xff]  ;;  %v1061_v31 = vld [vmem:[#allocation3 + $0x590] sm:$0xff]  ;;  %v926_v5 = vld [vmem:[#allocation3 + $0x158] sm:$0xff] }
  0x3c   : > { %1134 = vmatpush.msra.mxu2 %v951_v8  ;;  %1182 = vmatpush.msrb.mxu1 %v1071_v10  ;;  %v1027_v33 = vld [vmem:[#allocation3 + $0x480] sm:$0xff]  ;;  %v1025_v36 = vld [vmem:[#allocation3 + $0x470] sm:$0xff]  ;;  %v976_v6 = vld [vmem:[#allocation3 + $0x2e8] sm:$0xff] }
  0x3d   : > { %1154 = vmatpush.msra.mxu3 %v983_v12  ;;  %1163 = vmatpush.msrb.mxu0 %v1037_v13  ;;  %v1059_v34 = vld [vmem:[#allocation3 + $0x580] sm:$0xff]  ;;  %v1057_v37 = vld [vmem:[#allocation3 + $0x570] sm:$0xff]  ;;  %v892_v7 = vld [vmem:[#allocation3 + $0x48] sm:$0xff] }
  0x3e   : > { %1135 = vmatpush.msra.mxu2 %v949_v14  ;;  %1183 = vmatpush.msrb.mxu1 %v1069_v15  ;;  %v1023_v39 = vld [vmem:[#allocation3 + $0x460] sm:$0xff]  ;;  %v1021_v45 = vld [vmem:[#allocation3 + $0x450] sm:$0xff]  ;;  %v1008_v8 = vld [vmem:[#allocation3 + $0x3e8] sm:$0xff] }
  0x3f   : > { %1155 = vmatpush.msra.mxu3 %v981_v16  ;;  %1164 = vmatpush.msrb.mxu0 %v1035_v17  ;;  %v1055_v43 = vld [vmem:[#allocation3 + $0x560] sm:$0xff]  ;;  %v1053_v47 = vld [vmem:[#allocation3 + $0x550] sm:$0xff]  ;;  %v924_v10 = vld [vmem:[#allocation3 + $0x148] sm:$0xff] }
  0x40   : > { %1136 = vmatpush.msra.mxu2 %v947_v18  ;;  %1184 = vmatpush.msrb.mxu1 %v1067_v19  ;;  %v1019_v49 = vld [vmem:[#allocation3 + $0x440] sm:$0xff]  ;;  %v1017_v53 = vld [vmem:[#allocation3 + $0x430] sm:$0xff]  ;;  %v974_v12 = vld [vmem:[#allocation3 + $0x2d8] sm:$0xff] }
  0x41   : > { %1156 = vmatpush.msra.mxu3 %v979_v20  ;;  %1165 = vmatpush.msrb.mxu0 %v1033_v21  ;;  %v1051_v51 = vld [vmem:[#allocation3 + $0x540] sm:$0xff]  ;;  %v1049_v54 = vld [vmem:[#allocation3 + $0x530] sm:$0xff]  ;;  %v890_v13 = vld [vmem:[#allocation3 + $0x38] sm:$0xff] }
  0x42   : > { %1201 = vmatpush.msrb.mxu2 %v914_v22  ;;  %1185 = vmatpush.msrb.mxu1 %v1065_v23  ;;  %v1015_v55 = vld [vmem:[#allocation3 + $0x420] sm:$0xff]  ;;  %v1013_v59 = vld [vmem:[#allocation3 + $0x410] sm:$0xff]  ;;  %v1006_v14 = vld [vmem:[#allocation3 + $0x3d8] sm:$0xff] }
  0x43   : > { %1221 = vmatpush.msrb.mxu3 %v946_v24  ;;  %1166 = vmatpush.msrb.mxu0 %v1031_v25  ;;  %v1047_v57 = vld [vmem:[#allocation3 + $0x520] sm:$0xff]  ;;  %v1045_v61 = vld [vmem:[#allocation3 + $0x510] sm:$0xff]  ;;  %v922_v15 = vld [vmem:[#allocation3 + $0x138] sm:$0xff] }
  0x44   : > { %1202 = vmatpush.msrb.mxu2 %v912_v26  ;;  %1186 = vmatpush.msrb.mxu1 %v1063_v27  ;;  %v1011_v63 = vld [vmem:[#allocation3 + $0x400] sm:$0xff]  ;;  %v972_v16 = vld [vmem:[#allocation3 + $0x2c8] sm:$0xff]  ;;  %v970_v20 = vld [vmem:[#allocation3 + $0x2b8] sm:$0xff] }
  0x45   : > { %1222 = vmatpush.msrb.mxu3 %v944_v28  ;;  %1167 = vmatpush.msrb.mxu0 %v1029_v29  ;;  %v1043_v2 = vld [vmem:[#allocation3 + $0x500] sm:$0xff]  ;;  %v888_v17 = vld [vmem:[#allocation3 + $0x28] sm:$0xff]  ;;  %v886_v21 = vld [vmem:[#allocation3 + $0x18] sm:$0xff] }
  0x46   : > { %1203 = vmatpush.msrb.mxu2 %v910_v30  ;;  %1187 = vmatpush.msrb.mxu1 %v1061_v31  ;;  %v1004_v18 = vld [vmem:[#allocation3 + $0x3c8] sm:$0xff]  ;;  %v1002_v22 = vld [vmem:[#allocation3 + $0x3b8] sm:$0xff] }
  0x47   : > { %1223 = vmatpush.msrb.mxu3 %v942_v32  ;;  %1168 = vmatpush.msrb.mxu0 %v1027_v33  ;;  %v920_v19 = vld [vmem:[#allocation3 + $0x128] sm:$0xff]  ;;  %v918_v23 = vld [vmem:[#allocation3 + $0x118] sm:$0xff] }
  0x48   : > { %1204 = vmatpush.msrb.mxu2 %v908_v35  ;;  %1188 = vmatpush.msrb.mxu1 %v1059_v34  ;;  %v968_v24 = vld [vmem:[#allocation3 + $0x2a8] sm:$0xff]  ;;  %v966_v26 = vld [vmem:[#allocation3 + $0x298] sm:$0xff] }
  0x49   : > { %1224 = vmatpush.msrb.mxu3 %v940_v38  ;;  %1169 = vmatpush.msrb.mxu0 %v1025_v36  ;;  %v1000_v25 = vld [vmem:[#allocation3 + $0x3a8] sm:$0xff]  ;;  %v998_v27 = vld [vmem:[#allocation3 + $0x398] sm:$0xff]  ;;  %v765_v36 = vstv %s764_s22 }
  0x4a   : > { %1205 = vmatpush.msrb.mxu2 %v906_v40  ;;  %1189 = vmatpush.msrb.mxu1 %v1057_v37  ;;  %v884_v28 = vld [vmem:[#allocation3 + $0x8] sm:$0xff]  ;;  %v962_v32 = vld [vmem:[#allocation3 + $0x278] sm:$0xff]  ;;  %v763_v37 = vld [vmem:[%s684_s18] sm:$0x1]  ;;  %vm2105_vm3 = vcmp.eq.s32.totalorder %v765_v36, 1 }
  0x4b   : > { %1225 = vmatpush.msrb.mxu3 %v938_v41  ;;  %1170 = vmatpush.msrb.mxu0 %v1023_v39  ;;  %v916_v29 = vld [vmem:[#allocation3 + $0x108] sm:$0xff]  ;;  %v994_v33 = vld [vmem:[#allocation3 + $0x378] sm:$0xff]  ;;  %v768_v39 = vld [vmem:[%s720_s0] sm:$0x1]  ;;  %s668_s0 = sadd.s32 %s2052_s16, %s2309_s14 }
  0x4c   : > { %1206 = vmatpush.msrb.mxu2 %v904_v42  ;;  %1190 = vmatpush.msrb.mxu1 %v1055_v43  ;;  %v964_v30 = vld [vmem:[#allocation3 + $0x288] sm:$0xff]  ;;  %v958_v40 = vld [vmem:[#allocation3 + $0x258] sm:$0xff]  ;;  %v767_v42 = vsel %vm2105_vm3, %v763_v37, 0.0  ;;  %v769_v43 = vsel %vm2105_vm3, %v768_v39, 0.0  ;;  %s1748_s22 = sshll.u32 %s668_s0, 3 }
  0x4d   : > { %1226 = vmatpush.msrb.mxu3 %v936_v44  ;;  %1171 = vmatpush.msrb.mxu0 %v1021_v45  ;;  %v996_v31 = vld [vmem:[#allocation3 + $0x388] sm:$0xff]  ;;  %v990_v41 = vld [vmem:[#allocation3 + $0x358] sm:$0xff]  ;;  %s670_s26 = scalar_lea.vmem %s2275_s1, %s1748_s22  ;;  %s706_s18 = scalar_lea.vmem %s2278_s4, %s1748_s22 }
  0x4e   : > { %1207 = vmatpush.msrb.mxu2 %v902_v46  ;;  %1191 = vmatpush.msrb.mxu1 %v1053_v47  ;;  %v960_v34 = vld [vmem:[#allocation3 + $0x268] sm:$0xff]  ;;  %v954_v46 = vld [vmem:[#allocation3 + $0x238] sm:$0xff] }
  0x4f   : > { %1227 = vmatpush.msrb.mxu3 %v934_v48  ;;  %1172 = vmatpush.msrb.mxu0 %v1019_v49  ;;  %v992_v35 = vld [vmem:[#allocation3 + $0x368] sm:$0xff]  ;;  %v986_v47 = vld [vmem:[#allocation3 + $0x338] sm:$0xff] }
  0x50   : > { %1208 = vmatpush.msrb.mxu2 %v900_v50  ;;  %1192 = vmatpush.msrb.mxu1 %v1051_v51  ;;  %v956_v44 = vld [vmem:[#allocation3 + $0x248] sm:$0xff]  ;;  %v950_v50 = vld [vmem:[#allocation3 + $0x218] sm:$0xff] }
  0x51   : > { %1228 = vmatpush.msrb.mxu3 %v932_v52  ;;  %1173 = vmatpush.msrb.mxu0 %v1017_v53  ;;  %v988_v45 = vld [vmem:[#allocation3 + $0x348] sm:$0xff]  ;;  %v982_v51 = vld [vmem:[#allocation3 + $0x318] sm:$0xff] }
  0x52   : > { %1117 = vmatmul.f32.vlgmr.msra.gmra.mxu1 %v2075_v11  ;;  %1097 = vmatmul.f32.vlgmr.msra.gmra.mxu0 %v2065_v9  ;;  %v952_v48 = vld [vmem:[#allocation3 + $0x228] sm:$0xff]  ;;  %v1018_v38 = vld [vmem:[#allocation3 + $0x438] sm:$0xff] }
  0x53   : > { %1193 = vmatpush.msrb.mxu1 %v1049_v54  ;;  %1174 = vmatpush.msrb.mxu0 %v1015_v55  ;;  %v984_v49 = vld [vmem:[#allocation3 + $0x328] sm:$0xff]  ;;  %v757_v54 = vstv %s756_s15  ;;  %v755_v55 = vld [vmem:[%s670_s26 + $0x7] sm:$0x1]  ;;  %v1050_v39 = vld [vmem:[#allocation3 + $0x538] sm:$0xff] }
  0x54   : > { %1209 = vmatpush.msrb.mxu2 %v898_v56  ;;  %1229 = vmatpush.msrb.mxu3 %v930_v58  ;;  %v948_v52 = vld [vmem:[#allocation3 + $0x208] sm:$0xff]  ;;  %vm758_vm4 = vcmp.eq.s32.totalorder %v757_v54, 1  ;;  %v760_v56 = vld [vmem:[%s706_s18 + $0x7] sm:$0x1] }
  0x55   : > { %1194 = vmatpush.msrb.mxu1 %v1047_v57  ;;  %1175 = vmatpush.msrb.mxu0 %v1013_v59  ;;  %v980_v53 = vld [vmem:[#allocation3 + $0x308] sm:$0xff]  ;;  %v759_v57 = vsel %vm758_vm4, %v755_v55, 0.0  ;;  %v761_v58 = vsel %vm758_vm4, %v760_v56, 0.0  ;;  %v1353_v55 = vld [vmem:[%s2282_s8 + $0xf0] sm:$0xff]  ;;  %v1323_v56 = vld [vmem:[%s2282_s8] sm:$0xff] }
  0x56   : > { %1210 = vmatpush.msrb.mxu2 %v896_v60  ;;  %1230 = vmatpush.msrb.mxu3 %v928_v62  ;;  %v809_v59 = vperm.slane %v759_v57, 0  ;;  %v831_v60 = vperm.slane %v761_v58, 0  ;;  %v1042_v62 = vld [vmem:[#allocation3 + $0x4f8] sm:$0xff]  ;;  %v1052_v36 = vld [vmem:[#allocation3 + $0x548] sm:$0xff]  ;;  %v1351_v58 = vld [vmem:[%s2282_s8 + $0xe0] sm:$0xff] }
  0x57   : > { %1195 = vmatpush.msrb.mxu1 %v1045_v61  ;;  %1176 = vmatpush.msrb.mxu0 %v1011_v63  ;;  %v1332_v37 = vld [vmem:[%s2282_s8 + $0x48] sm:$0xff] }
  0x58   : > { %1211 = vmatpush.msrb.mxu2 %v894_v0  ;;  %1231 = vmatpush.msrb.mxu3 %v926_v5  ;;  %v1072_v5 = vld [vmem:[#allocation3 + $0x5e8] sm:$0xff] }
  0x59   : > { %1196 = vmatpush.msrb.mxu1 %v1043_v2  ;;  %1241 = vmatpush.msra.mxu0 %v978_v3  ;;  %v1074_v2 = vld [vmem:[#allocation3 + $0x5f8] sm:$0xff]  ;;  %v1324_v54 = vld [vmem:[%s2282_s8 + $0x8] sm:$0xff] }
  0x5a   : > { %1212 = vmatpush.msrb.mxu2 %v892_v7  ;;  %1232 = vmatpush.msrb.mxu3 %v924_v10  ;;  %v1070_v7 = vld [vmem:[#allocation3 + $0x5d8] sm:$0xff]  ;;  %v1036_v10 = vld [vmem:[#allocation3 + $0x4c8] sm:$0xff] }
  0x5b   : > { %1261 = vmatpush.msra.mxu1 %v1010_v4  ;;  %1242 = vmatpush.msra.mxu0 %v976_v6  ;;  %v1040_v4 = vld [vmem:[#allocation3 + $0x4e8] sm:$0xff]  ;;  %v1038_v6 = vld [vmem:[#allocation3 + $0x4d8] sm:$0xff] }
  0x5c   : > { %1213 = vmatpush.msrb.mxu2 %v890_v13  ;;  %1233 = vmatpush.msrb.mxu3 %v922_v15  ;;  %v1068_v13 = vld [vmem:[#allocation3 + $0x5c8] sm:$0xff] }
  0x5d   : > { %1262 = vmatpush.msra.mxu1 %v1008_v8  ;;  %1243 = vmatpush.msra.mxu0 %v974_v12  ;;  %v859_v8 = vperm.slane %v767_v42, 0  ;;  %v881_v12 = vperm.slane %v769_v43, 0  ;;  %v1048_v42 = vld [vmem:[#allocation3 + $0x528] sm:$0xff]  ;;  %v1330_v43 = vld [vmem:[%s2282_s8 + $0x38] sm:$0xff] }
  0x5e   : > { %1214 = vmatpush.msrb.mxu2 %v888_v17  ;;  %1234 = vmatpush.msrb.mxu3 %v920_v19  ;;  %v1034_v17 = vld [vmem:[#allocation3 + $0x4b8] sm:$0xff]  ;;  %v1352_v57 = vld [vmem:[%s2282_s8 + $0xe8] sm:$0xff] }
  0x5f   : > { %1263 = vmatpush.msra.mxu1 %v1006_v14  ;;  %1244 = vmatpush.msra.mxu0 %v972_v16 }
  0x60   : > { %1215 = vmatpush.msrb.mxu2 %v886_v21  ;;  %1235 = vmatpush.msrb.mxu3 %v918_v23  ;;  %v1064_v21 = vld [vmem:[#allocation3 + $0x5a8] sm:$0xff]  ;;  %v1030_v23 = vld [vmem:[#allocation3 + $0x498] sm:$0xff] }
  0x61   : > { %1264 = vmatpush.msra.mxu1 %v1004_v18  ;;  %1245 = vmatpush.msra.mxu0 %v970_v20  ;;  %v1066_v18 = vld [vmem:[#allocation3 + $0x5b8] sm:$0xff]  ;;  %v1032_v20 = vld [vmem:[#allocation3 + $0x4a8] sm:$0xff] }
  0x62   : > { %1216 = vmatpush.msrb.mxu2 %v884_v28  ;;  %1236 = vmatpush.msrb.mxu3 %v916_v29  ;;  %v1058_v28 = vld [vmem:[#allocation3 + $0x578] sm:$0xff]  ;;  %v1024_v29 = vld [vmem:[#allocation3 + $0x468] sm:$0xff] }
  0x63   : > { %1265 = vmatpush.msra.mxu1 %v1002_v22  ;;  %1246 = vmatpush.msra.mxu0 %v968_v24  ;;  %v1337_v22 = vld [vmem:[%s2282_s8 + $0x70] sm:$0xff]  ;;  %v1062_v24 = vld [vmem:[#allocation3 + $0x598] sm:$0xff] }
  0x65   : > { %1266 = vmatpush.msra.mxu1 %v1000_v25  ;;  %1247 = vmatpush.msra.mxu0 %v966_v26  ;;  %v1336_v25 = vld [vmem:[%s2282_s8 + $0x68] sm:$0xff] }
  0x66   : > { %v1060_v26 = vld [vmem:[#allocation3 + $0x588] sm:$0xff] }
  0x67   : > { %1267 = vmatpush.msra.mxu1 %v998_v27  ;;  %1248 = vmatpush.msra.mxu0 %v964_v30  ;;  %v1026_v27 = vld [vmem:[#allocation3 + $0x478] sm:$0xff]  ;;  %v1056_v30 = vld [vmem:[#allocation3 + $0x568] sm:$0xff] }
  0x69   : > { %1268 = vmatpush.msra.mxu1 %v996_v31  ;;  %1249 = vmatpush.msra.mxu0 %v962_v32  ;;  %v1334_v31 = vld [vmem:[%s2282_s8 + $0x58] sm:$0xff] }
  0x6a   : > { %v1022_v32 = vld [vmem:[#allocation3 + $0x458] sm:$0xff] }
  0x6b   : > { %1269 = vmatpush.msra.mxu1 %v994_v33  ;;  %1250 = vmatpush.msra.mxu0 %v960_v34  ;;  %v1054_v33 = vld [vmem:[#allocation3 + $0x558] sm:$0xff]  ;;  %v1333_v34 = vld [vmem:[%s2282_s8 + $0x50] sm:$0xff] }
  0x6d   : > { %1270 = vmatpush.msra.mxu1 %v992_v35  ;;  %1251 = vmatpush.msra.mxu0 %v958_v40  ;;  %v1020_v35 = vld [vmem:[#allocation3 + $0x448] sm:$0xff]  ;;  %v1331_v40 = vld [vmem:[%s2282_s8 + $0x40] sm:$0xff] }
  0x6f   : > { %1271 = vmatpush.msra.mxu1 %v990_v41  ;;  %1252 = vmatpush.msra.mxu0 %v956_v44  ;;  %v1016_v41 = vld [vmem:[#allocation3 + $0x428] sm:$0xff]  ;;  %v1014_v44 = vld [vmem:[#allocation3 + $0x418] sm:$0xff] }
  0x71   : > { %1272 = vmatpush.msra.mxu1 %v988_v45  ;;  %1253 = vmatpush.msra.mxu0 %v954_v46  ;;  %v1046_v45 = vld [vmem:[#allocation3 + $0x518] sm:$0xff]  ;;  %v1329_v46 = vld [vmem:[%s2282_s8 + $0x30] sm:$0xff] }
  0x73   : > { %1273 = vmatpush.msra.mxu1 %v986_v47  ;;  %1254 = vmatpush.msra.mxu0 %v952_v48  ;;  %v1012_v47 = vld [vmem:[#allocation3 + $0x408] sm:$0xff] }
  0x74   : > { %v1044_v48 = vld [vmem:[#allocation3 + $0x508] sm:$0xff] }
  0x75   : > { %1274 = vmatpush.msra.mxu1 %v984_v49  ;;  %1255 = vmatpush.msra.mxu0 %v950_v50  ;;  %v1328_v49 = vld [vmem:[%s2282_s8 + $0x28] sm:$0xff]  ;;  %v1327_v50 = vld [vmem:[%s2282_s8 + $0x20] sm:$0xff] }
  0x77   : > { %1275 = vmatpush.msra.mxu1 %v982_v51  ;;  %1256 = vmatpush.msra.mxu0 %v948_v52  ;;  %v1326_v51 = vld [vmem:[%s2282_s8 + $0x18] sm:$0xff]  ;;  %v1325_v52 = vld [vmem:[%s2282_s8 + $0x10] sm:$0xff] }
  0x79   : > { %1276 = vmatpush.msra.mxu1 %v980_v53  ;;  %v1354_v53 = vld [vmem:[%s2282_s8 + $0xf8] sm:$0xff] }
  0xa2   : > { %v804_v61 = vpop.f32.mrf.mxu2 }
  0xa3   : > { %v810_v63 = vsel %vm782_vm5, %v809_v59, %v804_v61  ;;  %v828_v0 = vpop.f32.mrf.mxu3  ;;  %v1350_v59 = vld [vmem:[%s2282_s8 + $0xd8] sm:$0xff]  ;;  %v1075_v61 = vld [vmem:[%s2281_s7] sm:$0x3] }
  0xa4   : > { %v832_v3 = vsel %vm782_vm5, %v831_v60, %v828_v0  ;;  %1137 = vmatmul.f32.vlgmr.msra.gmra.mxu2 %v810_v63  ;;  %v1349_v60 = vld [vmem:[%s2282_s8 + $0xd0] sm:$0xff]  ;;  %v1077_v0 = vperm.slane %v1075_v61, 0 }
  0xa5   : > { %1157 = vmatmul.f32.vlgmr.msra.gmra.mxu3 %v832_v3  ;;  %1281 = vmatpush.msra.mxu2 %v1042_v62  ;;  %v1348_v62 = vld [vmem:[%s2282_s8 + $0xc8] sm:$0xff] }
  0xa6   : > { %1301 = vmatpush.msra.mxu3 %v1074_v2  ;;  %v1346_v2 = vld [vmem:[%s2282_s8 + $0xb8] sm:$0xff] }
  0xa7   : > { %1282 = vmatpush.msra.mxu2 %v1040_v4  ;;  %v1345_v4 = vld [vmem:[%s2282_s8 + $0xb0] sm:$0xff] }
  0xa8   : > { %1302 = vmatpush.msra.mxu3 %v1072_v5 }
  0xa9   : > { %1283 = vmatpush.msra.mxu2 %v1038_v6  ;;  %v1344_v6 = vld [vmem:[%s2282_s8 + $0xa8] sm:$0xff] }
  0xaa   : > { %1303 = vmatpush.msra.mxu3 %v1070_v7  ;;  %v854_v14 = vpop.f32.mrf.mxu2 }
  0xab   : > { %v878_v15 = vpop.f32.mrf.mxu3  ;;  %1284 = vmatpush.msra.mxu2 %v1036_v10  ;;  %v2125_v16 = vsel %vm833_vm6, %v859_v8, %v854_v14  ;;  %v1343_v8 = vld [vmem:[%s2282_s8 + $0xa0] sm:$0xff] }
  0xac   : > { %1304 = vmatpush.msra.mxu3 %v1068_v13  ;;  %1177 = vmatmul.f32.vlgmr.msrb.gmra.mxu0 %v2125_v16  ;;  %v2128_v19 = vsel %vm833_vm6, %v881_v12, %v878_v15  ;;  %v1342_v13 = vld [vmem:[%s2282_s8 + $0x98] sm:$0xff] }
  0xad   : > { %1197 = vmatmul.f32.vlgmr.msrb.gmra.mxu1 %v2128_v19  ;;  %1217 = vmatmul.f32.vlgmr.msrb.gmra.mxu2 %v2065_v9  ;;  %v1028_v9 = vld [vmem:[#allocation3 + $0x488] sm:$0xff] }
  0xae   : > { %1285 = vmatpush.msra.mxu2 %v1034_v17  ;;  %1305 = vmatpush.msra.mxu3 %v1066_v18 }
  0xaf   : > { %1237 = vmatmul.f32.vlgmr.msrb.gmra.mxu3 %v2075_v11  ;;  %1361 = vmatpush.msrb.mxu0 %v1338_v1  ;;  %v1335_v11 = vld [vmem:[%s2282_s8 + $0x60] sm:$0xff] }
  0xb0   : > { %1286 = vmatpush.msra.mxu2 %v1032_v20  ;;  %1306 = vmatpush.msra.mxu3 %v1064_v21  ;;  %v1339_v21 = vld [vmem:[%s2282_s8 + $0x80] sm:$0xff] }
  0xb1   : > { %1362 = vmatpush.msrb.mxu0 %v1337_v22  ;;  %1381 = vmatpush.msrb.mxu1 %v1354_v53 }
  0xb2   : > { %1287 = vmatpush.msra.mxu2 %v1030_v23  ;;  %1307 = vmatpush.msra.mxu3 %v1062_v24  ;;  %v1078_v24 = vperm.slane %v1075_v61, 1 }
  0xb3   : > { %1363 = vmatpush.msrb.mxu0 %v1336_v25  ;;  %1382 = vmatpush.msrb.mxu1 %v1353_v55 }
  0xb4   : > { %1288 = vmatpush.msra.mxu2 %v1028_v9  ;;  %1308 = vmatpush.msra.mxu3 %v1060_v26 }
  0xb5   : > { %1257 = vmatmul.f32.vlgmr.msra.gmra.mxu0 %v810_v63  ;;  %1277 = vmatmul.f32.vlgmr.msra.gmra.mxu1 %v832_v3  ;;  %v1347_v63 = vld [vmem:[%s2282_s8 + $0xc0] sm:$0xff] }
  0xb6   : > { %1289 = vmatpush.msra.mxu2 %v1026_v27  ;;  %1309 = vmatpush.msra.mxu3 %v1058_v28 }
  0xb7   : > { %1364 = vmatpush.msrb.mxu0 %v1335_v11  ;;  %1383 = vmatpush.msrb.mxu1 %v1352_v57 }
  0xb8   : > { %1290 = vmatpush.msra.mxu2 %v1024_v29  ;;  %1310 = vmatpush.msra.mxu3 %v1056_v30 }
  0xb9   : > { %1365 = vmatpush.msrb.mxu0 %v1334_v31  ;;  %1384 = vmatpush.msrb.mxu1 %v1351_v58 }
  0xba   : > { %1291 = vmatpush.msra.mxu2 %v1022_v32  ;;  %1311 = vmatpush.msra.mxu3 %v1054_v33 }
  0xbb   : > { %1366 = vmatpush.msrb.mxu0 %v1333_v34  ;;  %1385 = vmatpush.msrb.mxu1 %v1350_v59 }
  0xbc   : > { %1292 = vmatpush.msra.mxu2 %v1020_v35  ;;  %1312 = vmatpush.msra.mxu3 %v1052_v36  ;;  %v1836_v36 = vld [vmem:[%s2283_s9] ss:$0 sm:$0xff] }
  0xbd   : > { %1367 = vmatpush.msrb.mxu0 %v1332_v37  ;;  %1386 = vmatpush.msrb.mxu1 %v1349_v60 }
  0xbe   : > { %1293 = vmatpush.msra.mxu2 %v1018_v38  ;;  %1313 = vmatpush.msra.mxu3 %v1050_v39 }
  0xbf   : > { %1368 = vmatpush.msrb.mxu0 %v1331_v40  ;;  %1387 = vmatpush.msrb.mxu1 %v1348_v62 }
  0xc0   : > { %1294 = vmatpush.msra.mxu2 %v1016_v41  ;;  %1314 = vmatpush.msra.mxu3 %v1048_v42  ;;  %v1847_v41 = vld [vmem:[%s2062_s28] sm:$0xff] }
  0xc1   : > { %1369 = vmatpush.msrb.mxu0 %v1330_v43  ;;  %1388 = vmatpush.msrb.mxu1 %v1347_v63  ;;  %v1848_v43 = vld [vmem:[%s2071_s30] sm:$0xff] }
  0xc2   : > { %1295 = vmatpush.msra.mxu2 %v1014_v44  ;;  %1315 = vmatpush.msra.mxu3 %v1046_v45  ;;  %v1927_v45 = vmov 128.0  }
  0xc3   : > { %1370 = vmatpush.msrb.mxu0 %v1329_v46  ;;  %1389 = vmatpush.msrb.mxu1 %v1346_v2  ;;  %1841 = vrcp.f32 %v1927_v45 }
  0xc4   : > { %1296 = vmatpush.msra.mxu2 %v1012_v47  ;;  %1316 = vmatpush.msra.mxu3 %v1044_v48 }
  0xc5   : > { %1297 = vmatmul.f32.vlgmr.msra.gmra.mxu2 %v2125_v16  ;;  %1317 = vmatmul.f32.vlgmr.msra.gmra.mxu3 %v2128_v19  ;;  %v1341_v16 = vld [vmem:[%s2282_s8 + $0x90] sm:$0xff]  ;;  %v1340_v19 = vld [vmem:[%s2282_s8 + $0x88] sm:$0xff] }
  0xc6   : > { %1371 = vmatpush.msrb.mxu0 %v1328_v49  ;;  %1390 = vmatpush.msrb.mxu1 %v1345_v4 }
  0xc8   : > { %1372 = vmatpush.msrb.mxu0 %v1327_v50  ;;  %1391 = vmatpush.msrb.mxu1 %v1344_v6 }
  0xc9   : > { %v1842_v46 = vpop.eup %1841 }
  0xca   : > { %1373 = vmatpush.msrb.mxu0 %v1326_v51  ;;  %1392 = vmatpush.msrb.mxu1 %v1343_v8  ;;  %v1405_v47 = vmul.f32 128.0, %v1842_v46  ;;  %vm1409_vm7 = vweird.f32 %v1842_v46 }
  0xcc   : > { %1374 = vmatpush.msrb.mxu0 %v1325_v52  ;;  %1393 = vmatpush.msrb.mxu1 %v1342_v13  ;;  %v1406_v48 = vsub.f32 1.0, %v1405_v47  ;;  %v1837_v13 = vld [vmem:[%s2283_s9 + $0x1] ss:$0 sm:$0xff] }
  0xce   : > { %1375 = vmatpush.msrb.mxu0 %v1324_v54  ;;  %1394 = vmatpush.msrb.mxu1 %v1341_v16  ;;  %v1407_v49 = vmul.f32 %v1842_v46, %v1406_v48  ;;  %v1838_v16 = vld [vmem:[%s2283_s9 + $0x2] ss:$0 sm:$0xff] }
  0xcf   : > { %v1098_v3 = vpop.f32.mrf.mxu0  ;;  %v1118_v7 = vpop.f32.mrf.mxu1 }
  0xd0   : > { %1376 = vmatpush.msrb.mxu0 %v1323_v56  ;;  %v1099_v5 = vadd.f32 %v1098_v3, %v1077_v0  ;;  %1395 = vmatpush.msrb.mxu1 %v1340_v19  ;;  %v1408_v50 = vadd.f32 %v1842_v46, %v1407_v49 }
  0xd2   : > { %v1119_v10 = vadd.f32 %v1118_v7, %v1099_v5  ;;  %1396 = vmatpush.msrb.mxu1 %v1339_v21  ;;  %v1410_v51 = vsel %vm1409_vm7, %v1842_v46, %v1408_v50 }
 0x127   : > { %v1138_v12 = vpop.f32.mrf.mxu2 }
 0x128   : > { %v1139_v14 = vadd.f32 %v1138_v12, %v1119_v10  ;;  %v1158_v15 = vpop.f32.mrf.mxu3 }
 0x129   : > { %v1178_v18 = vpop.f32.mrf.mxu0 }
 0x12a   : > { %v1159_v17 = vadd.f32 %v1158_v15, %v1139_v14  ;;  %v1198_v20 = vpop.f32.mrf.mxu1 }
 0x12c   : > { %v1179_v1 = vadd.f32 %v1178_v18, %v1159_v17 }
 0x12e   : > { %v1199_v22 = vadd.f32 %v1198_v20, %v1179_v1 }
 0x130   : > { %v1321_v23 = vmax.f32 %v1199_v22, 0.0  ;;  %v1218_v25 = vpop.f32.mrf.mxu2  ;;  %v1839_v22 = vld [vmem:[%s2283_s9 + $0x3] ss:$0 sm:$0xff] }
 0x131   : > { %v1219_v9 = vadd.f32 %v1218_v25, %v1078_v24  ;;  %v1840_v24 = vld [vmem:[%s2283_s9 + $0x4] ss:$0 sm:$0xff] }
 0x132   : > { %1377 = vmatmul.f32.vlgmr.msrb.gmra.mxu0 %v1321_v23  ;;  %v1238_v26 = vpop.f32.mrf.mxu3  ;;  %v1258_v28 = vpop.f32.mrf.mxu0 }
 0x133   : > { %v1239_v27 = vadd.f32 %v1238_v26, %v1219_v9  ;;  %v1278_v29 = vpop.f32.mrf.mxu1 }
 0x135   : > { %v1259_v11 = vadd.f32 %v1258_v28, %v1239_v27 }
 0x137   : > { %v1279_v30 = vadd.f32 %v1278_v29, %v1259_v11 }
 0x148   : > { %v1298_v31 = vpop.f32.mrf.mxu2  ;;  %v1318_v33 = vpop.f32.mrf.mxu3 }
 0x149   : > { %v1299_v32 = vadd.f32 %v1298_v31, %v1279_v30 }
 0x14b   : > { %v1319_v34 = vadd.f32 %v1318_v33, %v1299_v32 }
 0x14d   : > { %v1322_v35 = vmax.f32 %v1319_v34, 0.0 }
 0x14f   : > { %1397 = vmatmul.f32.vlgmr.msrb.gmra.mxu1 %v1322_v35 }
 0x1af   : > { %v1378_v37 = vpop.f32.mrf.mxu0 }
 0x1b0   : > { %v1379_v38 = vadd.f32 %v1836_v36, %v1378_v37 }
 0x1cc   : > { %v1398_v39 = vpop.f32.mrf.mxu1 }
 0x1cd   : > { %v1399_v40 = vadd.f32 %v1398_v39, %v1379_v38 }
 0x1cf   : > { %v1401_v42 = vadd.f32 %v1847_v41, %v1399_v40  ;;  %v1434_v44 = vadd.f32 %v1848_v43, %v1399_v40 }
 0x1d1   : > { %1402 = vadd.xlane.f32.xlu0 %v1401_v42 }
 0x1d9   : > { %1435 = vadd.xlane.f32.xlu0 %v1434_v44 }
 0x244   : > { %v1403_v52 = vpop.xlane.xlu0 %1402 }
 0x245   : > { %v1411_v53 = vmul.f32 %v1410_v51, %v1403_v52 }
 0x247   : > { %v1412_v54 = vsub.f32 %v1401_v42, %v1411_v53 }
 0x249   : > { %v1413_v55 = vmul.f32 %v1412_v54, %v1412_v54 }
 0x24b   : > { %1414 = vadd.xlane.f32.xlu1 %v1413_v55 }
 0x24c   : > { %v1436_v56 = vpop.xlane.xlu0 %1435 }
 0x24d   : > { %v1437_v57 = vmul.f32 %v1436_v56, %v1410_v51 }
 0x24f   : > { %v1438_v58 = vsub.f32 %v1434_v44, %v1437_v57 }
 0x251   : > { %v1439_v59 = vmul.f32 %v1438_v58, %v1438_v58 }
 0x253   : > { %1440 = vadd.xlane.f32.xlu1 %v1439_v59 }
 0x2be   : > { %v1415_v60 = vpop.xlane.xlu1 %1414 }
 0x2bf   : > { %v1416_v61 = vmul.f32 %v1415_v60, %v1410_v51 }
 0x2c1   : > { %v1417_v62 = vadd.f32 1e-12, %v1416_v61 }
 0x2c3   : > { %1843 = vrsqrt.f32 %v1417_v62  ;;  %vm1424_vm9 = vweird.f32 %v1417_v62 }
 0x2c6   : > { %v1441_v63 = vpop.xlane.xlu1 %1440 }
 0x2c7   : > { %v1442_v0 = vmul.f32 %v1441_v63, %v1410_v51 }
 0x2c9   : > { %v1844_v2 = vpop.eup %1843  ;;  %v1443_v3 = vadd.f32 1e-12, %v1442_v0 }
 0x2ca   : > { %v1419_v4 = vmul.f32 %v1844_v2, %v1417_v62  ;;  %vm1425_vm8 = vweird.f32 %v1844_v2 }
 0x2cb   : > { %1845 = vrsqrt.f32 %v1443_v3  ;;  %vm1426_vm10 = vmor %vm1424_vm9, %vm1425_vm8  ;;  %vm1450_vm12 = vweird.f32 %v1443_v3 }
 0x2cc   : > { %v1420_v5 = vmul.f32 %v1844_v2, %v1419_v4 }
 0x2ce   : > { %v1421_v6 = vmul.f32 0.5, %v1420_v5 }
 0x2d0   : > { %v1422_v7 = vsub.f32 1.5, %v1421_v6 }
 0x2d1   : > { %v1846_v8 = vpop.eup %1845 }
 0x2d2   : > { %v1423_v10 = vmul.f32 %v1844_v2, %v1422_v7  ;;  %v1445_v12 = vmul.f32 %v1846_v8, %v1443_v3  ;;  %vm1451_vm11 = vweird.f32 %v1846_v8 }
 0x2d3   : > { %vm1452_vm13 = vmor %vm1450_vm12, %vm1451_vm11 }
 0x2d4   : > { %v1427_v14 = vsel %vm1426_vm10, %v1844_v2, %v1423_v10  ;;  %v1446_v15 = vmul.f32 %v1846_v8, %v1445_v12 }
 0x2d5   : > { %v1428_v17 = vmul.f32 %v1427_v14, %v1412_v54 }
 0x2d6   : > { %v1447_v18 = vmul.f32 0.5, %v1446_v15 }
 0x2d7   : > { %v1430_v19 = vmul.f32 %v1837_v13, %v1428_v17 }
 0x2d8   : > { %v1448_v1 = vsub.f32 1.5, %v1447_v18 }
 0x2d9   : > { %v1432_v20 = vadd.f32 %v1838_v16, %v1430_v19 }
 0x2da   : > { %v1449_v21 = vmul.f32 %v1846_v8, %v1448_v1 }
 0x2db   : > { %1433 = vst [vmem:[%s743_s29] sm:$0xff] %v1432_v20 }
 0x2dc   : > { %v1453_v23 = vsel %vm1452_vm13, %v1846_v8, %v1449_v21 }
 0x2dd   : > { %v1454_v25 = vmul.f32 %v1453_v23, %v1438_v58 }
 0x2df   : > { %v1456_v9 = vmul.f32 %v1839_v22, %v1454_v25 }
 0x2e1   : > { %v1458_v26 = vadd.f32 %v1840_v24, %v1456_v9 }
 0x2e3   : > { %1459 = vst [vmem:[%s751_s13] sm:$0xff] %v1458_v26 }
 0x2e4 PF: > { %s23_s21 = sadd.s32 1, %s1921_s21   ;;  %s2292_s17 = smov %s1913_s19 }
 0x2e5   : > { %p20_p0 = scmp.ge.s32.totalorder %s23_s21, 8   ;;  %s2293_s18 = smov %s1917_s20 }
 0x2e6   : > { %s2294_s19 = smov %s2297_s23  ;;  %s2295_s20 = smov %s2301_s24 }
 0x2e7   :  { %22 = sbr.rel (!%p20_p0) target bundleno = 5 (0x5), region = 129 }
 0x2ec   :  { %1509 = vsyncpa [#allocation4], 1 }
 0x2ed   :  { %1511 = vsyncpa [#allocation4 + $0x1], 1 }

</bundles_post_ra>
